<compile_context>
chip_gen: v6e
topology: v6e:2x2x1
jax: 0.10.0
libtpu: 0.0.40
codegen_flags: <defaults>
</compile_context>

<pallas_src>
import math
from functools import partial

import jax
import jax.numpy as jnp
from jax.experimental import pallas as pl
from jax.experimental.pallas import tpu as pltpu

# ----------------------------- model config ---------------------------------
B, S, H = 2, 16, 32          # batch, seq_len, hidden_size
N_HEADS, DH = 4, H // 4      # attention heads, head dim
INTER = 4 * H                # FFN intermediate
VOCAB, N_TYPES, N_CLASS = 100, 2, 2
ARGS = dict(hidden_size=H, n_class=N_CLASS, gate=True, aug=True,
            uniform=False, zero_peturb=2, hidden_dropout_prob=0.1)

_BF16 = jnp.bfloat16

# rows of the packed small-parameter slab (one [16,128] f32 input)
(_R_ELN_G, _R_ELN_B, _R_BQKV, _R_BO, _R_LN1_G, _R_LN1_B, _R_BI, _R_BF,
 _R_LN2_G, _R_LN2_B, _R_BP, _R_BC, _R_NB1, _R_NB2, _R_GB1, _R_GB2) = range(16)


# ----------------------------- the fused kernel -------------------------------
def _newbert_kernel(batch, seq, slab_rows, scale, ln_eps, prior_logvar, inv_temp):
    inv_prior_var = math.exp(-prior_logvar)

    def wdot(a, w):  # f32 activation x bf16 weight, f32 MXU accumulation
        return jax.lax.dot_general(a.astype(_BF16), w, (((1,), (0,)), ((), ())),
                                   preferred_element_type=jnp.float32)

    def bdot_nt(a, b):  # a @ b.T, both cast to bf16
        return jax.lax.dot_general(a.astype(_BF16), b.astype(_BF16),
                                   (((1,), (1,)), ((), ())),
                                   preferred_element_type=jnp.float32)

    def bdot(a, b):  # a @ b, both cast to bf16
        return jax.lax.dot_general(a.astype(_BF16), b.astype(_BF16),
                                   (((1,), (0,)), ((), ())),
                                   preferred_element_type=jnp.float32)

    def layernorm(x, g, b):
        mean = jnp.mean(x, axis=-1, keepdims=True)
        var = jnp.mean((x - mean) ** 2, axis=-1, keepdims=True)
        return (x - mean) * jax.lax.rsqrt(var + ln_eps) * g + b

    def gelu(x):
        # TODO(synk): HF BERT uses erf-based GELU; tanh approximation used here.
        return 0.5 * x * (1.0 + jnp.tanh(0.7978845608028654 *
                                         (x + 0.044715 * x * x * x)))

    def softmax_rows(s):
        m = jnp.max(s, axis=-1, keepdims=True)
        e = jnp.exp(s - m)
        return e * pl.reciprocal(jnp.sum(e, axis=-1, keepdims=True), approx=True)

    def kernel(x0_ref, epert_ref, pt_ref, bias_ref, eps_ref, maskf_ref, pk_ref,
               wqkv_ref, wo_ref, wi_ref, wf_ref, wp_ref, wc_ref,
               nW1_ref, nW2_ref, gW1_ref, gW2_ref, out_ref):
        pk = pk_ref[...]                                            # [16, 128] f32

        def prow(r, w):
            return pk[r:r + 1, :w]

        eln_g, eln_b = prow(_R_ELN_G, H), prow(_R_ELN_B, H)
        bqkv = prow(_R_BQKV, 3 * H)
        bo = prow(_R_BO, H)
        ln1_g, ln1_b = prow(_R_LN1_G, H), prow(_R_LN1_B, H)
        bi = prow(_R_BI, INTER)
        bf_ = prow(_R_BF, H)
        ln2_g, ln2_b = prow(_R_LN2_G, H), prow(_R_LN2_B, H)
        bp = prow(_R_BP, H)
        bc128 = pk[_R_BC:_R_BC + 1, :]                              # [1, 128]
        nb1, nb2 = prow(_R_NB1, H), prow(_R_NB2, 2 * H)
        gb1, gb2 = prow(_R_GB1, H), prow(_R_GB2, N_CLASS)

        wqkv = wqkv_ref[...]                                        # [H, 3H] bf16 head-major
        wo = wo_ref[...]                                            # [H, H]  bf16
        wi, wf = wi_ref[...], wf_ref[...]
        bias = bias_ref[...]                                        # [batch, seq] f32

        def encoder(x_emb, nb, bias_idx):
            """One fused BERT layer over a flattened [nb*seq, H] batch."""
            x = layernorm(x_emb, eln_g, eln_b)
            qkv = wdot(x, wqkv) + bqkv                              # [nb*seq, 3H]
            ctx_rows = []
            for b in range(nb):                                     # short unrolled loop
                qkv_b = qkv[b * seq:(b + 1) * seq, :]
                bi_row = bias[bias_idx(b):bias_idx(b) + 1, :]       # [1, seq]
                heads = []
                for h in range(N_HEADS):
                    blk = qkv_b[:, h * 3 * DH:(h + 1) * 3 * DH]     # contiguous q|k|v
                    qh = blk[:, :DH]
                    kh = blk[:, DH:2 * DH]
                    vh = blk[:, 2 * DH:]
                    p = softmax_rows(bdot_nt(qh, kh) * scale + bi_row)
                    heads.append(bdot(p, vh))                       # [seq, DH]
                ctx_rows.append(jnp.concatenate(heads, axis=1))     # [seq, H]
            ctx = jnp.concatenate(ctx_rows, axis=0)                 # [nb*seq, H]
            attn = wdot(ctx, wo) + bo                               # single Wo matmul
            h1 = layernorm(attn + x, ln1_g, ln1_b)
            f = gelu(wdot(h1, wi) + bi)
            h2 = layernorm(wdot(f, wf) + bf_ + h1, ln2_g, ln2_b)
            return h2

        # --- pass A: frozen encoder on the original inputs (torch.no_grad) ----
        h_a = encoder(x0_ref[...], batch, lambda b: b)              # [batch*seq, H]

        # --- noise_net -> reparameterization -> Gaussian KL --------------------
        nh = jnp.maximum(wdot(h_a, nW1_ref[...]) + nb1, 0.0)
        ml = wdot(nh, nW2_ref[...]) + nb2                           # [batch*seq, 2H]
        mu = ml[:, :H]
        lv = ml[:, H:2 * H]
        zs = mu + eps_ref[...] * jnp.exp(0.5 * lv)                  # reparameterization
        mk = maskf_ref[...]                                         # [batch*seq, 1]
        numerator = jnp.exp(lv) + (mu - 1.0) ** 2
        per_dim = prior_logvar - lv + numerator * inv_prior_var - 1.0
        kl_row = 0.5 * jnp.sum(per_dim, axis=1, keepdims=True)
        kl = jnp.sum(kl_row * mk) / jnp.sum(mk)

        # --- pass B: stacked noisy + clean classifier passes -------------------
        epert = epert_ref[...]
        pt = pt_ref[...]
        x_stack = jnp.concatenate([epert * zs + pt, epert + pt], axis=0)
        h_b = encoder(x_stack, 2 * batch, lambda b: b % batch)      # [2*batch*seq, H]

        # --- pooler + classifier on all CLS rows at once ------------------------
        cls = jnp.concatenate(
            [h_b[b * seq:b * seq + 1, :] for b in range(2 * batch)], axis=0)  # [2B, H]
        pooled = jnp.tanh(wdot(cls, wp_ref[...]) + bp)
        logits128 = wdot(pooled, wc_ref[...]) + bc128               # [2B, 128] lane-dense

        # --- gate MLP (fused epilogue) ------------------------------------------
        cls_total = jnp.mean(
            jnp.concatenate([cls[:batch, :], cls[batch:, :]], axis=1),
            axis=0, keepdims=True)                                  # [1, 2H]
        g = jnp.maximum(wdot(cls_total, gW1_ref[...]) + gb1, 0.0)
        res = (wdot(g, gW2_ref[...]) + gb2) * inv_temp              # [1, 2]
        gates = softmax_rows(res)

        # --- pack the single lane-dense output slab -----------------------------
        gates128 = jnp.concatenate(
            [gates, jnp.zeros((1, 128 - N_CLASS), jnp.float32)], axis=1)
        kl128 = jnp.concatenate(
            [jnp.reshape(kl, (1, 1)), jnp.zeros((1, 127), jnp.float32)], axis=1)
        pieces = [logits128, gates128, kl128]
        n_pad = slab_rows - (2 * batch + 2)
        if n_pad > 0:
            pieces.append(jnp.zeros((n_pad, 128), jnp.float32))
        out_ref[...] = jnp.concatenate(pieces, axis=0)

    return kernel


def fused_newbert(x0, epert, pt, bias, eps, maskf, kp, *, batch, seq, p_drop):
    """Single pallas_call running the whole NewBert forward compute.

    Returns a [slab_rows, 128] f32 slab:
      rows 0..2*batch-1, cols :N_CLASS  -> logits (noisy batch then clean batch)
      row  2*batch,      cols :2        -> gate softmax
      row  2*batch+1,    col  0         -> KL scalar
    """
    prior_logvar = math.log(math.sqrt(p_drop / (1.0 - p_drop)))  # as in torch ref
    slab_rows = ((2 * batch + 2 + 7) // 8) * 8

    def full(a):
        nd = a.ndim
        return pl.BlockSpec(a.shape, lambda i, nd=nd: (0,) * nd)

    operands = (x0, epert, pt, bias, eps, maskf, kp["pk"],
                kp["wqkv"], kp["wo"], kp["wi"], kp["wf"], kp["wp"], kp["wc"],
                kp["nW1"], kp["nW2"], kp["gW1"], kp["gW2"])

    slab = pl.pallas_call(
        _newbert_kernel(batch, seq, slab_rows, 1.0 / math.sqrt(DH), 1e-12,
                        prior_logvar, 2.0),
        out_shape=jax.ShapeDtypeStruct((slab_rows, 128), jnp.float32),
        grid=(1,),
        in_specs=[full(a) for a in operands],
        out_specs=pl.BlockSpec((slab_rows, 128), lambda i: (0, 0)),
        compiler_params=pltpu.CompilerParams(
            dimension_semantics=("arbitrary",)),
    )(*operands)
    return slab


# ----------------------------- synthetic BERT params --------------------------
def init_params(key):
    w_shapes = dict(
        word_emb=(VOCAB, H), pos_emb=(S, H), type_emb=(N_TYPES, H),
        Wq=(H, H), Wk=(H, H), Wv=(H, H), Wo=(H, H),
        Wi=(H, INTER), Wf=(INTER, H), Wp=(H, H), Wc=(H, N_CLASS),
        noise_W1=(H, H), noise_W2=(H, 2 * H),
        gate_W1=(2 * H, H), gate_W2=(H, 2),
    )
    b_shapes = dict(
        bq=(H,), bk=(H,), bv=(H,), bo=(H,), bi=(INTER,), bf=(H,),
        bp=(H,), bc=(N_CLASS,), noise_b1=(H,), noise_b2=(2 * H,),
        gate_b1=(H,), gate_b2=(2,),
    )
    params = {}
    keys = jax.random.split(key, len(w_shapes))
    for k, (name, shp) in zip(keys, w_shapes.items()):
        params[name] = 0.02 * jax.random.normal(k, shp, jnp.float32)
    for name, shp in b_shapes.items():
        params[name] = jnp.zeros(shp, jnp.float32)
    for g, b in [("emb_ln_g", "emb_ln_b"), ("ln1_g", "ln1_b"), ("ln2_g", "ln2_b")]:
        params[g] = jnp.ones((H,), jnp.float32)
        params[b] = jnp.zeros((H,), jnp.float32)
    return params


def prepare_kernel_params(p):
    """Pack / reorder / bf16-cast parameters for the fused kernel."""
    # head-major QKV packing: per head, (q|k|v) columns are contiguous (24 lanes)
    wcols, bcols = [], []
    for h in range(N_HEADS):
        sl = slice(h * DH, (h + 1) * DH)
        wcols += [p["Wq"][:, sl], p["Wk"][:, sl], p["Wv"][:, sl]]
        bcols += [p["bq"][sl], p["bk"][sl], p["bv"][sl]]
    wqkv = jnp.concatenate(wcols, axis=1).astype(_BF16)          # [H, 3H]
    bqkv = jnp.concatenate(bcols)                                # [3H]

    def row(vec):
        v = jnp.asarray(vec, jnp.float32).reshape(-1)
        return jnp.pad(v, (0, 128 - v.shape[0]))

    pk = jnp.stack([
        row(p["emb_ln_g"]), row(p["emb_ln_b"]),
        row(bqkv), row(p["bo"]),
        row(p["ln1_g"]), row(p["ln1_b"]),
        row(p["bi"]), row(p["bf"]),
        row(p["ln2_g"]), row(p["ln2_b"]),
        row(p["bp"]), row(p["bc"]),
        row(p["noise_b1"]), row(p["noise_b2"]),
        row(p["gate_b1"]), row(p["gate_b2"]),
    ], axis=0)                                                   # [16, 128] f32

    # classifier weight zero-padded to 128 output lanes -> lane-dense logits rows
    wc_pad = jnp.zeros((H, 128), jnp.float32).at[:, :N_CLASS].set(p["Wc"])

    return dict(
        pk=pk,
        wqkv=wqkv,
        wo=p["Wo"].astype(_BF16),
        wi=p["Wi"].astype(_BF16), wf=p["Wf"].astype(_BF16),
        wp=p["Wp"].astype(_BF16), wc=wc_pad.astype(_BF16),
        nW1=p["noise_W1"].astype(_BF16), nW2=p["noise_W2"].astype(_BF16),
        gW1=p["gate_W1"].astype(_BF16), gW2=p["gate_W2"].astype(_BF16),
    )


def cross_entropy(logits, labels):
    logp = jax.nn.log_softmax(logits, axis=-1)
    return -jnp.mean(jnp.take_along_axis(logp, labels[:, None], axis=1))


# ----------------------------- NewBert forward --------------------------------
def newbert_forward(params, args, input_ids, attention_mask, token_type_ids,
                    labels, key):
    Bx, Sx = input_ids.shape
    kp = prepare_kernel_params(params)

    word = jnp.take(params["word_emb"], input_ids, axis=0)               # [B,S,H]
    pos_type = (params["pos_emb"][None, :Sx, :]
                + jnp.take(params["type_emb"], token_type_ids, axis=0))  # [B,S,H]
    bias = (1.0 - attention_mask.astype(jnp.float32)) * -1e9             # [B,S]

    # TODO(synk): generate_keyword_mask / KeywordAttentionLayer skipped — the
    # layer is undefined in the reference and its output is immediately
    # overwritten by the fresh frozen encoder pass (dead path).

    # zero-perturbation of a few embedding rows.
    # TODO(synk): original uses Python `random`; reproduced deterministically.
    key, k_eps, k_pos, k_vec = jax.random.split(key, 4)
    pert_b = 1
    pos = jax.random.randint(k_pos, (args["zero_peturb"],), 1, Sx)
    vecs = jax.random.uniform(k_vec, (args["zero_peturb"], H), jnp.float32)
    inputs_embeds = word.at[pert_b, pos].set(vecs)

    eps = jax.random.normal(k_eps, (Bx * Sx, H), jnp.float32)
    maskf = attention_mask.reshape(Bx * Sx, 1).astype(jnp.float32)

    x0 = (word + pos_type).reshape(Bx * Sx, H)       # frozen-pass embeddings
    epert = inputs_embeds.reshape(Bx * Sx, H)        # perturbed word embeddings
    pt = pos_type.reshape(Bx * Sx, H)

    # TODO(synk): only the aug=True / uniform=False / eval path is implemented
    # (uniform-noise branch and hidden dropout are skipped).
    slab = fused_newbert(x0, epert, pt, bias, eps, maskf, kp,
                         batch=Bx, seq=Sx, p_drop=args["hidden_dropout_prob"])

    logits_noise = slab[:Bx, :N_CLASS]
    logits_clean = slab[Bx:2 * Bx, :N_CLASS]
    gates = slab[2 * Bx, :2]
    kl = slab[2 * Bx + 1, 0]

    noise_loss = cross_entropy(logits_noise, labels)
    nll = cross_entropy(logits_clean, labels)
    if args["gate"]:
        loss = noise_loss * gates[0] + nll * gates[1]
    else:
        loss = nll + 0.001 * noise_loss

    return loss, kl, logits_clean


# ----------------------------- main ------------------------------------------
if __name__ == "__main__":
    root = jax.random.PRNGKey(0)
    k_param, k_ids, k_lbl, k_fwd = jax.random.split(root, 4)

    params = init_params(k_param)

    input_ids = jax.random.randint(k_ids, (B, S), 0, VOCAB, dtype=jnp.int32)
    attention_mask = jnp.concatenate(
        [jnp.ones((B, S - 3), jnp.int32),
         jnp.array([[1, 1, 1], [0, 0, 0]], jnp.int32)], axis=1)  # batch 1 padded
    token_type_ids = jnp.concatenate(
        [jnp.zeros((B, S // 2), jnp.int32), jnp.ones((B, S // 2), jnp.int32)],
        axis=1)
    labels = jax.random.randint(k_lbl, (B,), 0, N_CLASS, dtype=jnp.int32)

    fwd = jax.jit(partial(newbert_forward, params, ARGS))
    loss, kl, logits = fwd(input_ids, attention_mask, token_type_ids, labels, k_fwd)
    jax.block_until_ready((loss, kl, logits))

    assert logits.shape == (B, N_CLASS)
    assert jnp.isfinite(loss) and jnp.isfinite(kl)
    print("KERNEL_OK")
</pallas_src>

<mosaic_0001>
module attributes {stable_mosaic.version = 11 : i64} {
  func.func @kernel(%arg0: i32, %arg1: memref<32x32xf32, #tpu.memory_space<vmem>>, %arg2: memref<32x32xf32, #tpu.memory_space<vmem>>, %arg3: memref<32x32xf32, #tpu.memory_space<vmem>>, %arg4: memref<2x16xf32, #tpu.memory_space<vmem>>, %arg5: memref<32x32xf32, #tpu.memory_space<vmem>>, %arg6: memref<32x1xf32, #tpu.memory_space<vmem>>, %arg7: memref<16x128xf32, #tpu.memory_space<vmem>>, %arg8: memref<32x96xbf16, #tpu.memory_space<vmem>>, %arg9: memref<32x32xbf16, #tpu.memory_space<vmem>>, %arg10: memref<32x128xbf16, #tpu.memory_space<vmem>>, %arg11: memref<128x32xbf16, #tpu.memory_space<vmem>>, %arg12: memref<32x32xbf16, #tpu.memory_space<vmem>>, %arg13: memref<32x128xbf16, #tpu.memory_space<vmem>>, %arg14: memref<32x32xbf16, #tpu.memory_space<vmem>>, %arg15: memref<32x64xbf16, #tpu.memory_space<vmem>>, %arg16: memref<64x32xbf16, #tpu.memory_space<vmem>>, %arg17: memref<32x2xbf16, #tpu.memory_space<vmem>>, %arg18: memref<8x128xf32, #tpu.memory_space<vmem>>) attributes {dimension_semantics = [#tpu.dimension_semantics<arbitrary>], iteration_bounds = array<i64: 1>, scalar_prefetch = 0 : i64, scratch_operands = 0 : i64, tpu.core_type = #tpu.core_type<tc>, window_params = [{pipeline_mode = #tpu.pipeline_mode<synchronous>, transform_indices = @transform_0, window_bounds = array<i64: 32, 32>}, {pipeline_mode = #tpu.pipeline_mode<synchronous>, transform_indices = @transform_1, window_bounds = array<i64: 32, 32>}, {pipeline_mode = #tpu.pipeline_mode<synchronous>, transform_indices = @transform_2, window_bounds = array<i64: 32, 32>}, {pipeline_mode = #tpu.pipeline_mode<synchronous>, transform_indices = @transform_3, window_bounds = array<i64: 2, 16>}, {pipeline_mode = #tpu.pipeline_mode<synchronous>, transform_indices = @transform_4, window_bounds = array<i64: 32, 32>}, {pipeline_mode = #tpu.pipeline_mode<synchronous>, transform_indices = @transform_5, window_bounds = array<i64: 32, 1>}, {pipeline_mode = #tpu.pipeline_mode<synchronous>, transform_indices = @transform_6, window_bounds = array<i64: 16, 128>}, {pipeline_mode = #tpu.pipeline_mode<synchronous>, transform_indices = @transform_7, window_bounds = array<i64: 32, 96>}, {pipeline_mode = #tpu.pipeline_mode<synchronous>, transform_indices = @transform_8, window_bounds = array<i64: 32, 32>}, {pipeline_mode = #tpu.pipeline_mode<synchronous>, transform_indices = @transform_9, window_bounds = array<i64: 32, 128>}, {pipeline_mode = #tpu.pipeline_mode<synchronous>, transform_indices = @transform_10, window_bounds = array<i64: 128, 32>}, {pipeline_mode = #tpu.pipeline_mode<synchronous>, transform_indices = @transform_11, window_bounds = array<i64: 32, 32>}, {pipeline_mode = #tpu.pipeline_mode<synchronous>, transform_indices = @transform_12, window_bounds = array<i64: 32, 128>}, {pipeline_mode = #tpu.pipeline_mode<synchronous>, transform_indices = @transform_13, window_bounds = array<i64: 32, 32>}, {pipeline_mode = #tpu.pipeline_mode<synchronous>, transform_indices = @transform_14, window_bounds = array<i64: 32, 64>}, {pipeline_mode = #tpu.pipeline_mode<synchronous>, transform_indices = @transform_15, window_bounds = array<i64: 64, 32>}, {pipeline_mode = #tpu.pipeline_mode<synchronous>, transform_indices = @transform_16, window_bounds = array<i64: 32, 2>}, {pipeline_mode = #tpu.pipeline_mode<synchronous>, transform_indices = @transform_17, window_bounds = array<i64: 8, 128>}]} {
    %c0 = arith.constant 0 : index
    %c0_0 = arith.constant 0 : index
    %0 = vector.load %arg7[%c0, %c0_0] : memref<16x128xf32, #tpu.memory_space<vmem>>, vector<16x128xf32>
    %1 = vector.extract_strided_slice %0 {offsets = [0, 0], sizes = [1, 32], strides = [1, 1]} : vector<16x128xf32> to vector<1x32xf32>
    %2 = vector.extract_strided_slice %0 {offsets = [1, 0], sizes = [1, 32], strides = [1, 1]} : vector<16x128xf32> to vector<1x32xf32>
    %3 = vector.extract_strided_slice %0 {offsets = [2, 0], sizes = [1, 96], strides = [1, 1]} : vector<16x128xf32> to vector<1x96xf32>
    %4 = vector.extract_strided_slice %0 {offsets = [3, 0], sizes = [1, 32], strides = [1, 1]} : vector<16x128xf32> to vector<1x32xf32>
    %5 = vector.extract_strided_slice %0 {offsets = [4, 0], sizes = [1, 32], strides = [1, 1]} : vector<16x128xf32> to vector<1x32xf32>
    %6 = vector.extract_strided_slice %0 {offsets = [5, 0], sizes = [1, 32], strides = [1, 1]} : vector<16x128xf32> to vector<1x32xf32>
    %7 = vector.extract_strided_slice %0 {offsets = [6, 0], sizes = [1, 128], strides = [1, 1]} : vector<16x128xf32> to vector<1x128xf32>
    %8 = vector.extract_strided_slice %0 {offsets = [7, 0], sizes = [1, 32], strides = [1, 1]} : vector<16x128xf32> to vector<1x32xf32>
    %9 = vector.extract_strided_slice %0 {offsets = [8, 0], sizes = [1, 32], strides = [1, 1]} : vector<16x128xf32> to vector<1x32xf32>
    %10 = vector.extract_strided_slice %0 {offsets = [9, 0], sizes = [1, 32], strides = [1, 1]} : vector<16x128xf32> to vector<1x32xf32>
    %11 = vector.extract_strided_slice %0 {offsets = [10, 0], sizes = [1, 32], strides = [1, 1]} : vector<16x128xf32> to vector<1x32xf32>
    %12 = vector.extract_strided_slice %0 {offsets = [11, 0], sizes = [1, 128], strides = [1, 1]} : vector<16x128xf32> to vector<1x128xf32>
    %13 = vector.extract_strided_slice %0 {offsets = [12, 0], sizes = [1, 32], strides = [1, 1]} : vector<16x128xf32> to vector<1x32xf32>
    %14 = vector.extract_strided_slice %0 {offsets = [13, 0], sizes = [1, 64], strides = [1, 1]} : vector<16x128xf32> to vector<1x64xf32>
    %15 = vector.extract_strided_slice %0 {offsets = [14, 0], sizes = [1, 32], strides = [1, 1]} : vector<16x128xf32> to vector<1x32xf32>
    %16 = vector.extract_strided_slice %0 {offsets = [15, 0], sizes = [1, 2], strides = [1, 1]} : vector<16x128xf32> to vector<1x2xf32>
    %c0_1 = arith.constant 0 : index
    %c0_2 = arith.constant 0 : index
    %17 = vector.load %arg8[%c0_1, %c0_2] : memref<32x96xbf16, #tpu.memory_space<vmem>>, vector<32x96xbf16>
    %c0_3 = arith.constant 0 : index
    %c0_4 = arith.constant 0 : index
    %18 = vector.load %arg9[%c0_3, %c0_4] : memref<32x32xbf16, #tpu.memory_space<vmem>>, vector<32x32xbf16>
    %c0_5 = arith.constant 0 : index
    %c0_6 = arith.constant 0 : index
    %19 = vector.load %arg10[%c0_5, %c0_6] : memref<32x128xbf16, #tpu.memory_space<vmem>>, vector<32x128xbf16>
    %c0_7 = arith.constant 0 : index
    %c0_8 = arith.constant 0 : index
    %20 = vector.load %arg11[%c0_7, %c0_8] : memref<128x32xbf16, #tpu.memory_space<vmem>>, vector<128x32xbf16>
    %c0_9 = arith.constant 0 : index
    %c0_10 = arith.constant 0 : index
    %21 = vector.load %arg4[%c0_9, %c0_10] : memref<2x16xf32, #tpu.memory_space<vmem>>, vector<2x16xf32>
    %c0_11 = arith.constant 0 : index
    %c0_12 = arith.constant 0 : index
    %22 = vector.load %arg1[%c0_11, %c0_12] : memref<32x32xf32, #tpu.memory_space<vmem>>, vector<32x32xf32>
    %cst = arith.constant dense<0.000000e+00> : vector<32xf32>
    %23 = vector.multi_reduction <add>, %22, %cst [1] : vector<32x32xf32> to vector<32xf32>
    %24 = vector.shape_cast %23 : vector<32xf32> to vector<32x1xf32>
    %cst_13 = arith.constant 3.200000e+01 : f32
    %25 = vector.broadcast %cst_13 : f32 to vector<32x1xf32>
    %26 = arith.divf %24, %25 : vector<32x1xf32>
    %27 = vector.broadcast %26 : vector<32x1xf32> to vector<32x32xf32>
    %28 = arith.subf %22, %27 : vector<32x32xf32>
    %29 = arith.mulf %28, %28 : vector<32x32xf32>
    %cst_14 = arith.constant dense<0.000000e+00> : vector<32xf32>
    %30 = vector.multi_reduction <add>, %29, %cst_14 [1] : vector<32x32xf32> to vector<32xf32>
    %31 = vector.shape_cast %30 : vector<32xf32> to vector<32x1xf32>
    %cst_15 = arith.constant 3.200000e+01 : f32
    %32 = vector.broadcast %cst_15 : f32 to vector<32x1xf32>
    %33 = arith.divf %31, %32 : vector<32x1xf32>
    %34 = vector.broadcast %26 : vector<32x1xf32> to vector<32x32xf32>
    %35 = arith.subf %22, %34 : vector<32x32xf32>
    %cst_16 = arith.constant 9.99999996E-13 : f32
    %36 = vector.broadcast %cst_16 : f32 to vector<32x1xf32>
    %37 = arith.addf %33, %36 : vector<32x1xf32>
    %38 = math.rsqrt %37 : vector<32x1xf32>
    %39 = vector.broadcast %38 : vector<32x1xf32> to vector<32x32xf32>
    %40 = arith.mulf %35, %39 : vector<32x32xf32>
    %41 = vector.broadcast %1 : vector<1x32xf32> to vector<32x32xf32>
    %42 = arith.mulf %40, %41 : vector<32x32xf32>
    %43 = vector.broadcast %2 : vector<1x32xf32> to vector<32x32xf32>
    %44 = arith.addf %42, %43 : vector<32x32xf32>
    %45 = arith.truncf %44 : vector<32x32xf32> to vector<32x32xbf16>
    %cst_17 = arith.constant dense<0.000000e+00> : vector<32x96xf32>
    %46 = tpu.matmul %45, %17, %cst_17 {dimension_numbers = #tpu.dot_dimension_numbers<[1], [0], [0], [1], [0, 0, 1, 1], [], []>} : vector<32x32xbf16>, vector<32x96xbf16>, vector<32x96xf32> -> vector<32x96xf32>
    %47 = vector.broadcast %3 : vector<1x96xf32> to vector<32x96xf32>
    %48 = arith.addf %46, %47 : vector<32x96xf32>
    %49 = vector.extract_strided_slice %48 {offsets = [0, 0], sizes = [16, 96], strides = [1, 1]} : vector<32x96xf32> to vector<16x96xf32>
    %50 = vector.extract_strided_slice %21 {offsets = [0, 0], sizes = [1, 16], strides = [1, 1]} : vector<2x16xf32> to vector<1x16xf32>
    %51 = vector.extract_strided_slice %49 {offsets = [0, 0], sizes = [16, 24], strides = [1, 1]} : vector<16x96xf32> to vector<16x24xf32>
    %52 = vector.extract_strided_slice %51 {offsets = [0, 0], sizes = [16, 8], strides = [1, 1]} : vector<16x24xf32> to vector<16x8xf32>
    %53 = vector.extract_strided_slice %51 {offsets = [0, 8], sizes = [16, 8], strides = [1, 1]} : vector<16x24xf32> to vector<16x8xf32>
    %54 = vector.extract_strided_slice %51 {offsets = [0, 16], sizes = [16, 8], strides = [1, 1]} : vector<16x24xf32> to vector<16x8xf32>
    %55 = arith.truncf %52 : vector<16x8xf32> to vector<16x8xbf16>
    %56 = arith.truncf %53 : vector<16x8xf32> to vector<16x8xbf16>
    %cst_18 = arith.constant dense<0.000000e+00> : vector<16x16xf32>
    %57 = tpu.matmul %55, %56, %cst_18 {dimension_numbers = #tpu.dot_dimension_numbers<[1], [1], [0], [0], [0, 0, 1, 0], [], []>} : vector<16x8xbf16>, vector<16x8xbf16>, vector<16x16xf32> -> vector<16x16xf32>
    %cst_19 = arith.constant 0.353553385 : f32
    %58 = vector.broadcast %cst_19 : f32 to vector<16x16xf32>
    %59 = arith.mulf %57, %58 : vector<16x16xf32>
    %60 = vector.broadcast %50 : vector<1x16xf32> to vector<16x16xf32>
    %61 = arith.addf %59, %60 : vector<16x16xf32>
    %cst_20 = arith.constant dense<0xFF800000> : vector<16xf32>
    %62 = vector.multi_reduction <maximumf>, %61, %cst_20 [1] : vector<16x16xf32> to vector<16xf32>
    %63 = vector.shape_cast %62 : vector<16xf32> to vector<16x1xf32>
    %64 = vector.broadcast %63 : vector<16x1xf32> to vector<16x16xf32>
    %65 = arith.subf %61, %64 : vector<16x16xf32>
    %66 = math.exp %65 : vector<16x16xf32>
    %cst_21 = arith.constant dense<0.000000e+00> : vector<16xf32>
    %67 = vector.multi_reduction <add>, %66, %cst_21 [1] : vector<16x16xf32> to vector<16xf32>
    %68 = vector.shape_cast %67 : vector<16xf32> to vector<16x1xf32>
    %69 = tpu.reciprocal %68 {approx = true} : vector<16x1xf32> -> vector<16x1xf32>
    %70 = vector.broadcast %69 : vector<16x1xf32> to vector<16x16xf32>
    %71 = arith.mulf %66, %70 : vector<16x16xf32>
    %72 = arith.truncf %71 : vector<16x16xf32> to vector<16x16xbf16>
    %73 = arith.truncf %54 : vector<16x8xf32> to vector<16x8xbf16>
    %cst_22 = arith.constant dense<0.000000e+00> : vector<16x8xf32>
    %74 = tpu.matmul %72, %73, %cst_22 {dimension_numbers = #tpu.dot_dimension_numbers<[1], [0], [0], [1], [0, 0, 1, 1], [], []>} : vector<16x16xbf16>, vector<16x8xbf16>, vector<16x8xf32> -> vector<16x8xf32>
    %75 = vector.extract_strided_slice %49 {offsets = [0, 24], sizes = [16, 24], strides = [1, 1]} : vector<16x96xf32> to vector<16x24xf32>
    %76 = vector.extract_strided_slice %75 {offsets = [0, 0], sizes = [16, 8], strides = [1, 1]} : vector<16x24xf32> to vector<16x8xf32>
    %77 = vector.extract_strided_slice %75 {offsets = [0, 8], sizes = [16, 8], strides = [1, 1]} : vector<16x24xf32> to vector<16x8xf32>
    %78 = vector.extract_strided_slice %75 {offsets = [0, 16], sizes = [16, 8], strides = [1, 1]} : vector<16x24xf32> to vector<16x8xf32>
    %79 = arith.truncf %76 : vector<16x8xf32> to vector<16x8xbf16>
    %80 = arith.truncf %77 : vector<16x8xf32> to vector<16x8xbf16>
    %cst_23 = arith.constant dense<0.000000e+00> : vector<16x16xf32>
    %81 = tpu.matmul %79, %80, %cst_23 {dimension_numbers = #tpu.dot_dimension_numbers<[1], [1], [0], [0], [0, 0, 1, 0], [], []>} : vector<16x8xbf16>, vector<16x8xbf16>, vector<16x16xf32> -> vector<16x16xf32>
    %cst_24 = arith.constant 0.353553385 : f32
    %82 = vector.broadcast %cst_24 : f32 to vector<16x16xf32>
    %83 = arith.mulf %81, %82 : vector<16x16xf32>
    %84 = vector.broadcast %50 : vector<1x16xf32> to vector<16x16xf32>
    %85 = arith.addf %83, %84 : vector<16x16xf32>
    %cst_25 = arith.constant dense<0xFF800000> : vector<16xf32>
    %86 = vector.multi_reduction <maximumf>, %85, %cst_25 [1] : vector<16x16xf32> to vector<16xf32>
    %87 = vector.shape_cast %86 : vector<16xf32> to vector<16x1xf32>
    %88 = vector.broadcast %87 : vector<16x1xf32> to vector<16x16xf32>
    %89 = arith.subf %85, %88 : vector<16x16xf32>
    %90 = math.exp %89 : vector<16x16xf32>
    %cst_26 = arith.constant dense<0.000000e+00> : vector<16xf32>
    %91 = vector.multi_reduction <add>, %90, %cst_26 [1] : vector<16x16xf32> to vector<16xf32>
    %92 = vector.shape_cast %91 : vector<16xf32> to vector<16x1xf32>
    %93 = tpu.reciprocal %92 {approx = true} : vector<16x1xf32> -> vector<16x1xf32>
    %94 = vector.broadcast %93 : vector<16x1xf32> to vector<16x16xf32>
    %95 = arith.mulf %90, %94 : vector<16x16xf32>
    %96 = arith.truncf %95 : vector<16x16xf32> to vector<16x16xbf16>
    %97 = arith.truncf %78 : vector<16x8xf32> to vector<16x8xbf16>
    %cst_27 = arith.constant dense<0.000000e+00> : vector<16x8xf32>
    %98 = tpu.matmul %96, %97, %cst_27 {dimension_numbers = #tpu.dot_dimension_numbers<[1], [0], [0], [1], [0, 0, 1, 1], [], []>} : vector<16x16xbf16>, vector<16x8xbf16>, vector<16x8xf32> -> vector<16x8xf32>
    %99 = vector.extract_strided_slice %49 {offsets = [0, 48], sizes = [16, 24], strides = [1, 1]} : vector<16x96xf32> to vector<16x24xf32>
    %100 = vector.extract_strided_slice %99 {offsets = [0, 0], sizes = [16, 8], strides = [1, 1]} : vector<16x24xf32> to vector<16x8xf32>
    %101 = vector.extract_strided_slice %99 {offsets = [0, 8], sizes = [16, 8], strides = [1, 1]} : vector<16x24xf32> to vector<16x8xf32>
    %102 = vector.extract_strided_slice %99 {offsets = [0, 16], sizes = [16, 8], strides = [1, 1]} : vector<16x24xf32> to vector<16x8xf32>
    %103 = arith.truncf %100 : vector<16x8xf32> to vector<16x8xbf16>
    %104 = arith.truncf %101 : vector<16x8xf32> to vector<16x8xbf16>
    %cst_28 = arith.constant dense<0.000000e+00> : vector<16x16xf32>
    %105 = tpu.matmul %103, %104, %cst_28 {dimension_numbers = #tpu.dot_dimension_numbers<[1], [1], [0], [0], [0, 0, 1, 0], [], []>} : vector<16x8xbf16>, vector<16x8xbf16>, vector<16x16xf32> -> vector<16x16xf32>
    %cst_29 = arith.constant 0.353553385 : f32
    %106 = vector.broadcast %cst_29 : f32 to vector<16x16xf32>
    %107 = arith.mulf %105, %106 : vector<16x16xf32>
    %108 = vector.broadcast %50 : vector<1x16xf32> to vector<16x16xf32>
    %109 = arith.addf %107, %108 : vector<16x16xf32>
    %cst_30 = arith.constant dense<0xFF800000> : vector<16xf32>
    %110 = vector.multi_reduction <maximumf>, %109, %cst_30 [1] : vector<16x16xf32> to vector<16xf32>
    %111 = vector.shape_cast %110 : vector<16xf32> to vector<16x1xf32>
    %112 = vector.broadcast %111 : vector<16x1xf32> to vector<16x16xf32>
    %113 = arith.subf %109, %112 : vector<16x16xf32>
    %114 = math.exp %113 : vector<16x16xf32>
    %cst_31 = arith.constant dense<0.000000e+00> : vector<16xf32>
    %115 = vector.multi_reduction <add>, %114, %cst_31 [1] : vector<16x16xf32> to vector<16xf32>
    %116 = vector.shape_cast %115 : vector<16xf32> to vector<16x1xf32>
    %117 = tpu.reciprocal %116 {approx = true} : vector<16x1xf32> -> vector<16x1xf32>
    %118 = vector.broadcast %117 : vector<16x1xf32> to vector<16x16xf32>
    %119 = arith.mulf %114, %118 : vector<16x16xf32>
    %120 = arith.truncf %119 : vector<16x16xf32> to vector<16x16xbf16>
    %121 = arith.truncf %102 : vector<16x8xf32> to vector<16x8xbf16>
    %cst_32 = arith.constant dense<0.000000e+00> : vector<16x8xf32>
    %122 = tpu.matmul %120, %121, %cst_32 {dimension_numbers = #tpu.dot_dimension_numbers<[1], [0], [0], [1], [0, 0, 1, 1], [], []>} : vector<16x16xbf16>, vector<16x8xbf16>, vector<16x8xf32> -> vector<16x8xf32>
    %123 = vector.extract_strided_slice %49 {offsets = [0, 72], sizes = [16, 24], strides = [1, 1]} : vector<16x96xf32> to vector<16x24xf32>
    %124 = vector.extract_strided_slice %123 {offsets = [0, 0], sizes = [16, 8], strides = [1, 1]} : vector<16x24xf32> to vector<16x8xf32>
    %125 = vector.extract_strided_slice %123 {offsets = [0, 8], sizes = [16, 8], strides = [1, 1]} : vector<16x24xf32> to vector<16x8xf32>
    %126 = vector.extract_strided_slice %123 {offsets = [0, 16], sizes = [16, 8], strides = [1, 1]} : vector<16x24xf32> to vector<16x8xf32>
    %127 = arith.truncf %124 : vector<16x8xf32> to vector<16x8xbf16>
    %128 = arith.truncf %125 : vector<16x8xf32> to vector<16x8xbf16>
    %cst_33 = arith.constant dense<0.000000e+00> : vector<16x16xf32>
    %129 = tpu.matmul %127, %128, %cst_33 {dimension_numbers = #tpu.dot_dimension_numbers<[1], [1], [0], [0], [0, 0, 1, 0], [], []>} : vector<16x8xbf16>, vector<16x8xbf16>, vector<16x16xf32> -> vector<16x16xf32>
    %cst_34 = arith.constant 0.353553385 : f32
    %130 = vector.broadcast %cst_34 : f32 to vector<16x16xf32>
    %131 = arith.mulf %129, %130 : vector<16x16xf32>
    %132 = vector.broadcast %50 : vector<1x16xf32> to vector<16x16xf32>
    %133 = arith.addf %131, %132 : vector<16x16xf32>
    %cst_35 = arith.constant dense<0xFF800000> : vector<16xf32>
    %134 = vector.multi_reduction <maximumf>, %133, %cst_35 [1] : vector<16x16xf32> to vector<16xf32>
    %135 = vector.shape_cast %134 : vector<16xf32> to vector<16x1xf32>
    %136 = vector.broadcast %135 : vector<16x1xf32> to vector<16x16xf32>
    %137 = arith.subf %133, %136 : vector<16x16xf32>
    %138 = math.exp %137 : vector<16x16xf32>
    %cst_36 = arith.constant dense<0.000000e+00> : vector<16xf32>
    %139 = vector.multi_reduction <add>, %138, %cst_36 [1] : vector<16x16xf32> to vector<16xf32>
    %140 = vector.shape_cast %139 : vector<16xf32> to vector<16x1xf32>
    %141 = tpu.reciprocal %140 {approx = true} : vector<16x1xf32> -> vector<16x1xf32>
    %142 = vector.broadcast %141 : vector<16x1xf32> to vector<16x16xf32>
    %143 = arith.mulf %138, %142 : vector<16x16xf32>
    %144 = arith.truncf %143 : vector<16x16xf32> to vector<16x16xbf16>
    %145 = arith.truncf %126 : vector<16x8xf32> to vector<16x8xbf16>
    %cst_37 = arith.constant dense<0.000000e+00> : vector<16x8xf32>
    %146 = tpu.matmul %144, %145, %cst_37 {dimension_numbers = #tpu.dot_dimension_numbers<[1], [0], [0], [1], [0, 0, 1, 1], [], []>} : vector<16x16xbf16>, vector<16x8xbf16>, vector<16x8xf32> -> vector<16x8xf32>
    %147 = tpu.concatenate %74, %98, %122, %146 in 1 : vector<16x8xf32>, vector<16x8xf32>, vector<16x8xf32>, vector<16x8xf32> -> vector<16x32xf32>
    %148 = vector.extract_strided_slice %48 {offsets = [16, 0], sizes = [16, 96], strides = [1, 1]} : vector<32x96xf32> to vector<16x96xf32>
    %149 = vector.extract_strided_slice %21 {offsets = [1, 0], sizes = [1, 16], strides = [1, 1]} : vector<2x16xf32> to vector<1x16xf32>
    %150 = vector.extract_strided_slice %148 {offsets = [0, 0], sizes = [16, 24], strides = [1, 1]} : vector<16x96xf32> to vector<16x24xf32>
    %151 = vector.extract_strided_slice %150 {offsets = [0, 0], sizes = [16, 8], strides = [1, 1]} : vector<16x24xf32> to vector<16x8xf32>
    %152 = vector.extract_strided_slice %150 {offsets = [0, 8], sizes = [16, 8], strides = [1, 1]} : vector<16x24xf32> to vector<16x8xf32>
    %153 = vector.extract_strided_slice %150 {offsets = [0, 16], sizes = [16, 8], strides = [1, 1]} : vector<16x24xf32> to vector<16x8xf32>
    %154 = arith.truncf %151 : vector<16x8xf32> to vector<16x8xbf16>
    %155 = arith.truncf %152 : vector<16x8xf32> to vector<16x8xbf16>
    %cst_38 = arith.constant dense<0.000000e+00> : vector<16x16xf32>
    %156 = tpu.matmul %154, %155, %cst_38 {dimension_numbers = #tpu.dot_dimension_numbers<[1], [1], [0], [0], [0, 0, 1, 0], [], []>} : vector<16x8xbf16>, vector<16x8xbf16>, vector<16x16xf32> -> vector<16x16xf32>
    %cst_39 = arith.constant 0.353553385 : f32
    %157 = vector.broadcast %cst_39 : f32 to vector<16x16xf32>
    %158 = arith.mulf %156, %157 : vector<16x16xf32>
    %159 = vector.broadcast %149 : vector<1x16xf32> to vector<16x16xf32>
    %160 = arith.addf %158, %159 : vector<16x16xf32>
    %cst_40 = arith.constant dense<0xFF800000> : vector<16xf32>
    %161 = vector.multi_reduction <maximumf>, %160, %cst_40 [1] : vector<16x16xf32> to vector<16xf32>
    %162 = vector.shape_cast %161 : vector<16xf32> to vector<16x1xf32>
    %163 = vector.broadcast %162 : vector<16x1xf32> to vector<16x16xf32>
    %164 = arith.subf %160, %163 : vector<16x16xf32>
    %165 = math.exp %164 : vector<16x16xf32>
    %cst_41 = arith.constant dense<0.000000e+00> : vector<16xf32>
    %166 = vector.multi_reduction <add>, %165, %cst_41 [1] : vector<16x16xf32> to vector<16xf32>
    %167 = vector.shape_cast %166 : vector<16xf32> to vector<16x1xf32>
    %168 = tpu.reciprocal %167 {approx = true} : vector<16x1xf32> -> vector<16x1xf32>
    %169 = vector.broadcast %168 : vector<16x1xf32> to vector<16x16xf32>
    %170 = arith.mulf %165, %169 : vector<16x16xf32>
    %171 = arith.truncf %170 : vector<16x16xf32> to vector<16x16xbf16>
    %172 = arith.truncf %153 : vector<16x8xf32> to vector<16x8xbf16>
    %cst_42 = arith.constant dense<0.000000e+00> : vector<16x8xf32>
    %173 = tpu.matmul %171, %172, %cst_42 {dimension_numbers = #tpu.dot_dimension_numbers<[1], [0], [0], [1], [0, 0, 1, 1], [], []>} : vector<16x16xbf16>, vector<16x8xbf16>, vector<16x8xf32> -> vector<16x8xf32>
    %174 = vector.extract_strided_slice %148 {offsets = [0, 24], sizes = [16, 24], strides = [1, 1]} : vector<16x96xf32> to vector<16x24xf32>
    %175 = vector.extract_strided_slice %174 {offsets = [0, 0], sizes = [16, 8], strides = [1, 1]} : vector<16x24xf32> to vector<16x8xf32>
    %176 = vector.extract_strided_slice %174 {offsets = [0, 8], sizes = [16, 8], strides = [1, 1]} : vector<16x24xf32> to vector<16x8xf32>
    %177 = vector.extract_strided_slice %174 {offsets = [0, 16], sizes = [16, 8], strides = [1, 1]} : vector<16x24xf32> to vector<16x8xf32>
    %178 = arith.truncf %175 : vector<16x8xf32> to vector<16x8xbf16>
    %179 = arith.truncf %176 : vector<16x8xf32> to vector<16x8xbf16>
    %cst_43 = arith.constant dense<0.000000e+00> : vector<16x16xf32>
    %180 = tpu.matmul %178, %179, %cst_43 {dimension_numbers = #tpu.dot_dimension_numbers<[1], [1], [0], [0], [0, 0, 1, 0], [], []>} : vector<16x8xbf16>, vector<16x8xbf16>, vector<16x16xf32> -> vector<16x16xf32>
    %cst_44 = arith.constant 0.353553385 : f32
    %181 = vector.broadcast %cst_44 : f32 to vector<16x16xf32>
    %182 = arith.mulf %180, %181 : vector<16x16xf32>
    %183 = vector.broadcast %149 : vector<1x16xf32> to vector<16x16xf32>
    %184 = arith.addf %182, %183 : vector<16x16xf32>
    %cst_45 = arith.constant dense<0xFF800000> : vector<16xf32>
    %185 = vector.multi_reduction <maximumf>, %184, %cst_45 [1] : vector<16x16xf32> to vector<16xf32>
    %186 = vector.shape_cast %185 : vector<16xf32> to vector<16x1xf32>
    %187 = vector.broadcast %186 : vector<16x1xf32> to vector<16x16xf32>
    %188 = arith.subf %184, %187 : vector<16x16xf32>
    %189 = math.exp %188 : vector<16x16xf32>
    %cst_46 = arith.constant dense<0.000000e+00> : vector<16xf32>
    %190 = vector.multi_reduction <add>, %189, %cst_46 [1] : vector<16x16xf32> to vector<16xf32>
    %191 = vector.shape_cast %190 : vector<16xf32> to vector<16x1xf32>
    %192 = tpu.reciprocal %191 {approx = true} : vector<16x1xf32> -> vector<16x1xf32>
    %193 = vector.broadcast %192 : vector<16x1xf32> to vector<16x16xf32>
    %194 = arith.mulf %189, %193 : vector<16x16xf32>
    %195 = arith.truncf %194 : vector<16x16xf32> to vector<16x16xbf16>
    %196 = arith.truncf %177 : vector<16x8xf32> to vector<16x8xbf16>
    %cst_47 = arith.constant dense<0.000000e+00> : vector<16x8xf32>
    %197 = tpu.matmul %195, %196, %cst_47 {dimension_numbers = #tpu.dot_dimension_numbers<[1], [0], [0], [1], [0, 0, 1, 1], [], []>} : vector<16x16xbf16>, vector<16x8xbf16>, vector<16x8xf32> -> vector<16x8xf32>
    %198 = vector.extract_strided_slice %148 {offsets = [0, 48], sizes = [16, 24], strides = [1, 1]} : vector<16x96xf32> to vector<16x24xf32>
    %199 = vector.extract_strided_slice %198 {offsets = [0, 0], sizes = [16, 8], strides = [1, 1]} : vector<16x24xf32> to vector<16x8xf32>
    %200 = vector.extract_strided_slice %198 {offsets = [0, 8], sizes = [16, 8], strides = [1, 1]} : vector<16x24xf32> to vector<16x8xf32>
    %201 = vector.extract_strided_slice %198 {offsets = [0, 16], sizes = [16, 8], strides = [1, 1]} : vector<16x24xf32> to vector<16x8xf32>
    %202 = arith.truncf %199 : vector<16x8xf32> to vector<16x8xbf16>
    %203 = arith.truncf %200 : vector<16x8xf32> to vector<16x8xbf16>
    %cst_48 = arith.constant dense<0.000000e+00> : vector<16x16xf32>
    %204 = tpu.matmul %202, %203, %cst_48 {dimension_numbers = #tpu.dot_dimension_numbers<[1], [1], [0], [0], [0, 0, 1, 0], [], []>} : vector<16x8xbf16>, vector<16x8xbf16>, vector<16x16xf32> -> vector<16x16xf32>
    %cst_49 = arith.constant 0.353553385 : f32
    %205 = vector.broadcast %cst_49 : f32 to vector<16x16xf32>
    %206 = arith.mulf %204, %205 : vector<16x16xf32>
    %207 = vector.broadcast %149 : vector<1x16xf32> to vector<16x16xf32>
    %208 = arith.addf %206, %207 : vector<16x16xf32>
    %cst_50 = arith.constant dense<0xFF800000> : vector<16xf32>
    %209 = vector.multi_reduction <maximumf>, %208, %cst_50 [1] : vector<16x16xf32> to vector<16xf32>
    %210 = vector.shape_cast %209 : vector<16xf32> to vector<16x1xf32>
    %211 = vector.broadcast %210 : vector<16x1xf32> to vector<16x16xf32>
    %212 = arith.subf %208, %211 : vector<16x16xf32>
    %213 = math.exp %212 : vector<16x16xf32>
    %cst_51 = arith.constant dense<0.000000e+00> : vector<16xf32>
    %214 = vector.multi_reduction <add>, %213, %cst_51 [1] : vector<16x16xf32> to vector<16xf32>
    %215 = vector.shape_cast %214 : vector<16xf32> to vector<16x1xf32>
    %216 = tpu.reciprocal %215 {approx = true} : vector<16x1xf32> -> vector<16x1xf32>
    %217 = vector.broadcast %216 : vector<16x1xf32> to vector<16x16xf32>
    %218 = arith.mulf %213, %217 : vector<16x16xf32>
    %219 = arith.truncf %218 : vector<16x16xf32> to vector<16x16xbf16>
    %220 = arith.truncf %201 : vector<16x8xf32> to vector<16x8xbf16>
    %cst_52 = arith.constant dense<0.000000e+00> : vector<16x8xf32>
    %221 = tpu.matmul %219, %220, %cst_52 {dimension_numbers = #tpu.dot_dimension_numbers<[1], [0], [0], [1], [0, 0, 1, 1], [], []>} : vector<16x16xbf16>, vector<16x8xbf16>, vector<16x8xf32> -> vector<16x8xf32>
    %222 = vector.extract_strided_slice %148 {offsets = [0, 72], sizes = [16, 24], strides = [1, 1]} : vector<16x96xf32> to vector<16x24xf32>
    %223 = vector.extract_strided_slice %222 {offsets = [0, 0], sizes = [16, 8], strides = [1, 1]} : vector<16x24xf32> to vector<16x8xf32>
    %224 = vector.extract_strided_slice %222 {offsets = [0, 8], sizes = [16, 8], strides = [1, 1]} : vector<16x24xf32> to vector<16x8xf32>
    %225 = vector.extract_strided_slice %222 {offsets = [0, 16], sizes = [16, 8], strides = [1, 1]} : vector<16x24xf32> to vector<16x8xf32>
    %226 = arith.truncf %223 : vector<16x8xf32> to vector<16x8xbf16>
    %227 = arith.truncf %224 : vector<16x8xf32> to vector<16x8xbf16>
    %cst_53 = arith.constant dense<0.000000e+00> : vector<16x16xf32>
    %228 = tpu.matmul %226, %227, %cst_53 {dimension_numbers = #tpu.dot_dimension_numbers<[1], [1], [0], [0], [0, 0, 1, 0], [], []>} : vector<16x8xbf16>, vector<16x8xbf16>, vector<16x16xf32> -> vector<16x16xf32>
    %cst_54 = arith.constant 0.353553385 : f32
    %229 = vector.broadcast %cst_54 : f32 to vector<16x16xf32>
    %230 = arith.mulf %228, %229 : vector<16x16xf32>
    %231 = vector.broadcast %149 : vector<1x16xf32> to vector<16x16xf32>
    %232 = arith.addf %230, %231 : vector<16x16xf32>
    %cst_55 = arith.constant dense<0xFF800000> : vector<16xf32>
    %233 = vector.multi_reduction <maximumf>, %232, %cst_55 [1] : vector<16x16xf32> to vector<16xf32>
    %234 = vector.shape_cast %233 : vector<16xf32> to vector<16x1xf32>
    %235 = vector.broadcast %234 : vector<16x1xf32> to vector<16x16xf32>
    %236 = arith.subf %232, %235 : vector<16x16xf32>
    %237 = math.exp %236 : vector<16x16xf32>
    %cst_56 = arith.constant dense<0.000000e+00> : vector<16xf32>
    %238 = vector.multi_reduction <add>, %237, %cst_56 [1] : vector<16x16xf32> to vector<16xf32>
    %239 = vector.shape_cast %238 : vector<16xf32> to vector<16x1xf32>
    %240 = tpu.reciprocal %239 {approx = true} : vector<16x1xf32> -> vector<16x1xf32>
    %241 = vector.broadcast %240 : vector<16x1xf32> to vector<16x16xf32>
    %242 = arith.mulf %237, %241 : vector<16x16xf32>
    %243 = arith.truncf %242 : vector<16x16xf32> to vector<16x16xbf16>
    %244 = arith.truncf %225 : vector<16x8xf32> to vector<16x8xbf16>
    %cst_57 = arith.constant dense<0.000000e+00> : vector<16x8xf32>
    %245 = tpu.matmul %243, %244, %cst_57 {dimension_numbers = #tpu.dot_dimension_numbers<[1], [0], [0], [1], [0, 0, 1, 1], [], []>} : vector<16x16xbf16>, vector<16x8xbf16>, vector<16x8xf32> -> vector<16x8xf32>
    %246 = tpu.concatenate %173, %197, %221, %245 in 1 : vector<16x8xf32>, vector<16x8xf32>, vector<16x8xf32>, vector<16x8xf32> -> vector<16x32xf32>
    %247 = tpu.concatenate %147, %246 in 0 : vector<16x32xf32>, vector<16x32xf32> -> vector<32x32xf32>
    %248 = arith.truncf %247 : vector<32x32xf32> to vector<32x32xbf16>
    %cst_58 = arith.constant dense<0.000000e+00> : vector<32x32xf32>
    %249 = tpu.matmul %248, %18, %cst_58 {dimension_numbers = #tpu.dot_dimension_numbers<[1], [0], [0], [1], [0, 0, 1, 1], [], []>} : vector<32x32xbf16>, vector<32x32xbf16>, vector<32x32xf32> -> vector<32x32xf32>
    %250 = vector.broadcast %4 : vector<1x32xf32> to vector<32x32xf32>
    %251 = arith.addf %249, %250 : vector<32x32xf32>
    %252 = arith.addf %251, %44 : vector<32x32xf32>
    %cst_59 = arith.constant dense<0.000000e+00> : vector<32xf32>
    %253 = vector.multi_reduction <add>, %252, %cst_59 [1] : vector<32x32xf32> to vector<32xf32>
    %254 = vector.shape_cast %253 : vector<32xf32> to vector<32x1xf32>
    %cst_60 = arith.constant 3.200000e+01 : f32
    %255 = vector.broadcast %cst_60 : f32 to vector<32x1xf32>
    %256 = arith.divf %254, %255 : vector<32x1xf32>
    %257 = vector.broadcast %256 : vector<32x1xf32> to vector<32x32xf32>
    %258 = arith.subf %252, %257 : vector<32x32xf32>
    %259 = arith.mulf %258, %258 : vector<32x32xf32>
    %cst_61 = arith.constant dense<0.000000e+00> : vector<32xf32>
    %260 = vector.multi_reduction <add>, %259, %cst_61 [1] : vector<32x32xf32> to vector<32xf32>
    %261 = vector.shape_cast %260 : vector<32xf32> to vector<32x1xf32>
    %cst_62 = arith.constant 3.200000e+01 : f32
    %262 = vector.broadcast %cst_62 : f32 to vector<32x1xf32>
    %263 = arith.divf %261, %262 : vector<32x1xf32>
    %264 = vector.broadcast %256 : vector<32x1xf32> to vector<32x32xf32>
    %265 = arith.subf %252, %264 : vector<32x32xf32>
    %cst_63 = arith.constant 9.99999996E-13 : f32
    %266 = vector.broadcast %cst_63 : f32 to vector<32x1xf32>
    %267 = arith.addf %263, %266 : vector<32x1xf32>
    %268 = math.rsqrt %267 : vector<32x1xf32>
    %269 = vector.broadcast %268 : vector<32x1xf32> to vector<32x32xf32>
    %270 = arith.mulf %265, %269 : vector<32x32xf32>
    %271 = vector.broadcast %5 : vector<1x32xf32> to vector<32x32xf32>
    %272 = arith.mulf %270, %271 : vector<32x32xf32>
    %273 = vector.broadcast %6 : vector<1x32xf32> to vector<32x32xf32>
    %274 = arith.addf %272, %273 : vector<32x32xf32>
    %275 = arith.truncf %274 : vector<32x32xf32> to vector<32x32xbf16>
    %cst_64 = arith.constant dense<0.000000e+00> : vector<32x128xf32>
    %276 = tpu.matmul %275, %19, %cst_64 {dimension_numbers = #tpu.dot_dimension_numbers<[1], [0], [0], [1], [0, 0, 1, 1], [], []>} : vector<32x32xbf16>, vector<32x128xbf16>, vector<32x128xf32> -> vector<32x128xf32>
    %277 = vector.broadcast %7 : vector<1x128xf32> to vector<32x128xf32>
    %278 = arith.addf %276, %277 : vector<32x128xf32>
    %cst_65 = arith.constant 5.000000e-01 : f32
    %279 = vector.broadcast %cst_65 : f32 to vector<32x128xf32>
    %280 = arith.mulf %279, %278 : vector<32x128xf32>
    %cst_66 = arith.constant 4.471500e-02 : f32
    %281 = vector.broadcast %cst_66 : f32 to vector<32x128xf32>
    %282 = arith.mulf %281, %278 : vector<32x128xf32>
    %283 = arith.mulf %282, %278 : vector<32x128xf32>
    %284 = arith.mulf %283, %278 : vector<32x128xf32>
    %285 = arith.addf %278, %284 : vector<32x128xf32>
    %cst_67 = arith.constant 0.797884583 : f32
    %286 = vector.broadcast %cst_67 : f32 to vector<32x128xf32>
    %287 = arith.mulf %286, %285 : vector<32x128xf32>
    %288 = math.tanh %287 : vector<32x128xf32>
    %cst_68 = arith.constant 1.000000e+00 : f32
    %289 = vector.broadcast %cst_68 : f32 to vector<32x128xf32>
    %290 = arith.addf %289, %288 : vector<32x128xf32>
    %291 = arith.mulf %280, %290 : vector<32x128xf32>
    %292 = arith.truncf %291 : vector<32x128xf32> to vector<32x128xbf16>
    %cst_69 = arith.constant dense<0.000000e+00> : vector<32x32xf32>
    %293 = tpu.matmul %292, %20, %cst_69 {dimension_numbers = #tpu.dot_dimension_numbers<[1], [0], [0], [1], [0, 0, 1, 1], [], []>} : vector<32x128xbf16>, vector<128x32xbf16>, vector<32x32xf32> -> vector<32x32xf32>
    %294 = vector.broadcast %8 : vector<1x32xf32> to vector<32x32xf32>
    %295 = arith.addf %293, %294 : vector<32x32xf32>
    %296 = arith.addf %295, %274 : vector<32x32xf32>
    %cst_70 = arith.constant dense<0.000000e+00> : vector<32xf32>
    %297 = vector.multi_reduction <add>, %296, %cst_70 [1] : vector<32x32xf32> to vector<32xf32>
    %298 = vector.shape_cast %297 : vector<32xf32> to vector<32x1xf32>
    %cst_71 = arith.constant 3.200000e+01 : f32
    %299 = vector.broadcast %cst_71 : f32 to vector<32x1xf32>
    %300 = arith.divf %298, %299 : vector<32x1xf32>
    %301 = vector.broadcast %300 : vector<32x1xf32> to vector<32x32xf32>
    %302 = arith.subf %296, %301 : vector<32x32xf32>
    %303 = arith.mulf %302, %302 : vector<32x32xf32>
    %cst_72 = arith.constant dense<0.000000e+00> : vector<32xf32>
    %304 = vector.multi_reduction <add>, %303, %cst_72 [1] : vector<32x32xf32> to vector<32xf32>
    %305 = vector.shape_cast %304 : vector<32xf32> to vector<32x1xf32>
    %cst_73 = arith.constant 3.200000e+01 : f32
    %306 = vector.broadcast %cst_73 : f32 to vector<32x1xf32>
    %307 = arith.divf %305, %306 : vector<32x1xf32>
    %308 = vector.broadcast %300 : vector<32x1xf32> to vector<32x32xf32>
    %309 = arith.subf %296, %308 : vector<32x32xf32>
    %cst_74 = arith.constant 9.99999996E-13 : f32
    %310 = vector.broadcast %cst_74 : f32 to vector<32x1xf32>
    %311 = arith.addf %307, %310 : vector<32x1xf32>
    %312 = math.rsqrt %311 : vector<32x1xf32>
    %313 = vector.broadcast %312 : vector<32x1xf32> to vector<32x32xf32>
    %314 = arith.mulf %309, %313 : vector<32x32xf32>
    %315 = vector.broadcast %9 : vector<1x32xf32> to vector<32x32xf32>
    %316 = arith.mulf %314, %315 : vector<32x32xf32>
    %317 = vector.broadcast %10 : vector<1x32xf32> to vector<32x32xf32>
    %318 = arith.addf %316, %317 : vector<32x32xf32>
    %c0_75 = arith.constant 0 : index
    %c0_76 = arith.constant 0 : index
    %319 = vector.load %arg14[%c0_75, %c0_76] : memref<32x32xbf16, #tpu.memory_space<vmem>>, vector<32x32xbf16>
    %320 = arith.truncf %318 : vector<32x32xf32> to vector<32x32xbf16>
    %cst_77 = arith.constant dense<0.000000e+00> : vector<32x32xf32>
    %321 = tpu.matmul %320, %319, %cst_77 {dimension_numbers = #tpu.dot_dimension_numbers<[1], [0], [0], [1], [0, 0, 1, 1], [], []>} : vector<32x32xbf16>, vector<32x32xbf16>, vector<32x32xf32> -> vector<32x32xf32>
    %322 = vector.broadcast %13 : vector<1x32xf32> to vector<32x32xf32>
    %323 = arith.addf %321, %322 : vector<32x32xf32>
    %cst_78 = arith.constant 0.000000e+00 : f32
    %324 = vector.broadcast %cst_78 : f32 to vector<32x32xf32>
    %325 = arith.maximumf %323, %324 : vector<32x32xf32>
    %c0_79 = arith.constant 0 : index
    %c0_80 = arith.constant 0 : index
    %326 = vector.load %arg15[%c0_79, %c0_80] : memref<32x64xbf16, #tpu.memory_space<vmem>>, vector<32x64xbf16>
    %327 = arith.truncf %325 : vector<32x32xf32> to vector<32x32xbf16>
    %cst_81 = arith.constant dense<0.000000e+00> : vector<32x64xf32>
    %328 = tpu.matmul %327, %326, %cst_81 {dimension_numbers = #tpu.dot_dimension_numbers<[1], [0], [0], [1], [0, 0, 1, 1], [], []>} : vector<32x32xbf16>, vector<32x64xbf16>, vector<32x64xf32> -> vector<32x64xf32>
    %329 = vector.broadcast %14 : vector<1x64xf32> to vector<32x64xf32>
    %330 = arith.addf %328, %329 : vector<32x64xf32>
    %331 = vector.extract_strided_slice %330 {offsets = [0, 0], sizes = [32, 32], strides = [1, 1]} : vector<32x64xf32> to vector<32x32xf32>
    %332 = vector.extract_strided_slice %330 {offsets = [0, 32], sizes = [32, 32], strides = [1, 1]} : vector<32x64xf32> to vector<32x32xf32>
    %c0_82 = arith.constant 0 : index
    %c0_83 = arith.constant 0 : index
    %333 = vector.load %arg5[%c0_82, %c0_83] : memref<32x32xf32, #tpu.memory_space<vmem>>, vector<32x32xf32>
    %cst_84 = arith.constant 5.000000e-01 : f32
    %334 = vector.broadcast %cst_84 : f32 to vector<32x32xf32>
    %335 = arith.mulf %334, %332 : vector<32x32xf32>
    %336 = math.exp %335 : vector<32x32xf32>
    %337 = arith.mulf %333, %336 : vector<32x32xf32>
    %338 = arith.addf %331, %337 : vector<32x32xf32>
    %c0_85 = arith.constant 0 : index
    %c0_86 = arith.constant 0 : index
    %339 = vector.load %arg6[%c0_85, %c0_86] : memref<32x1xf32, #tpu.memory_space<vmem>>, vector<32x1xf32>
    %340 = math.exp %332 : vector<32x32xf32>
    %cst_87 = arith.constant 1.000000e+00 : f32
    %341 = vector.broadcast %cst_87 : f32 to vector<32x32xf32>
    %342 = arith.subf %331, %341 : vector<32x32xf32>
    %343 = arith.mulf %342, %342 : vector<32x32xf32>
    %344 = arith.addf %340, %343 : vector<32x32xf32>
    %cst_88 = arith.constant -1.09861231 : f32
    %345 = vector.broadcast %cst_88 : f32 to vector<32x32xf32>
    %346 = arith.subf %345, %332 : vector<32x32xf32>
    %cst_89 = arith.constant 3.000000e+00 : f32
    %347 = vector.broadcast %cst_89 : f32 to vector<32x32xf32>
    %348 = arith.mulf %344, %347 : vector<32x32xf32>
    %349 = arith.addf %346, %348 : vector<32x32xf32>
    %cst_90 = arith.constant 1.000000e+00 : f32
    %350 = vector.broadcast %cst_90 : f32 to vector<32x32xf32>
    %351 = arith.subf %349, %350 : vector<32x32xf32>
    %cst_91 = arith.constant dense<0.000000e+00> : vector<32xf32>
    %352 = vector.multi_reduction <add>, %351, %cst_91 [1] : vector<32x32xf32> to vector<32xf32>
    %353 = vector.shape_cast %352 : vector<32xf32> to vector<32x1xf32>
    %cst_92 = arith.constant 5.000000e-01 : f32
    %354 = vector.broadcast %cst_92 : f32 to vector<32x1xf32>
    %355 = arith.mulf %354, %353 : vector<32x1xf32>
    %356 = arith.mulf %355, %339 : vector<32x1xf32>
    %357 = vector.shape_cast %356 : vector<32x1xf32> to vector<1x32x1xf32>
    %cst_93 = arith.constant dense<0.000000e+00> : vector<1xf32>
    %358 = vector.multi_reduction <add>, %357, %cst_93 [1, 2] : vector<1x32x1xf32> to vector<1xf32>
    %359 = vector.shape_cast %358 : vector<1xf32> to vector<1x1x1xf32>
    %360 = vector.extract %359[0, 0, 0] : f32 from vector<1x1x1xf32>
    %361 = vector.shape_cast %339 : vector<32x1xf32> to vector<1x32x1xf32>
    %cst_94 = arith.constant dense<0.000000e+00> : vector<1xf32>
    %362 = vector.multi_reduction <add>, %361, %cst_94 [1, 2] : vector<1x32x1xf32> to vector<1xf32>
    %363 = vector.shape_cast %362 : vector<1xf32> to vector<1x1x1xf32>
    %364 = vector.extract %363[0, 0, 0] : f32 from vector<1x1x1xf32>
    %365 = arith.divf %360, %364 : f32
    %c0_95 = arith.constant 0 : index
    %c0_96 = arith.constant 0 : index
    %366 = vector.load %arg2[%c0_95, %c0_96] : memref<32x32xf32, #tpu.memory_space<vmem>>, vector<32x32xf32>
    %c0_97 = arith.constant 0 : index
    %c0_98 = arith.constant 0 : index
    %367 = vector.load %arg3[%c0_97, %c0_98] : memref<32x32xf32, #tpu.memory_space<vmem>>, vector<32x32xf32>
    %368 = arith.mulf %366, %338 : vector<32x32xf32>
    %369 = arith.addf %368, %367 : vector<32x32xf32>
    %370 = arith.addf %366, %367 : vector<32x32xf32>
    %371 = tpu.concatenate %369, %370 in 0 : vector<32x32xf32>, vector<32x32xf32> -> vector<64x32xf32>
    %cst_99 = arith.constant dense<0.000000e+00> : vector<64xf32>
    %372 = vector.multi_reduction <add>, %371, %cst_99 [1] : vector<64x32xf32> to vector<64xf32>
    %373 = vector.shape_cast %372 : vector<64xf32> to vector<64x1xf32>
    %cst_100 = arith.constant 3.200000e+01 : f32
    %374 = vector.broadcast %cst_100 : f32 to vector<64x1xf32>
    %375 = arith.divf %373, %374 : vector<64x1xf32>
    %376 = vector.broadcast %375 : vector<64x1xf32> to vector<64x32xf32>
    %377 = arith.subf %371, %376 : vector<64x32xf32>
    %378 = arith.mulf %377, %377 : vector<64x32xf32>
    %cst_101 = arith.constant dense<0.000000e+00> : vector<64xf32>
    %379 = vector.multi_reduction <add>, %378, %cst_101 [1] : vector<64x32xf32> to vector<64xf32>
    %380 = vector.shape_cast %379 : vector<64xf32> to vector<64x1xf32>
    %cst_102 = arith.constant 3.200000e+01 : f32
    %381 = vector.broadcast %cst_102 : f32 to vector<64x1xf32>
    %382 = arith.divf %380, %381 : vector<64x1xf32>
    %383 = vector.broadcast %375 : vector<64x1xf32> to vector<64x32xf32>
    %384 = arith.subf %371, %383 : vector<64x32xf32>
    %cst_103 = arith.constant 9.99999996E-13 : f32
    %385 = vector.broadcast %cst_103 : f32 to vector<64x1xf32>
    %386 = arith.addf %382, %385 : vector<64x1xf32>
    %387 = math.rsqrt %386 : vector<64x1xf32>
    %388 = vector.broadcast %387 : vector<64x1xf32> to vector<64x32xf32>
    %389 = arith.mulf %384, %388 : vector<64x32xf32>
    %390 = vector.broadcast %1 : vector<1x32xf32> to vector<64x32xf32>
    %391 = arith.mulf %389, %390 : vector<64x32xf32>
    %392 = vector.broadcast %2 : vector<1x32xf32> to vector<64x32xf32>
    %393 = arith.addf %391, %392 : vector<64x32xf32>
    %394 = arith.truncf %393 : vector<64x32xf32> to vector<64x32xbf16>
    %cst_104 = arith.constant dense<0.000000e+00> : vector<64x96xf32>
    %395 = tpu.matmul %394, %17, %cst_104 {dimension_numbers = #tpu.dot_dimension_numbers<[1], [0], [0], [1], [0, 0, 1, 1], [], []>} : vector<64x32xbf16>, vector<32x96xbf16>, vector<64x96xf32> -> vector<64x96xf32>
    %396 = vector.broadcast %3 : vector<1x96xf32> to vector<64x96xf32>
    %397 = arith.addf %395, %396 : vector<64x96xf32>
    %398 = vector.extract_strided_slice %397 {offsets = [0, 0], sizes = [16, 96], strides = [1, 1]} : vector<64x96xf32> to vector<16x96xf32>
    %399 = vector.extract_strided_slice %21 {offsets = [0, 0], sizes = [1, 16], strides = [1, 1]} : vector<2x16xf32> to vector<1x16xf32>
    %400 = vector.extract_strided_slice %398 {offsets = [0, 0], sizes = [16, 24], strides = [1, 1]} : vector<16x96xf32> to vector<16x24xf32>
    %401 = vector.extract_strided_slice %400 {offsets = [0, 0], sizes = [16, 8], strides = [1, 1]} : vector<16x24xf32> to vector<16x8xf32>
    %402 = vector.extract_strided_slice %400 {offsets = [0, 8], sizes = [16, 8], strides = [1, 1]} : vector<16x24xf32> to vector<16x8xf32>
    %403 = vector.extract_strided_slice %400 {offsets = [0, 16], sizes = [16, 8], strides = [1, 1]} : vector<16x24xf32> to vector<16x8xf32>
    %404 = arith.truncf %401 : vector<16x8xf32> to vector<16x8xbf16>
    %405 = arith.truncf %402 : vector<16x8xf32> to vector<16x8xbf16>
    %cst_105 = arith.constant dense<0.000000e+00> : vector<16x16xf32>
    %406 = tpu.matmul %404, %405, %cst_105 {dimension_numbers = #tpu.dot_dimension_numbers<[1], [1], [0], [0], [0, 0, 1, 0], [], []>} : vector<16x8xbf16>, vector<16x8xbf16>, vector<16x16xf32> -> vector<16x16xf32>
    %cst_106 = arith.constant 0.353553385 : f32
    %407 = vector.broadcast %cst_106 : f32 to vector<16x16xf32>
    %408 = arith.mulf %406, %407 : vector<16x16xf32>
    %409 = vector.broadcast %399 : vector<1x16xf32> to vector<16x16xf32>
    %410 = arith.addf %408, %409 : vector<16x16xf32>
    %cst_107 = arith.constant dense<0xFF800000> : vector<16xf32>
    %411 = vector.multi_reduction <maximumf>, %410, %cst_107 [1] : vector<16x16xf32> to vector<16xf32>
    %412 = vector.shape_cast %411 : vector<16xf32> to vector<16x1xf32>
    %413 = vector.broadcast %412 : vector<16x1xf32> to vector<16x16xf32>
    %414 = arith.subf %410, %413 : vector<16x16xf32>
    %415 = math.exp %414 : vector<16x16xf32>
    %cst_108 = arith.constant dense<0.000000e+00> : vector<16xf32>
    %416 = vector.multi_reduction <add>, %415, %cst_108 [1] : vector<16x16xf32> to vector<16xf32>
    %417 = vector.shape_cast %416 : vector<16xf32> to vector<16x1xf32>
    %418 = tpu.reciprocal %417 {approx = true} : vector<16x1xf32> -> vector<16x1xf32>
    %419 = vector.broadcast %418 : vector<16x1xf32> to vector<16x16xf32>
    %420 = arith.mulf %415, %419 : vector<16x16xf32>
    %421 = arith.truncf %420 : vector<16x16xf32> to vector<16x16xbf16>
    %422 = arith.truncf %403 : vector<16x8xf32> to vector<16x8xbf16>
    %cst_109 = arith.constant dense<0.000000e+00> : vector<16x8xf32>
    %423 = tpu.matmul %421, %422, %cst_109 {dimension_numbers = #tpu.dot_dimension_numbers<[1], [0], [0], [1], [0, 0, 1, 1], [], []>} : vector<16x16xbf16>, vector<16x8xbf16>, vector<16x8xf32> -> vector<16x8xf32>
    %424 = vector.extract_strided_slice %398 {offsets = [0, 24], sizes = [16, 24], strides = [1, 1]} : vector<16x96xf32> to vector<16x24xf32>
    %425 = vector.extract_strided_slice %424 {offsets = [0, 0], sizes = [16, 8], strides = [1, 1]} : vector<16x24xf32> to vector<16x8xf32>
    %426 = vector.extract_strided_slice %424 {offsets = [0, 8], sizes = [16, 8], strides = [1, 1]} : vector<16x24xf32> to vector<16x8xf32>
    %427 = vector.extract_strided_slice %424 {offsets = [0, 16], sizes = [16, 8], strides = [1, 1]} : vector<16x24xf32> to vector<16x8xf32>
    %428 = arith.truncf %425 : vector<16x8xf32> to vector<16x8xbf16>
    %429 = arith.truncf %426 : vector<16x8xf32> to vector<16x8xbf16>
    %cst_110 = arith.constant dense<0.000000e+00> : vector<16x16xf32>
    %430 = tpu.matmul %428, %429, %cst_110 {dimension_numbers = #tpu.dot_dimension_numbers<[1], [1], [0], [0], [0, 0, 1, 0], [], []>} : vector<16x8xbf16>, vector<16x8xbf16>, vector<16x16xf32> -> vector<16x16xf32>
    %cst_111 = arith.constant 0.353553385 : f32
    %431 = vector.broadcast %cst_111 : f32 to vector<16x16xf32>
    %432 = arith.mulf %430, %431 : vector<16x16xf32>
    %433 = vector.broadcast %399 : vector<1x16xf32> to vector<16x16xf32>
    %434 = arith.addf %432, %433 : vector<16x16xf32>
    %cst_112 = arith.constant dense<0xFF800000> : vector<16xf32>
    %435 = vector.multi_reduction <maximumf>, %434, %cst_112 [1] : vector<16x16xf32> to vector<16xf32>
    %436 = vector.shape_cast %435 : vector<16xf32> to vector<16x1xf32>
    %437 = vector.broadcast %436 : vector<16x1xf32> to vector<16x16xf32>
    %438 = arith.subf %434, %437 : vector<16x16xf32>
    %439 = math.exp %438 : vector<16x16xf32>
    %cst_113 = arith.constant dense<0.000000e+00> : vector<16xf32>
    %440 = vector.multi_reduction <add>, %439, %cst_113 [1] : vector<16x16xf32> to vector<16xf32>
    %441 = vector.shape_cast %440 : vector<16xf32> to vector<16x1xf32>
    %442 = tpu.reciprocal %441 {approx = true} : vector<16x1xf32> -> vector<16x1xf32>
    %443 = vector.broadcast %442 : vector<16x1xf32> to vector<16x16xf32>
    %444 = arith.mulf %439, %443 : vector<16x16xf32>
    %445 = arith.truncf %444 : vector<16x16xf32> to vector<16x16xbf16>
    %446 = arith.truncf %427 : vector<16x8xf32> to vector<16x8xbf16>
    %cst_114 = arith.constant dense<0.000000e+00> : vector<16x8xf32>
    %447 = tpu.matmul %445, %446, %cst_114 {dimension_numbers = #tpu.dot_dimension_numbers<[1], [0], [0], [1], [0, 0, 1, 1], [], []>} : vector<16x16xbf16>, vector<16x8xbf16>, vector<16x8xf32> -> vector<16x8xf32>
    %448 = vector.extract_strided_slice %398 {offsets = [0, 48], sizes = [16, 24], strides = [1, 1]} : vector<16x96xf32> to vector<16x24xf32>
    %449 = vector.extract_strided_slice %448 {offsets = [0, 0], sizes = [16, 8], strides = [1, 1]} : vector<16x24xf32> to vector<16x8xf32>
    %450 = vector.extract_strided_slice %448 {offsets = [0, 8], sizes = [16, 8], strides = [1, 1]} : vector<16x24xf32> to vector<16x8xf32>
    %451 = vector.extract_strided_slice %448 {offsets = [0, 16], sizes = [16, 8], strides = [1, 1]} : vector<16x24xf32> to vector<16x8xf32>
    %452 = arith.truncf %449 : vector<16x8xf32> to vector<16x8xbf16>
    %453 = arith.truncf %450 : vector<16x8xf32> to vector<16x8xbf16>
    %cst_115 = arith.constant dense<0.000000e+00> : vector<16x16xf32>
    %454 = tpu.matmul %452, %453, %cst_115 {dimension_numbers = #tpu.dot_dimension_numbers<[1], [1], [0], [0], [0, 0, 1, 0], [], []>} : vector<16x8xbf16>, vector<16x8xbf16>, vector<16x16xf32> -> vector<16x16xf32>
    %cst_116 = arith.constant 0.353553385 : f32
    %455 = vector.broadcast %cst_116 : f32 to vector<16x16xf32>
    %456 = arith.mulf %454, %455 : vector<16x16xf32>
    %457 = vector.broadcast %399 : vector<1x16xf32> to vector<16x16xf32>
    %458 = arith.addf %456, %457 : vector<16x16xf32>
    %cst_117 = arith.constant dense<0xFF800000> : vector<16xf32>
    %459 = vector.multi_reduction <maximumf>, %458, %cst_117 [1] : vector<16x16xf32> to vector<16xf32>
    %460 = vector.shape_cast %459 : vector<16xf32> to vector<16x1xf32>
    %461 = vector.broadcast %460 : vector<16x1xf32> to vector<16x16xf32>
    %462 = arith.subf %458, %461 : vector<16x16xf32>
    %463 = math.exp %462 : vector<16x16xf32>
    %cst_118 = arith.constant dense<0.000000e+00> : vector<16xf32>
    %464 = vector.multi_reduction <add>, %463, %cst_118 [1] : vector<16x16xf32> to vector<16xf32>
    %465 = vector.shape_cast %464 : vector<16xf32> to vector<16x1xf32>
    %466 = tpu.reciprocal %465 {approx = true} : vector<16x1xf32> -> vector<16x1xf32>
    %467 = vector.broadcast %466 : vector<16x1xf32> to vector<16x16xf32>
    %468 = arith.mulf %463, %467 : vector<16x16xf32>
    %469 = arith.truncf %468 : vector<16x16xf32> to vector<16x16xbf16>
    %470 = arith.truncf %451 : vector<16x8xf32> to vector<16x8xbf16>
    %cst_119 = arith.constant dense<0.000000e+00> : vector<16x8xf32>
    %471 = tpu.matmul %469, %470, %cst_119 {dimension_numbers = #tpu.dot_dimension_numbers<[1], [0], [0], [1], [0, 0, 1, 1], [], []>} : vector<16x16xbf16>, vector<16x8xbf16>, vector<16x8xf32> -> vector<16x8xf32>
    %472 = vector.extract_strided_slice %398 {offsets = [0, 72], sizes = [16, 24], strides = [1, 1]} : vector<16x96xf32> to vector<16x24xf32>
    %473 = vector.extract_strided_slice %472 {offsets = [0, 0], sizes = [16, 8], strides = [1, 1]} : vector<16x24xf32> to vector<16x8xf32>
    %474 = vector.extract_strided_slice %472 {offsets = [0, 8], sizes = [16, 8], strides = [1, 1]} : vector<16x24xf32> to vector<16x8xf32>
    %475 = vector.extract_strided_slice %472 {offsets = [0, 16], sizes = [16, 8], strides = [1, 1]} : vector<16x24xf32> to vector<16x8xf32>
    %476 = arith.truncf %473 : vector<16x8xf32> to vector<16x8xbf16>
    %477 = arith.truncf %474 : vector<16x8xf32> to vector<16x8xbf16>
    %cst_120 = arith.constant dense<0.000000e+00> : vector<16x16xf32>
    %478 = tpu.matmul %476, %477, %cst_120 {dimension_numbers = #tpu.dot_dimension_numbers<[1], [1], [0], [0], [0, 0, 1, 0], [], []>} : vector<16x8xbf16>, vector<16x8xbf16>, vector<16x16xf32> -> vector<16x16xf32>
    %cst_121 = arith.constant 0.353553385 : f32
    %479 = vector.broadcast %cst_121 : f32 to vector<16x16xf32>
    %480 = arith.mulf %478, %479 : vector<16x16xf32>
    %481 = vector.broadcast %399 : vector<1x16xf32> to vector<16x16xf32>
    %482 = arith.addf %480, %481 : vector<16x16xf32>
    %cst_122 = arith.constant dense<0xFF800000> : vector<16xf32>
    %483 = vector.multi_reduction <maximumf>, %482, %cst_122 [1] : vector<16x16xf32> to vector<16xf32>
    %484 = vector.shape_cast %483 : vector<16xf32> to vector<16x1xf32>
    %485 = vector.broadcast %484 : vector<16x1xf32> to vector<16x16xf32>
    %486 = arith.subf %482, %485 : vector<16x16xf32>
    %487 = math.exp %486 : vector<16x16xf32>
    %cst_123 = arith.constant dense<0.000000e+00> : vector<16xf32>
    %488 = vector.multi_reduction <add>, %487, %cst_123 [1] : vector<16x16xf32> to vector<16xf32>
    %489 = vector.shape_cast %488 : vector<16xf32> to vector<16x1xf32>
    %490 = tpu.reciprocal %489 {approx = true} : vector<16x1xf32> -> vector<16x1xf32>
    %491 = vector.broadcast %490 : vector<16x1xf32> to vector<16x16xf32>
    %492 = arith.mulf %487, %491 : vector<16x16xf32>
    %493 = arith.truncf %492 : vector<16x16xf32> to vector<16x16xbf16>
    %494 = arith.truncf %475 : vector<16x8xf32> to vector<16x8xbf16>
    %cst_124 = arith.constant dense<0.000000e+00> : vector<16x8xf32>
    %495 = tpu.matmul %493, %494, %cst_124 {dimension_numbers = #tpu.dot_dimension_numbers<[1], [0], [0], [1], [0, 0, 1, 1], [], []>} : vector<16x16xbf16>, vector<16x8xbf16>, vector<16x8xf32> -> vector<16x8xf32>
    %496 = tpu.concatenate %423, %447, %471, %495 in 1 : vector<16x8xf32>, vector<16x8xf32>, vector<16x8xf32>, vector<16x8xf32> -> vector<16x32xf32>
    %497 = vector.extract_strided_slice %397 {offsets = [16, 0], sizes = [16, 96], strides = [1, 1]} : vector<64x96xf32> to vector<16x96xf32>
    %498 = vector.extract_strided_slice %21 {offsets = [1, 0], sizes = [1, 16], strides = [1, 1]} : vector<2x16xf32> to vector<1x16xf32>
    %499 = vector.extract_strided_slice %497 {offsets = [0, 0], sizes = [16, 24], strides = [1, 1]} : vector<16x96xf32> to vector<16x24xf32>
    %500 = vector.extract_strided_slice %499 {offsets = [0, 0], sizes = [16, 8], strides = [1, 1]} : vector<16x24xf32> to vector<16x8xf32>
    %501 = vector.extract_strided_slice %499 {offsets = [0, 8], sizes = [16, 8], strides = [1, 1]} : vector<16x24xf32> to vector<16x8xf32>
    %502 = vector.extract_strided_slice %499 {offsets = [0, 16], sizes = [16, 8], strides = [1, 1]} : vector<16x24xf32> to vector<16x8xf32>
    %503 = arith.truncf %500 : vector<16x8xf32> to vector<16x8xbf16>
    %504 = arith.truncf %501 : vector<16x8xf32> to vector<16x8xbf16>
    %cst_125 = arith.constant dense<0.000000e+00> : vector<16x16xf32>
    %505 = tpu.matmul %503, %504, %cst_125 {dimension_numbers = #tpu.dot_dimension_numbers<[1], [1], [0], [0], [0, 0, 1, 0], [], []>} : vector<16x8xbf16>, vector<16x8xbf16>, vector<16x16xf32> -> vector<16x16xf32>
    %cst_126 = arith.constant 0.353553385 : f32
    %506 = vector.broadcast %cst_126 : f32 to vector<16x16xf32>
    %507 = arith.mulf %505, %506 : vector<16x16xf32>
    %508 = vector.broadcast %498 : vector<1x16xf32> to vector<16x16xf32>
    %509 = arith.addf %507, %508 : vector<16x16xf32>
    %cst_127 = arith.constant dense<0xFF800000> : vector<16xf32>
    %510 = vector.multi_reduction <maximumf>, %509, %cst_127 [1] : vector<16x16xf32> to vector<16xf32>
    %511 = vector.shape_cast %510 : vector<16xf32> to vector<16x1xf32>
    %512 = vector.broadcast %511 : vector<16x1xf32> to vector<16x16xf32>
    %513 = arith.subf %509, %512 : vector<16x16xf32>
    %514 = math.exp %513 : vector<16x16xf32>
    %cst_128 = arith.constant dense<0.000000e+00> : vector<16xf32>
    %515 = vector.multi_reduction <add>, %514, %cst_128 [1] : vector<16x16xf32> to vector<16xf32>
    %516 = vector.shape_cast %515 : vector<16xf32> to vector<16x1xf32>
    %517 = tpu.reciprocal %516 {approx = true} : vector<16x1xf32> -> vector<16x1xf32>
    %518 = vector.broadcast %517 : vector<16x1xf32> to vector<16x16xf32>
    %519 = arith.mulf %514, %518 : vector<16x16xf32>
    %520 = arith.truncf %519 : vector<16x16xf32> to vector<16x16xbf16>
    %521 = arith.truncf %502 : vector<16x8xf32> to vector<16x8xbf16>
    %cst_129 = arith.constant dense<0.000000e+00> : vector<16x8xf32>
    %522 = tpu.matmul %520, %521, %cst_129 {dimension_numbers = #tpu.dot_dimension_numbers<[1], [0], [0], [1], [0, 0, 1, 1], [], []>} : vector<16x16xbf16>, vector<16x8xbf16>, vector<16x8xf32> -> vector<16x8xf32>
    %523 = vector.extract_strided_slice %497 {offsets = [0, 24], sizes = [16, 24], strides = [1, 1]} : vector<16x96xf32> to vector<16x24xf32>
    %524 = vector.extract_strided_slice %523 {offsets = [0, 0], sizes = [16, 8], strides = [1, 1]} : vector<16x24xf32> to vector<16x8xf32>
    %525 = vector.extract_strided_slice %523 {offsets = [0, 8], sizes = [16, 8], strides = [1, 1]} : vector<16x24xf32> to vector<16x8xf32>
    %526 = vector.extract_strided_slice %523 {offsets = [0, 16], sizes = [16, 8], strides = [1, 1]} : vector<16x24xf32> to vector<16x8xf32>
    %527 = arith.truncf %524 : vector<16x8xf32> to vector<16x8xbf16>
    %528 = arith.truncf %525 : vector<16x8xf32> to vector<16x8xbf16>
    %cst_130 = arith.constant dense<0.000000e+00> : vector<16x16xf32>
    %529 = tpu.matmul %527, %528, %cst_130 {dimension_numbers = #tpu.dot_dimension_numbers<[1], [1], [0], [0], [0, 0, 1, 0], [], []>} : vector<16x8xbf16>, vector<16x8xbf16>, vector<16x16xf32> -> vector<16x16xf32>
    %cst_131 = arith.constant 0.353553385 : f32
    %530 = vector.broadcast %cst_131 : f32 to vector<16x16xf32>
    %531 = arith.mulf %529, %530 : vector<16x16xf32>
    %532 = vector.broadcast %498 : vector<1x16xf32> to vector<16x16xf32>
    %533 = arith.addf %531, %532 : vector<16x16xf32>
    %cst_132 = arith.constant dense<0xFF800000> : vector<16xf32>
    %534 = vector.multi_reduction <maximumf>, %533, %cst_132 [1] : vector<16x16xf32> to vector<16xf32>
    %535 = vector.shape_cast %534 : vector<16xf32> to vector<16x1xf32>
    %536 = vector.broadcast %535 : vector<16x1xf32> to vector<16x16xf32>
    %537 = arith.subf %533, %536 : vector<16x16xf32>
    %538 = math.exp %537 : vector<16x16xf32>
    %cst_133 = arith.constant dense<0.000000e+00> : vector<16xf32>
    %539 = vector.multi_reduction <add>, %538, %cst_133 [1] : vector<16x16xf32> to vector<16xf32>
    %540 = vector.shape_cast %539 : vector<16xf32> to vector<16x1xf32>
    %541 = tpu.reciprocal %540 {approx = true} : vector<16x1xf32> -> vector<16x1xf32>
    %542 = vector.broadcast %541 : vector<16x1xf32> to vector<16x16xf32>
    %543 = arith.mulf %538, %542 : vector<16x16xf32>
    %544 = arith.truncf %543 : vector<16x16xf32> to vector<16x16xbf16>
    %545 = arith.truncf %526 : vector<16x8xf32> to vector<16x8xbf16>
    %cst_134 = arith.constant dense<0.000000e+00> : vector<16x8xf32>
    %546 = tpu.matmul %544, %545, %cst_134 {dimension_numbers = #tpu.dot_dimension_numbers<[1], [0], [0], [1], [0, 0, 1, 1], [], []>} : vector<16x16xbf16>, vector<16x8xbf16>, vector<16x8xf32> -> vector<16x8xf32>
    %547 = vector.extract_strided_slice %497 {offsets = [0, 48], sizes = [16, 24], strides = [1, 1]} : vector<16x96xf32> to vector<16x24xf32>
    %548 = vector.extract_strided_slice %547 {offsets = [0, 0], sizes = [16, 8], strides = [1, 1]} : vector<16x24xf32> to vector<16x8xf32>
    %549 = vector.extract_strided_slice %547 {offsets = [0, 8], sizes = [16, 8], strides = [1, 1]} : vector<16x24xf32> to vector<16x8xf32>
    %550 = vector.extract_strided_slice %547 {offsets = [0, 16], sizes = [16, 8], strides = [1, 1]} : vector<16x24xf32> to vector<16x8xf32>
    %551 = arith.truncf %548 : vector<16x8xf32> to vector<16x8xbf16>
    %552 = arith.truncf %549 : vector<16x8xf32> to vector<16x8xbf16>
    %cst_135 = arith.constant dense<0.000000e+00> : vector<16x16xf32>
    %553 = tpu.matmul %551, %552, %cst_135 {dimension_numbers = #tpu.dot_dimension_numbers<[1], [1], [0], [0], [0, 0, 1, 0], [], []>} : vector<16x8xbf16>, vector<16x8xbf16>, vector<16x16xf32> -> vector<16x16xf32>
    %cst_136 = arith.constant 0.353553385 : f32
    %554 = vector.broadcast %cst_136 : f32 to vector<16x16xf32>
    %555 = arith.mulf %553, %554 : vector<16x16xf32>
    %556 = vector.broadcast %498 : vector<1x16xf32> to vector<16x16xf32>
    %557 = arith.addf %555, %556 : vector<16x16xf32>
    %cst_137 = arith.constant dense<0xFF800000> : vector<16xf32>
    %558 = vector.multi_reduction <maximumf>, %557, %cst_137 [1] : vector<16x16xf32> to vector<16xf32>
    %559 = vector.shape_cast %558 : vector<16xf32> to vector<16x1xf32>
    %560 = vector.broadcast %559 : vector<16x1xf32> to vector<16x16xf32>
    %561 = arith.subf %557, %560 : vector<16x16xf32>
    %562 = math.exp %561 : vector<16x16xf32>
    %cst_138 = arith.constant dense<0.000000e+00> : vector<16xf32>
    %563 = vector.multi_reduction <add>, %562, %cst_138 [1] : vector<16x16xf32> to vector<16xf32>
    %564 = vector.shape_cast %563 : vector<16xf32> to vector<16x1xf32>
    %565 = tpu.reciprocal %564 {approx = true} : vector<16x1xf32> -> vector<16x1xf32>
    %566 = vector.broadcast %565 : vector<16x1xf32> to vector<16x16xf32>
    %567 = arith.mulf %562, %566 : vector<16x16xf32>
    %568 = arith.truncf %567 : vector<16x16xf32> to vector<16x16xbf16>
    %569 = arith.truncf %550 : vector<16x8xf32> to vector<16x8xbf16>
    %cst_139 = arith.constant dense<0.000000e+00> : vector<16x8xf32>
    %570 = tpu.matmul %568, %569, %cst_139 {dimension_numbers = #tpu.dot_dimension_numbers<[1], [0], [0], [1], [0, 0, 1, 1], [], []>} : vector<16x16xbf16>, vector<16x8xbf16>, vector<16x8xf32> -> vector<16x8xf32>
    %571 = vector.extract_strided_slice %497 {offsets = [0, 72], sizes = [16, 24], strides = [1, 1]} : vector<16x96xf32> to vector<16x24xf32>
    %572 = vector.extract_strided_slice %571 {offsets = [0, 0], sizes = [16, 8], strides = [1, 1]} : vector<16x24xf32> to vector<16x8xf32>
    %573 = vector.extract_strided_slice %571 {offsets = [0, 8], sizes = [16, 8], strides = [1, 1]} : vector<16x24xf32> to vector<16x8xf32>
    %574 = vector.extract_strided_slice %571 {offsets = [0, 16], sizes = [16, 8], strides = [1, 1]} : vector<16x24xf32> to vector<16x8xf32>
    %575 = arith.truncf %572 : vector<16x8xf32> to vector<16x8xbf16>
    %576 = arith.truncf %573 : vector<16x8xf32> to vector<16x8xbf16>
    %cst_140 = arith.constant dense<0.000000e+00> : vector<16x16xf32>
    %577 = tpu.matmul %575, %576, %cst_140 {dimension_numbers = #tpu.dot_dimension_numbers<[1], [1], [0], [0], [0, 0, 1, 0], [], []>} : vector<16x8xbf16>, vector<16x8xbf16>, vector<16x16xf32> -> vector<16x16xf32>
    %cst_141 = arith.constant 0.353553385 : f32
    %578 = vector.broadcast %cst_141 : f32 to vector<16x16xf32>
    %579 = arith.mulf %577, %578 : vector<16x16xf32>
    %580 = vector.broadcast %498 : vector<1x16xf32> to vector<16x16xf32>
    %581 = arith.addf %579, %580 : vector<16x16xf32>
    %cst_142 = arith.constant dense<0xFF800000> : vector<16xf32>
    %582 = vector.multi_reduction <maximumf>, %581, %cst_142 [1] : vector<16x16xf32> to vector<16xf32>
    %583 = vector.shape_cast %582 : vector<16xf32> to vector<16x1xf32>
    %584 = vector.broadcast %583 : vector<16x1xf32> to vector<16x16xf32>
    %585 = arith.subf %581, %584 : vector<16x16xf32>
    %586 = math.exp %585 : vector<16x16xf32>
    %cst_143 = arith.constant dense<0.000000e+00> : vector<16xf32>
    %587 = vector.multi_reduction <add>, %586, %cst_143 [1] : vector<16x16xf32> to vector<16xf32>
    %588 = vector.shape_cast %587 : vector<16xf32> to vector<16x1xf32>
    %589 = tpu.reciprocal %588 {approx = true} : vector<16x1xf32> -> vector<16x1xf32>
    %590 = vector.broadcast %589 : vector<16x1xf32> to vector<16x16xf32>
    %591 = arith.mulf %586, %590 : vector<16x16xf32>
    %592 = arith.truncf %591 : vector<16x16xf32> to vector<16x16xbf16>
    %593 = arith.truncf %574 : vector<16x8xf32> to vector<16x8xbf16>
    %cst_144 = arith.constant dense<0.000000e+00> : vector<16x8xf32>
    %594 = tpu.matmul %592, %593, %cst_144 {dimension_numbers = #tpu.dot_dimension_numbers<[1], [0], [0], [1], [0, 0, 1, 1], [], []>} : vector<16x16xbf16>, vector<16x8xbf16>, vector<16x8xf32> -> vector<16x8xf32>
    %595 = tpu.concatenate %522, %546, %570, %594 in 1 : vector<16x8xf32>, vector<16x8xf32>, vector<16x8xf32>, vector<16x8xf32> -> vector<16x32xf32>
    %596 = vector.extract_strided_slice %397 {offsets = [32, 0], sizes = [16, 96], strides = [1, 1]} : vector<64x96xf32> to vector<16x96xf32>
    %597 = vector.extract_strided_slice %21 {offsets = [0, 0], sizes = [1, 16], strides = [1, 1]} : vector<2x16xf32> to vector<1x16xf32>
    %598 = vector.extract_strided_slice %596 {offsets = [0, 0], sizes = [16, 24], strides = [1, 1]} : vector<16x96xf32> to vector<16x24xf32>
    %599 = vector.extract_strided_slice %598 {offsets = [0, 0], sizes = [16, 8], strides = [1, 1]} : vector<16x24xf32> to vector<16x8xf32>
    %600 = vector.extract_strided_slice %598 {offsets = [0, 8], sizes = [16, 8], strides = [1, 1]} : vector<16x24xf32> to vector<16x8xf32>
    %601 = vector.extract_strided_slice %598 {offsets = [0, 16], sizes = [16, 8], strides = [1, 1]} : vector<16x24xf32> to vector<16x8xf32>
    %602 = arith.truncf %599 : vector<16x8xf32> to vector<16x8xbf16>
    %603 = arith.truncf %600 : vector<16x8xf32> to vector<16x8xbf16>
    %cst_145 = arith.constant dense<0.000000e+00> : vector<16x16xf32>
    %604 = tpu.matmul %602, %603, %cst_145 {dimension_numbers = #tpu.dot_dimension_numbers<[1], [1], [0], [0], [0, 0, 1, 0], [], []>} : vector<16x8xbf16>, vector<16x8xbf16>, vector<16x16xf32> -> vector<16x16xf32>
    %cst_146 = arith.constant 0.353553385 : f32
    %605 = vector.broadcast %cst_146 : f32 to vector<16x16xf32>
    %606 = arith.mulf %604, %605 : vector<16x16xf32>
    %607 = vector.broadcast %597 : vector<1x16xf32> to vector<16x16xf32>
    %608 = arith.addf %606, %607 : vector<16x16xf32>
    %cst_147 = arith.constant dense<0xFF800000> : vector<16xf32>
    %609 = vector.multi_reduction <maximumf>, %608, %cst_147 [1] : vector<16x16xf32> to vector<16xf32>
    %610 = vector.shape_cast %609 : vector<16xf32> to vector<16x1xf32>
    %611 = vector.broadcast %610 : vector<16x1xf32> to vector<16x16xf32>
    %612 = arith.subf %608, %611 : vector<16x16xf32>
    %613 = math.exp %612 : vector<16x16xf32>
    %cst_148 = arith.constant dense<0.000000e+00> : vector<16xf32>
    %614 = vector.multi_reduction <add>, %613, %cst_148 [1] : vector<16x16xf32> to vector<16xf32>
    %615 = vector.shape_cast %614 : vector<16xf32> to vector<16x1xf32>
    %616 = tpu.reciprocal %615 {approx = true} : vector<16x1xf32> -> vector<16x1xf32>
    %617 = vector.broadcast %616 : vector<16x1xf32> to vector<16x16xf32>
    %618 = arith.mulf %613, %617 : vector<16x16xf32>
    %619 = arith.truncf %618 : vector<16x16xf32> to vector<16x16xbf16>
    %620 = arith.truncf %601 : vector<16x8xf32> to vector<16x8xbf16>
    %cst_149 = arith.constant dense<0.000000e+00> : vector<16x8xf32>
    %621 = tpu.matmul %619, %620, %cst_149 {dimension_numbers = #tpu.dot_dimension_numbers<[1], [0], [0], [1], [0, 0, 1, 1], [], []>} : vector<16x16xbf16>, vector<16x8xbf16>, vector<16x8xf32> -> vector<16x8xf32>
    %622 = vector.extract_strided_slice %596 {offsets = [0, 24], sizes = [16, 24], strides = [1, 1]} : vector<16x96xf32> to vector<16x24xf32>
    %623 = vector.extract_strided_slice %622 {offsets = [0, 0], sizes = [16, 8], strides = [1, 1]} : vector<16x24xf32> to vector<16x8xf32>
    %624 = vector.extract_strided_slice %622 {offsets = [0, 8], sizes = [16, 8], strides = [1, 1]} : vector<16x24xf32> to vector<16x8xf32>
    %625 = vector.extract_strided_slice %622 {offsets = [0, 16], sizes = [16, 8], strides = [1, 1]} : vector<16x24xf32> to vector<16x8xf32>
    %626 = arith.truncf %623 : vector<16x8xf32> to vector<16x8xbf16>
    %627 = arith.truncf %624 : vector<16x8xf32> to vector<16x8xbf16>
    %cst_150 = arith.constant dense<0.000000e+00> : vector<16x16xf32>
    %628 = tpu.matmul %626, %627, %cst_150 {dimension_numbers = #tpu.dot_dimension_numbers<[1], [1], [0], [0], [0, 0, 1, 0], [], []>} : vector<16x8xbf16>, vector<16x8xbf16>, vector<16x16xf32> -> vector<16x16xf32>
    %cst_151 = arith.constant 0.353553385 : f32
    %629 = vector.broadcast %cst_151 : f32 to vector<16x16xf32>
    %630 = arith.mulf %628, %629 : vector<16x16xf32>
    %631 = vector.broadcast %597 : vector<1x16xf32> to vector<16x16xf32>
    %632 = arith.addf %630, %631 : vector<16x16xf32>
    %cst_152 = arith.constant dense<0xFF800000> : vector<16xf32>
    %633 = vector.multi_reduction <maximumf>, %632, %cst_152 [1] : vector<16x16xf32> to vector<16xf32>
    %634 = vector.shape_cast %633 : vector<16xf32> to vector<16x1xf32>
    %635 = vector.broadcast %634 : vector<16x1xf32> to vector<16x16xf32>
    %636 = arith.subf %632, %635 : vector<16x16xf32>
    %637 = math.exp %636 : vector<16x16xf32>
    %cst_153 = arith.constant dense<0.000000e+00> : vector<16xf32>
    %638 = vector.multi_reduction <add>, %637, %cst_153 [1] : vector<16x16xf32> to vector<16xf32>
    %639 = vector.shape_cast %638 : vector<16xf32> to vector<16x1xf32>
    %640 = tpu.reciprocal %639 {approx = true} : vector<16x1xf32> -> vector<16x1xf32>
    %641 = vector.broadcast %640 : vector<16x1xf32> to vector<16x16xf32>
    %642 = arith.mulf %637, %641 : vector<16x16xf32>
    %643 = arith.truncf %642 : vector<16x16xf32> to vector<16x16xbf16>
    %644 = arith.truncf %625 : vector<16x8xf32> to vector<16x8xbf16>
    %cst_154 = arith.constant dense<0.000000e+00> : vector<16x8xf32>
    %645 = tpu.matmul %643, %644, %cst_154 {dimension_numbers = #tpu.dot_dimension_numbers<[1], [0], [0], [1], [0, 0, 1, 1], [], []>} : vector<16x16xbf16>, vector<16x8xbf16>, vector<16x8xf32> -> vector<16x8xf32>
    %646 = vector.extract_strided_slice %596 {offsets = [0, 48], sizes = [16, 24], strides = [1, 1]} : vector<16x96xf32> to vector<16x24xf32>
    %647 = vector.extract_strided_slice %646 {offsets = [0, 0], sizes = [16, 8], strides = [1, 1]} : vector<16x24xf32> to vector<16x8xf32>
    %648 = vector.extract_strided_slice %646 {offsets = [0, 8], sizes = [16, 8], strides = [1, 1]} : vector<16x24xf32> to vector<16x8xf32>
    %649 = vector.extract_strided_slice %646 {offsets = [0, 16], sizes = [16, 8], strides = [1, 1]} : vector<16x24xf32> to vector<16x8xf32>
    %650 = arith.truncf %647 : vector<16x8xf32> to vector<16x8xbf16>
    %651 = arith.truncf %648 : vector<16x8xf32> to vector<16x8xbf16>
    %cst_155 = arith.constant dense<0.000000e+00> : vector<16x16xf32>
    %652 = tpu.matmul %650, %651, %cst_155 {dimension_numbers = #tpu.dot_dimension_numbers<[1], [1], [0], [0], [0, 0, 1, 0], [], []>} : vector<16x8xbf16>, vector<16x8xbf16>, vector<16x16xf32> -> vector<16x16xf32>
    %cst_156 = arith.constant 0.353553385 : f32
    %653 = vector.broadcast %cst_156 : f32 to vector<16x16xf32>
    %654 = arith.mulf %652, %653 : vector<16x16xf32>
    %655 = vector.broadcast %597 : vector<1x16xf32> to vector<16x16xf32>
    %656 = arith.addf %654, %655 : vector<16x16xf32>
    %cst_157 = arith.constant dense<0xFF800000> : vector<16xf32>
    %657 = vector.multi_reduction <maximumf>, %656, %cst_157 [1] : vector<16x16xf32> to vector<16xf32>
    %658 = vector.shape_cast %657 : vector<16xf32> to vector<16x1xf32>
    %659 = vector.broadcast %658 : vector<16x1xf32> to vector<16x16xf32>
    %660 = arith.subf %656, %659 : vector<16x16xf32>
    %661 = math.exp %660 : vector<16x16xf32>
    %cst_158 = arith.constant dense<0.000000e+00> : vector<16xf32>
    %662 = vector.multi_reduction <add>, %661, %cst_158 [1] : vector<16x16xf32> to vector<16xf32>
    %663 = vector.shape_cast %662 : vector<16xf32> to vector<16x1xf32>
    %664 = tpu.reciprocal %663 {approx = true} : vector<16x1xf32> -> vector<16x1xf32>
    %665 = vector.broadcast %664 : vector<16x1xf32> to vector<16x16xf32>
    %666 = arith.mulf %661, %665 : vector<16x16xf32>
    %667 = arith.truncf %666 : vector<16x16xf32> to vector<16x16xbf16>
    %668 = arith.truncf %649 : vector<16x8xf32> to vector<16x8xbf16>
    %cst_159 = arith.constant dense<0.000000e+00> : vector<16x8xf32>
    %669 = tpu.matmul %667, %668, %cst_159 {dimension_numbers = #tpu.dot_dimension_numbers<[1], [0], [0], [1], [0, 0, 1, 1], [], []>} : vector<16x16xbf16>, vector<16x8xbf16>, vector<16x8xf32> -> vector<16x8xf32>
    %670 = vector.extract_strided_slice %596 {offsets = [0, 72], sizes = [16, 24], strides = [1, 1]} : vector<16x96xf32> to vector<16x24xf32>
    %671 = vector.extract_strided_slice %670 {offsets = [0, 0], sizes = [16, 8], strides = [1, 1]} : vector<16x24xf32> to vector<16x8xf32>
    %672 = vector.extract_strided_slice %670 {offsets = [0, 8], sizes = [16, 8], strides = [1, 1]} : vector<16x24xf32> to vector<16x8xf32>
    %673 = vector.extract_strided_slice %670 {offsets = [0, 16], sizes = [16, 8], strides = [1, 1]} : vector<16x24xf32> to vector<16x8xf32>
    %674 = arith.truncf %671 : vector<16x8xf32> to vector<16x8xbf16>
    %675 = arith.truncf %672 : vector<16x8xf32> to vector<16x8xbf16>
    %cst_160 = arith.constant dense<0.000000e+00> : vector<16x16xf32>
    %676 = tpu.matmul %674, %675, %cst_160 {dimension_numbers = #tpu.dot_dimension_numbers<[1], [1], [0], [0], [0, 0, 1, 0], [], []>} : vector<16x8xbf16>, vector<16x8xbf16>, vector<16x16xf32> -> vector<16x16xf32>
    %cst_161 = arith.constant 0.353553385 : f32
    %677 = vector.broadcast %cst_161 : f32 to vector<16x16xf32>
    %678 = arith.mulf %676, %677 : vector<16x16xf32>
    %679 = vector.broadcast %597 : vector<1x16xf32> to vector<16x16xf32>
    %680 = arith.addf %678, %679 : vector<16x16xf32>
    %cst_162 = arith.constant dense<0xFF800000> : vector<16xf32>
    %681 = vector.multi_reduction <maximumf>, %680, %cst_162 [1] : vector<16x16xf32> to vector<16xf32>
    %682 = vector.shape_cast %681 : vector<16xf32> to vector<16x1xf32>
    %683 = vector.broadcast %682 : vector<16x1xf32> to vector<16x16xf32>
    %684 = arith.subf %680, %683 : vector<16x16xf32>
    %685 = math.exp %684 : vector<16x16xf32>
    %cst_163 = arith.constant dense<0.000000e+00> : vector<16xf32>
    %686 = vector.multi_reduction <add>, %685, %cst_163 [1] : vector<16x16xf32> to vector<16xf32>
    %687 = vector.shape_cast %686 : vector<16xf32> to vector<16x1xf32>
    %688 = tpu.reciprocal %687 {approx = true} : vector<16x1xf32> -> vector<16x1xf32>
    %689 = vector.broadcast %688 : vector<16x1xf32> to vector<16x16xf32>
    %690 = arith.mulf %685, %689 : vector<16x16xf32>
    %691 = arith.truncf %690 : vector<16x16xf32> to vector<16x16xbf16>
    %692 = arith.truncf %673 : vector<16x8xf32> to vector<16x8xbf16>
    %cst_164 = arith.constant dense<0.000000e+00> : vector<16x8xf32>
    %693 = tpu.matmul %691, %692, %cst_164 {dimension_numbers = #tpu.dot_dimension_numbers<[1], [0], [0], [1], [0, 0, 1, 1], [], []>} : vector<16x16xbf16>, vector<16x8xbf16>, vector<16x8xf32> -> vector<16x8xf32>
    %694 = tpu.concatenate %621, %645, %669, %693 in 1 : vector<16x8xf32>, vector<16x8xf32>, vector<16x8xf32>, vector<16x8xf32> -> vector<16x32xf32>
    %695 = vector.extract_strided_slice %397 {offsets = [48, 0], sizes = [16, 96], strides = [1, 1]} : vector<64x96xf32> to vector<16x96xf32>
    %696 = vector.extract_strided_slice %21 {offsets = [1, 0], sizes = [1, 16], strides = [1, 1]} : vector<2x16xf32> to vector<1x16xf32>
    %697 = vector.extract_strided_slice %695 {offsets = [0, 0], sizes = [16, 24], strides = [1, 1]} : vector<16x96xf32> to vector<16x24xf32>
    %698 = vector.extract_strided_slice %697 {offsets = [0, 0], sizes = [16, 8], strides = [1, 1]} : vector<16x24xf32> to vector<16x8xf32>
    %699 = vector.extract_strided_slice %697 {offsets = [0, 8], sizes = [16, 8], strides = [1, 1]} : vector<16x24xf32> to vector<16x8xf32>
    %700 = vector.extract_strided_slice %697 {offsets = [0, 16], sizes = [16, 8], strides = [1, 1]} : vector<16x24xf32> to vector<16x8xf32>
    %701 = arith.truncf %698 : vector<16x8xf32> to vector<16x8xbf16>
    %702 = arith.truncf %699 : vector<16x8xf32> to vector<16x8xbf16>
    %cst_165 = arith.constant dense<0.000000e+00> : vector<16x16xf32>
    %703 = tpu.matmul %701, %702, %cst_165 {dimension_numbers = #tpu.dot_dimension_numbers<[1], [1], [0], [0], [0, 0, 1, 0], [], []>} : vector<16x8xbf16>, vector<16x8xbf16>, vector<16x16xf32> -> vector<16x16xf32>
    %cst_166 = arith.constant 0.353553385 : f32
    %704 = vector.broadcast %cst_166 : f32 to vector<16x16xf32>
    %705 = arith.mulf %703, %704 : vector<16x16xf32>
    %706 = vector.broadcast %696 : vector<1x16xf32> to vector<16x16xf32>
    %707 = arith.addf %705, %706 : vector<16x16xf32>
    %cst_167 = arith.constant dense<0xFF800000> : vector<16xf32>
    %708 = vector.multi_reduction <maximumf>, %707, %cst_167 [1] : vector<16x16xf32> to vector<16xf32>
    %709 = vector.shape_cast %708 : vector<16xf32> to vector<16x1xf32>
    %710 = vector.broadcast %709 : vector<16x1xf32> to vector<16x16xf32>
    %711 = arith.subf %707, %710 : vector<16x16xf32>
    %712 = math.exp %711 : vector<16x16xf32>
    %cst_168 = arith.constant dense<0.000000e+00> : vector<16xf32>
    %713 = vector.multi_reduction <add>, %712, %cst_168 [1] : vector<16x16xf32> to vector<16xf32>
    %714 = vector.shape_cast %713 : vector<16xf32> to vector<16x1xf32>
    %715 = tpu.reciprocal %714 {approx = true} : vector<16x1xf32> -> vector<16x1xf32>
    %716 = vector.broadcast %715 : vector<16x1xf32> to vector<16x16xf32>
    %717 = arith.mulf %712, %716 : vector<16x16xf32>
    %718 = arith.truncf %717 : vector<16x16xf32> to vector<16x16xbf16>
    %719 = arith.truncf %700 : vector<16x8xf32> to vector<16x8xbf16>
    %cst_169 = arith.constant dense<0.000000e+00> : vector<16x8xf32>
    %720 = tpu.matmul %718, %719, %cst_169 {dimension_numbers = #tpu.dot_dimension_numbers<[1], [0], [0], [1], [0, 0, 1, 1], [], []>} : vector<16x16xbf16>, vector<16x8xbf16>, vector<16x8xf32> -> vector<16x8xf32>
    %721 = vector.extract_strided_slice %695 {offsets = [0, 24], sizes = [16, 24], strides = [1, 1]} : vector<16x96xf32> to vector<16x24xf32>
    %722 = vector.extract_strided_slice %721 {offsets = [0, 0], sizes = [16, 8], strides = [1, 1]} : vector<16x24xf32> to vector<16x8xf32>
    %723 = vector.extract_strided_slice %721 {offsets = [0, 8], sizes = [16, 8], strides = [1, 1]} : vector<16x24xf32> to vector<16x8xf32>
    %724 = vector.extract_strided_slice %721 {offsets = [0, 16], sizes = [16, 8], strides = [1, 1]} : vector<16x24xf32> to vector<16x8xf32>
    %725 = arith.truncf %722 : vector<16x8xf32> to vector<16x8xbf16>
    %726 = arith.truncf %723 : vector<16x8xf32> to vector<16x8xbf16>
    %cst_170 = arith.constant dense<0.000000e+00> : vector<16x16xf32>
    %727 = tpu.matmul %725, %726, %cst_170 {dimension_numbers = #tpu.dot_dimension_numbers<[1], [1], [0], [0], [0, 0, 1, 0], [], []>} : vector<16x8xbf16>, vector<16x8xbf16>, vector<16x16xf32> -> vector<16x16xf32>
    %cst_171 = arith.constant 0.353553385 : f32
    %728 = vector.broadcast %cst_171 : f32 to vector<16x16xf32>
    %729 = arith.mulf %727, %728 : vector<16x16xf32>
    %730 = vector.broadcast %696 : vector<1x16xf32> to vector<16x16xf32>
    %731 = arith.addf %729, %730 : vector<16x16xf32>
    %cst_172 = arith.constant dense<0xFF800000> : vector<16xf32>
    %732 = vector.multi_reduction <maximumf>, %731, %cst_172 [1] : vector<16x16xf32> to vector<16xf32>
    %733 = vector.shape_cast %732 : vector<16xf32> to vector<16x1xf32>
    %734 = vector.broadcast %733 : vector<16x1xf32> to vector<16x16xf32>
    %735 = arith.subf %731, %734 : vector<16x16xf32>
    %736 = math.exp %735 : vector<16x16xf32>
    %cst_173 = arith.constant dense<0.000000e+00> : vector<16xf32>
    %737 = vector.multi_reduction <add>, %736, %cst_173 [1] : vector<16x16xf32> to vector<16xf32>
    %738 = vector.shape_cast %737 : vector<16xf32> to vector<16x1xf32>
    %739 = tpu.reciprocal %738 {approx = true} : vector<16x1xf32> -> vector<16x1xf32>
    %740 = vector.broadcast %739 : vector<16x1xf32> to vector<16x16xf32>
    %741 = arith.mulf %736, %740 : vector<16x16xf32>
    %742 = arith.truncf %741 : vector<16x16xf32> to vector<16x16xbf16>
    %743 = arith.truncf %724 : vector<16x8xf32> to vector<16x8xbf16>
    %cst_174 = arith.constant dense<0.000000e+00> : vector<16x8xf32>
    %744 = tpu.matmul %742, %743, %cst_174 {dimension_numbers = #tpu.dot_dimension_numbers<[1], [0], [0], [1], [0, 0, 1, 1], [], []>} : vector<16x16xbf16>, vector<16x8xbf16>, vector<16x8xf32> -> vector<16x8xf32>
    %745 = vector.extract_strided_slice %695 {offsets = [0, 48], sizes = [16, 24], strides = [1, 1]} : vector<16x96xf32> to vector<16x24xf32>
    %746 = vector.extract_strided_slice %745 {offsets = [0, 0], sizes = [16, 8], strides = [1, 1]} : vector<16x24xf32> to vector<16x8xf32>
    %747 = vector.extract_strided_slice %745 {offsets = [0, 8], sizes = [16, 8], strides = [1, 1]} : vector<16x24xf32> to vector<16x8xf32>
    %748 = vector.extract_strided_slice %745 {offsets = [0, 16], sizes = [16, 8], strides = [1, 1]} : vector<16x24xf32> to vector<16x8xf32>
    %749 = arith.truncf %746 : vector<16x8xf32> to vector<16x8xbf16>
    %750 = arith.truncf %747 : vector<16x8xf32> to vector<16x8xbf16>
    %cst_175 = arith.constant dense<0.000000e+00> : vector<16x16xf32>
    %751 = tpu.matmul %749, %750, %cst_175 {dimension_numbers = #tpu.dot_dimension_numbers<[1], [1], [0], [0], [0, 0, 1, 0], [], []>} : vector<16x8xbf16>, vector<16x8xbf16>, vector<16x16xf32> -> vector<16x16xf32>
    %cst_176 = arith.constant 0.353553385 : f32
    %752 = vector.broadcast %cst_176 : f32 to vector<16x16xf32>
    %753 = arith.mulf %751, %752 : vector<16x16xf32>
    %754 = vector.broadcast %696 : vector<1x16xf32> to vector<16x16xf32>
    %755 = arith.addf %753, %754 : vector<16x16xf32>
    %cst_177 = arith.constant dense<0xFF800000> : vector<16xf32>
    %756 = vector.multi_reduction <maximumf>, %755, %cst_177 [1] : vector<16x16xf32> to vector<16xf32>
    %757 = vector.shape_cast %756 : vector<16xf32> to vector<16x1xf32>
    %758 = vector.broadcast %757 : vector<16x1xf32> to vector<16x16xf32>
    %759 = arith.subf %755, %758 : vector<16x16xf32>
    %760 = math.exp %759 : vector<16x16xf32>
    %cst_178 = arith.constant dense<0.000000e+00> : vector<16xf32>
    %761 = vector.multi_reduction <add>, %760, %cst_178 [1] : vector<16x16xf32> to vector<16xf32>
    %762 = vector.shape_cast %761 : vector<16xf32> to vector<16x1xf32>
    %763 = tpu.reciprocal %762 {approx = true} : vector<16x1xf32> -> vector<16x1xf32>
    %764 = vector.broadcast %763 : vector<16x1xf32> to vector<16x16xf32>
    %765 = arith.mulf %760, %764 : vector<16x16xf32>
    %766 = arith.truncf %765 : vector<16x16xf32> to vector<16x16xbf16>
    %767 = arith.truncf %748 : vector<16x8xf32> to vector<16x8xbf16>
    %cst_179 = arith.constant dense<0.000000e+00> : vector<16x8xf32>
    %768 = tpu.matmul %766, %767, %cst_179 {dimension_numbers = #tpu.dot_dimension_numbers<[1], [0], [0], [1], [0, 0, 1, 1], [], []>} : vector<16x16xbf16>, vector<16x8xbf16>, vector<16x8xf32> -> vector<16x8xf32>
    %769 = vector.extract_strided_slice %695 {offsets = [0, 72], sizes = [16, 24], strides = [1, 1]} : vector<16x96xf32> to vector<16x24xf32>
    %770 = vector.extract_strided_slice %769 {offsets = [0, 0], sizes = [16, 8], strides = [1, 1]} : vector<16x24xf32> to vector<16x8xf32>
    %771 = vector.extract_strided_slice %769 {offsets = [0, 8], sizes = [16, 8], strides = [1, 1]} : vector<16x24xf32> to vector<16x8xf32>
    %772 = vector.extract_strided_slice %769 {offsets = [0, 16], sizes = [16, 8], strides = [1, 1]} : vector<16x24xf32> to vector<16x8xf32>
    %773 = arith.truncf %770 : vector<16x8xf32> to vector<16x8xbf16>
    %774 = arith.truncf %771 : vector<16x8xf32> to vector<16x8xbf16>
    %cst_180 = arith.constant dense<0.000000e+00> : vector<16x16xf32>
    %775 = tpu.matmul %773, %774, %cst_180 {dimension_numbers = #tpu.dot_dimension_numbers<[1], [1], [0], [0], [0, 0, 1, 0], [], []>} : vector<16x8xbf16>, vector<16x8xbf16>, vector<16x16xf32> -> vector<16x16xf32>
    %cst_181 = arith.constant 0.353553385 : f32
    %776 = vector.broadcast %cst_181 : f32 to vector<16x16xf32>
    %777 = arith.mulf %775, %776 : vector<16x16xf32>
    %778 = vector.broadcast %696 : vector<1x16xf32> to vector<16x16xf32>
    %779 = arith.addf %777, %778 : vector<16x16xf32>
    %cst_182 = arith.constant dense<0xFF800000> : vector<16xf32>
    %780 = vector.multi_reduction <maximumf>, %779, %cst_182 [1] : vector<16x16xf32> to vector<16xf32>
    %781 = vector.shape_cast %780 : vector<16xf32> to vector<16x1xf32>
    %782 = vector.broadcast %781 : vector<16x1xf32> to vector<16x16xf32>
    %783 = arith.subf %779, %782 : vector<16x16xf32>
    %784 = math.exp %783 : vector<16x16xf32>
    %cst_183 = arith.constant dense<0.000000e+00> : vector<16xf32>
    %785 = vector.multi_reduction <add>, %784, %cst_183 [1] : vector<16x16xf32> to vector<16xf32>
    %786 = vector.shape_cast %785 : vector<16xf32> to vector<16x1xf32>
    %787 = tpu.reciprocal %786 {approx = true} : vector<16x1xf32> -> vector<16x1xf32>
    %788 = vector.broadcast %787 : vector<16x1xf32> to vector<16x16xf32>
    %789 = arith.mulf %784, %788 : vector<16x16xf32>
    %790 = arith.truncf %789 : vector<16x16xf32> to vector<16x16xbf16>
    %791 = arith.truncf %772 : vector<16x8xf32> to vector<16x8xbf16>
    %cst_184 = arith.constant dense<0.000000e+00> : vector<16x8xf32>
    %792 = tpu.matmul %790, %791, %cst_184 {dimension_numbers = #tpu.dot_dimension_numbers<[1], [0], [0], [1], [0, 0, 1, 1], [], []>} : vector<16x16xbf16>, vector<16x8xbf16>, vector<16x8xf32> -> vector<16x8xf32>
    %793 = tpu.concatenate %720, %744, %768, %792 in 1 : vector<16x8xf32>, vector<16x8xf32>, vector<16x8xf32>, vector<16x8xf32> -> vector<16x32xf32>
    %794 = tpu.concatenate %496, %595, %694, %793 in 0 : vector<16x32xf32>, vector<16x32xf32>, vector<16x32xf32>, vector<16x32xf32> -> vector<64x32xf32>
    %795 = arith.truncf %794 : vector<64x32xf32> to vector<64x32xbf16>
    %cst_185 = arith.constant dense<0.000000e+00> : vector<64x32xf32>
    %796 = tpu.matmul %795, %18, %cst_185 {dimension_numbers = #tpu.dot_dimension_numbers<[1], [0], [0], [1], [0, 0, 1, 1], [], []>} : vector<64x32xbf16>, vector<32x32xbf16>, vector<64x32xf32> -> vector<64x32xf32>
    %797 = vector.broadcast %4 : vector<1x32xf32> to vector<64x32xf32>
    %798 = arith.addf %796, %797 : vector<64x32xf32>
    %799 = arith.addf %798, %393 : vector<64x32xf32>
    %cst_186 = arith.constant dense<0.000000e+00> : vector<64xf32>
    %800 = vector.multi_reduction <add>, %799, %cst_186 [1] : vector<64x32xf32> to vector<64xf32>
    %801 = vector.shape_cast %800 : vector<64xf32> to vector<64x1xf32>
    %cst_187 = arith.constant 3.200000e+01 : f32
    %802 = vector.broadcast %cst_187 : f32 to vector<64x1xf32>
    %803 = arith.divf %801, %802 : vector<64x1xf32>
    %804 = vector.broadcast %803 : vector<64x1xf32> to vector<64x32xf32>
    %805 = arith.subf %799, %804 : vector<64x32xf32>
    %806 = arith.mulf %805, %805 : vector<64x32xf32>
    %cst_188 = arith.constant dense<0.000000e+00> : vector<64xf32>
    %807 = vector.multi_reduction <add>, %806, %cst_188 [1] : vector<64x32xf32> to vector<64xf32>
    %808 = vector.shape_cast %807 : vector<64xf32> to vector<64x1xf32>
    %cst_189 = arith.constant 3.200000e+01 : f32
    %809 = vector.broadcast %cst_189 : f32 to vector<64x1xf32>
    %810 = arith.divf %808, %809 : vector<64x1xf32>
    %811 = vector.broadcast %803 : vector<64x1xf32> to vector<64x32xf32>
    %812 = arith.subf %799, %811 : vector<64x32xf32>
    %cst_190 = arith.constant 9.99999996E-13 : f32
    %813 = vector.broadcast %cst_190 : f32 to vector<64x1xf32>
    %814 = arith.addf %810, %813 : vector<64x1xf32>
    %815 = math.rsqrt %814 : vector<64x1xf32>
    %816 = vector.broadcast %815 : vector<64x1xf32> to vector<64x32xf32>
    %817 = arith.mulf %812, %816 : vector<64x32xf32>
    %818 = vector.broadcast %5 : vector<1x32xf32> to vector<64x32xf32>
    %819 = arith.mulf %817, %818 : vector<64x32xf32>
    %820 = vector.broadcast %6 : vector<1x32xf32> to vector<64x32xf32>
    %821 = arith.addf %819, %820 : vector<64x32xf32>
    %822 = arith.truncf %821 : vector<64x32xf32> to vector<64x32xbf16>
    %cst_191 = arith.constant dense<0.000000e+00> : vector<64x128xf32>
    %823 = tpu.matmul %822, %19, %cst_191 {dimension_numbers = #tpu.dot_dimension_numbers<[1], [0], [0], [1], [0, 0, 1, 1], [], []>} : vector<64x32xbf16>, vector<32x128xbf16>, vector<64x128xf32> -> vector<64x128xf32>
    %824 = vector.broadcast %7 : vector<1x128xf32> to vector<64x128xf32>
    %825 = arith.addf %823, %824 : vector<64x128xf32>
    %cst_192 = arith.constant 5.000000e-01 : f32
    %826 = vector.broadcast %cst_192 : f32 to vector<64x128xf32>
    %827 = arith.mulf %826, %825 : vector<64x128xf32>
    %cst_193 = arith.constant 4.471500e-02 : f32
    %828 = vector.broadcast %cst_193 : f32 to vector<64x128xf32>
    %829 = arith.mulf %828, %825 : vector<64x128xf32>
    %830 = arith.mulf %829, %825 : vector<64x128xf32>
    %831 = arith.mulf %830, %825 : vector<64x128xf32>
    %832 = arith.addf %825, %831 : vector<64x128xf32>
    %cst_194 = arith.constant 0.797884583 : f32
    %833 = vector.broadcast %cst_194 : f32 to vector<64x128xf32>
    %834 = arith.mulf %833, %832 : vector<64x128xf32>
    %835 = math.tanh %834 : vector<64x128xf32>
    %cst_195 = arith.constant 1.000000e+00 : f32
    %836 = vector.broadcast %cst_195 : f32 to vector<64x128xf32>
    %837 = arith.addf %836, %835 : vector<64x128xf32>
    %838 = arith.mulf %827, %837 : vector<64x128xf32>
    %839 = arith.truncf %838 : vector<64x128xf32> to vector<64x128xbf16>
    %cst_196 = arith.constant dense<0.000000e+00> : vector<64x32xf32>
    %840 = tpu.matmul %839, %20, %cst_196 {dimension_numbers = #tpu.dot_dimension_numbers<[1], [0], [0], [1], [0, 0, 1, 1], [], []>} : vector<64x128xbf16>, vector<128x32xbf16>, vector<64x32xf32> -> vector<64x32xf32>
    %841 = vector.broadcast %8 : vector<1x32xf32> to vector<64x32xf32>
    %842 = arith.addf %840, %841 : vector<64x32xf32>
    %843 = arith.addf %842, %821 : vector<64x32xf32>
    %cst_197 = arith.constant dense<0.000000e+00> : vector<64xf32>
    %844 = vector.multi_reduction <add>, %843, %cst_197 [1] : vector<64x32xf32> to vector<64xf32>
    %845 = vector.shape_cast %844 : vector<64xf32> to vector<64x1xf32>
    %cst_198 = arith.constant 3.200000e+01 : f32
    %846 = vector.broadcast %cst_198 : f32 to vector<64x1xf32>
    %847 = arith.divf %845, %846 : vector<64x1xf32>
    %848 = vector.broadcast %847 : vector<64x1xf32> to vector<64x32xf32>
    %849 = arith.subf %843, %848 : vector<64x32xf32>
    %850 = arith.mulf %849, %849 : vector<64x32xf32>
    %cst_199 = arith.constant dense<0.000000e+00> : vector<64xf32>
    %851 = vector.multi_reduction <add>, %850, %cst_199 [1] : vector<64x32xf32> to vector<64xf32>
    %852 = vector.shape_cast %851 : vector<64xf32> to vector<64x1xf32>
    %cst_200 = arith.constant 3.200000e+01 : f32
    %853 = vector.broadcast %cst_200 : f32 to vector<64x1xf32>
    %854 = arith.divf %852, %853 : vector<64x1xf32>
    %855 = vector.broadcast %847 : vector<64x1xf32> to vector<64x32xf32>
    %856 = arith.subf %843, %855 : vector<64x32xf32>
    %cst_201 = arith.constant 9.99999996E-13 : f32
    %857 = vector.broadcast %cst_201 : f32 to vector<64x1xf32>
    %858 = arith.addf %854, %857 : vector<64x1xf32>
    %859 = math.rsqrt %858 : vector<64x1xf32>
    %860 = vector.broadcast %859 : vector<64x1xf32> to vector<64x32xf32>
    %861 = arith.mulf %856, %860 : vector<64x32xf32>
    %862 = vector.broadcast %9 : vector<1x32xf32> to vector<64x32xf32>
    %863 = arith.mulf %861, %862 : vector<64x32xf32>
    %864 = vector.broadcast %10 : vector<1x32xf32> to vector<64x32xf32>
    %865 = arith.addf %863, %864 : vector<64x32xf32>
    %866 = vector.extract_strided_slice %865 {offsets = [0, 0], sizes = [1, 32], strides = [1, 1]} : vector<64x32xf32> to vector<1x32xf32>
    %867 = vector.extract_strided_slice %865 {offsets = [16, 0], sizes = [1, 32], strides = [1, 1]} : vector<64x32xf32> to vector<1x32xf32>
    %868 = vector.extract_strided_slice %865 {offsets = [32, 0], sizes = [1, 32], strides = [1, 1]} : vector<64x32xf32> to vector<1x32xf32>
    %869 = vector.extract_strided_slice %865 {offsets = [48, 0], sizes = [1, 32], strides = [1, 1]} : vector<64x32xf32> to vector<1x32xf32>
    %870 = tpu.concatenate %866, %867, %868, %869 in 0 : vector<1x32xf32>, vector<1x32xf32>, vector<1x32xf32>, vector<1x32xf32> -> vector<4x32xf32>
    %c0_202 = arith.constant 0 : index
    %c0_203 = arith.constant 0 : index
    %871 = vector.load %arg12[%c0_202, %c0_203] : memref<32x32xbf16, #tpu.memory_space<vmem>>, vector<32x32xbf16>
    %872 = arith.truncf %870 : vector<4x32xf32> to vector<4x32xbf16>
    %cst_204 = arith.constant dense<0.000000e+00> : vector<4x32xf32>
    %873 = tpu.matmul %872, %871, %cst_204 {dimension_numbers = #tpu.dot_dimension_numbers<[1], [0], [0], [1], [0, 0, 1, 1], [], []>} : vector<4x32xbf16>, vector<32x32xbf16>, vector<4x32xf32> -> vector<4x32xf32>
    %874 = vector.broadcast %11 : vector<1x32xf32> to vector<4x32xf32>
    %875 = arith.addf %873, %874 : vector<4x32xf32>
    %876 = math.tanh %875 : vector<4x32xf32>
    %c0_205 = arith.constant 0 : index
    %c0_206 = arith.constant 0 : index
    %877 = vector.load %arg13[%c0_205, %c0_206] : memref<32x128xbf16, #tpu.memory_space<vmem>>, vector<32x128xbf16>
    %878 = arith.truncf %876 : vector<4x32xf32> to vector<4x32xbf16>
    %cst_207 = arith.constant dense<0.000000e+00> : vector<4x128xf32>
    %879 = tpu.matmul %878, %877, %cst_207 {dimension_numbers = #tpu.dot_dimension_numbers<[1], [0], [0], [1], [0, 0, 1, 1], [], []>} : vector<4x32xbf16>, vector<32x128xbf16>, vector<4x128xf32> -> vector<4x128xf32>
    %880 = vector.broadcast %12 : vector<1x128xf32> to vector<4x128xf32>
    %881 = arith.addf %879, %880 : vector<4x128xf32>
    %882 = vector.extract_strided_slice %870 {offsets = [0, 0], sizes = [2, 32], strides = [1, 1]} : vector<4x32xf32> to vector<2x32xf32>
    %883 = vector.extract_strided_slice %870 {offsets = [2, 0], sizes = [2, 32], strides = [1, 1]} : vector<4x32xf32> to vector<2x32xf32>
    %884 = tpu.concatenate %882, %883 in 1 : vector<2x32xf32>, vector<2x32xf32> -> vector<2x64xf32>
    %cst_208 = arith.constant dense<0.000000e+00> : vector<64xf32>
    %885 = vector.multi_reduction <add>, %884, %cst_208 [0] : vector<2x64xf32> to vector<64xf32>
    %886 = vector.shape_cast %885 : vector<64xf32> to vector<1x64xf32>
    %cst_209 = arith.constant 2.000000e+00 : f32
    %887 = vector.broadcast %cst_209 : f32 to vector<1x64xf32>
    %888 = arith.divf %886, %887 : vector<1x64xf32>
    %c0_210 = arith.constant 0 : index
    %c0_211 = arith.constant 0 : index
    %889 = vector.load %arg16[%c0_210, %c0_211] : memref<64x32xbf16, #tpu.memory_space<vmem>>, vector<64x32xbf16>
    %890 = arith.truncf %888 : vector<1x64xf32> to vector<1x64xbf16>
    %cst_212 = arith.constant dense<0.000000e+00> : vector<1x32xf32>
    %891 = tpu.matmul %890, %889, %cst_212 {dimension_numbers = #tpu.dot_dimension_numbers<[1], [0], [0], [1], [0, 0, 1, 1], [], []>} : vector<1x64xbf16>, vector<64x32xbf16>, vector<1x32xf32> -> vector<1x32xf32>
    %892 = arith.addf %891, %15 : vector<1x32xf32>
    %cst_213 = arith.constant 0.000000e+00 : f32
    %893 = vector.broadcast %cst_213 : f32 to vector<1x32xf32>
    %894 = arith.maximumf %892, %893 : vector<1x32xf32>
    %c0_214 = arith.constant 0 : index
    %c0_215 = arith.constant 0 : index
    %895 = vector.load %arg17[%c0_214, %c0_215] : memref<32x2xbf16, #tpu.memory_space<vmem>>, vector<32x2xbf16>
    %896 = arith.truncf %894 : vector<1x32xf32> to vector<1x32xbf16>
    %cst_216 = arith.constant dense<0.000000e+00> : vector<1x2xf32>
    %897 = tpu.matmul %896, %895, %cst_216 {dimension_numbers = #tpu.dot_dimension_numbers<[1], [0], [0], [1], [0, 0, 1, 1], [], []>} : vector<1x32xbf16>, vector<32x2xbf16>, vector<1x2xf32> -> vector<1x2xf32>
    %898 = arith.addf %897, %16 : vector<1x2xf32>
    %cst_217 = arith.constant 2.000000e+00 : f32
    %899 = vector.broadcast %cst_217 : f32 to vector<1x2xf32>
    %900 = arith.mulf %898, %899 : vector<1x2xf32>
    %cst_218 = arith.constant dense<0xFF800000> : vector<1xf32>
    %901 = vector.multi_reduction <maximumf>, %900, %cst_218 [1] : vector<1x2xf32> to vector<1xf32>
    %902 = vector.shape_cast %901 : vector<1xf32> to vector<1x1xf32>
    %903 = vector.broadcast %902 : vector<1x1xf32> to vector<1x2xf32>
    %904 = arith.subf %900, %903 : vector<1x2xf32>
    %905 = math.exp %904 : vector<1x2xf32>
    %cst_219 = arith.constant dense<0.000000e+00> : vector<1xf32>
    %906 = vector.multi_reduction <add>, %905, %cst_219 [1] : vector<1x2xf32> to vector<1xf32>
    %907 = vector.shape_cast %906 : vector<1xf32> to vector<1x1xf32>
    %908 = tpu.reciprocal %907 {approx = true} : vector<1x1xf32> -> vector<1x1xf32>
    %909 = vector.broadcast %908 : vector<1x1xf32> to vector<1x2xf32>
    %910 = arith.mulf %905, %909 : vector<1x2xf32>
    %cst_220 = arith.constant 0.000000e+00 : f32
    %911 = vector.broadcast %cst_220 : f32 to vector<1x126xf32>
    %912 = tpu.concatenate %910, %911 in 1 : vector<1x2xf32>, vector<1x126xf32> -> vector<1x128xf32>
    %913 = vector.broadcast %365 : f32 to vector<1x1xf32>
    %cst_221 = arith.constant 0.000000e+00 : f32
    %914 = vector.broadcast %cst_221 : f32 to vector<1x127xf32>
    %915 = tpu.concatenate %913, %914 in 1 : vector<1x1xf32>, vector<1x127xf32> -> vector<1x128xf32>
    %cst_222 = arith.constant 0.000000e+00 : f32
    %916 = vector.broadcast %cst_222 : f32 to vector<2x128xf32>
    %917 = tpu.concatenate %881, %912, %915, %916 in 0 : vector<4x128xf32>, vector<1x128xf32>, vector<1x128xf32>, vector<2x128xf32> -> vector<8x128xf32>
    %c0_223 = arith.constant 0 : index
    %c0_224 = arith.constant 0 : index
    %918 = vector.load %arg18[%c0_223, %c0_224] : memref<8x128xf32, #tpu.memory_space<vmem>>, vector<8x128xf32>
    tpu.vector_store %arg18[%c0_223, %c0_224], %917 {strides = array<i32>} : memref<8x128xf32, #tpu.memory_space<vmem>>, vector<8x128xf32>,
    return
  }
  func.func @transform_0(%arg0: i32) -> (i32, i32) {
    %c0_i32 = arith.constant 0 : i32
    %c0_i32_0 = arith.constant 0 : i32
    %c0_i32_1 = arith.constant 0 : i32
    return %c0_i32, %c0_i32_0 : i32, i32
  }
  func.func @transform_1(%arg0: i32) -> (i32, i32) {
    %c0_i32 = arith.constant 0 : i32
    %c0_i32_0 = arith.constant 0 : i32
    %c0_i32_1 = arith.constant 0 : i32
    return %c0_i32, %c0_i32_0 : i32, i32
  }
  func.func @transform_2(%arg0: i32) -> (i32, i32) {
    %c0_i32 = arith.constant 0 : i32
    %c0_i32_0 = arith.constant 0 : i32
    %c0_i32_1 = arith.constant 0 : i32
    return %c0_i32, %c0_i32_0 : i32, i32
  }
  func.func @transform_3(%arg0: i32) -> (i32, i32) {
    %c0_i32 = arith.constant 0 : i32
    %c0_i32_0 = arith.constant 0 : i32
    %c0_i32_1 = arith.constant 0 : i32
    return %c0_i32, %c0_i32_0 : i32, i32
  }
  func.func @transform_4(%arg0: i32) -> (i32, i32) {
    %c0_i32 = arith.constant 0 : i32
    %c0_i32_0 = arith.constant 0 : i32
    %c0_i32_1 = arith.constant 0 : i32
    return %c0_i32, %c0_i32_0 : i32, i32
  }
  func.func @transform_5(%arg0: i32) -> (i32, i32) {
    %c0_i32 = arith.constant 0 : i32
    %c0_i32_0 = arith.constant 0 : i32
    %c0_i32_1 = arith.constant 0 : i32
    return %c0_i32, %c0_i32_0 : i32, i32
  }
  func.func @transform_6(%arg0: i32) -> (i32, i32) {
    %c0_i32 = arith.constant 0 : i32
    %c0_i32_0 = arith.constant 0 : i32
    %c0_i32_1 = arith.constant 0 : i32
    return %c0_i32, %c0_i32_0 : i32, i32
  }
  func.func @transform_7(%arg0: i32) -> (i32, i32) {
    %c0_i32 = arith.constant 0 : i32
    %c0_i32_0 = arith.constant 0 : i32
    %c0_i32_1 = arith.constant 0 : i32
    return %c0_i32, %c0_i32_0 : i32, i32
  }
  func.func @transform_8(%arg0: i32) -> (i32, i32) {
    %c0_i32 = arith.constant 0 : i32
    %c0_i32_0 = arith.constant 0 : i32
    %c0_i32_1 = arith.constant 0 : i32
    return %c0_i32, %c0_i32_0 : i32, i32
  }
  func.func @transform_9(%arg0: i32) -> (i32, i32) {
    %c0_i32 = arith.constant 0 : i32
    %c0_i32_0 = arith.constant 0 : i32
    %c0_i32_1 = arith.constant 0 : i32
    return %c0_i32, %c0_i32_0 : i32, i32
  }
  func.func @transform_10(%arg0: i32) -> (i32, i32) {
    %c0_i32 = arith.constant 0 : i32
    %c0_i32_0 = arith.constant 0 : i32
    %c0_i32_1 = arith.constant 0 : i32
    return %c0_i32, %c0_i32_0 : i32, i32
  }
  func.func @transform_11(%arg0: i32) -> (i32, i32) {
    %c0_i32 = arith.constant 0 : i32
    %c0_i32_0 = arith.constant 0 : i32
    %c0_i32_1 = arith.constant 0 : i32
    return %c0_i32, %c0_i32_0 : i32, i32
  }
  func.func @transform_12(%arg0: i32) -> (i32, i32) {
    %c0_i32 = arith.constant 0 : i32
    %c0_i32_0 = arith.constant 0 : i32
    %c0_i32_1 = arith.constant 0 : i32
    return %c0_i32, %c0_i32_0 : i32, i32
  }
  func.func @transform_13(%arg0: i32) -> (i32, i32) {
    %c0_i32 = arith.constant 0 : i32
    %c0_i32_0 = arith.constant 0 : i32
    %c0_i32_1 = arith.constant 0 : i32
    return %c0_i32, %c0_i32_0 : i32, i32
  }
  func.func @transform_14(%arg0: i32) -> (i32, i32) {
    %c0_i32 = arith.constant 0 : i32
    %c0_i32_0 = arith.constant 0 : i32
    %c0_i32_1 = arith.constant 0 : i32
    return %c0_i32, %c0_i32_0 : i32, i32
  }
  func.func @transform_15(%arg0: i32) -> (i32, i32) {
    %c0_i32 = arith.constant 0 : i32
    %c0_i32_0 = arith.constant 0 : i32
    %c0_i32_1 = arith.constant 0 : i32
    return %c0_i32, %c0_i32_0 : i32, i32
  }
  func.func @transform_16(%arg0: i32) -> (i32, i32) {
    %c0_i32 = arith.constant 0 : i32
    %c0_i32_0 = arith.constant 0 : i32
    %c0_i32_1 = arith.constant 0 : i32
    return %c0_i32, %c0_i32_0 : i32, i32
  }
  func.func @transform_17(%arg0: i32) -> (i32, i32) {
    %c0_i32 = arith.constant 0 : i32
    %c0_i32_0 = arith.constant 0 : i32
    %c0_i32_1 = arith.constant 0 : i32
    return %c0_i32, %c0_i32_0 : i32, i32
  }
}

</mosaic_0001>

<bundles_post_ra>
// kernel: newbert_forward.3
= control target key start
LH: loop header
LB: loop body
LE: loop exit
PB: predicated region body
PF: predicated region fallthrough
CT: control target
= control target key end

     0   :  { %vm92_vm0 = vcmask 261120   ;;  %v146_v39 = vlaneseq  ;;  %vm6418_vm1 = vmmov 0   ;;  %s6419_s25 = smov 96   ;;  %s6421_s27 = smov 104   ;;  %vm239_vm2 = vcmask 64512   ;;  %s8235_s0 = inlined_call_operand.vmem [shape: f32[32,32], index: 0, kind: input, shape index: {}]   ;;  %s8236_s7 = inlined_call_operand.vmem [shape: bf16[32,96], index: 7, kind: input, shape index: {}]   ;;  %s8237_s6 = inlined_call_operand.vmem [shape: f32[16,128], index: 6, kind: input, shape index: {}]   ;;  %s8238_s3 = inlined_call_operand.vmem [shape: f32[2,16], index: 3, kind: input, shape index: {}]   ;;  %s8239_s8 = inlined_call_operand.vmem [shape: bf16[32,32], index: 8, kind: input, shape index: {}]   ;;  %s8240_s9 = inlined_call_operand.vmem [shape: bf16[32,128], index: 9, kind: input, shape index: {}]   ;;  %s8241_s10 = inlined_call_operand.vmem [shape: bf16[128,32], index: 10, kind: input, shape index: {}]   ;;  %s8242_s13 = inlined_call_operand.vmem [shape: bf16[32,32], index: 13, kind: input, shape index: {}]   ;;  %s8243_s14 = inlined_call_operand.vmem [shape: bf16[32,64], index: 14, kind: input, shape index: {}]   ;;  %s8244_s4 = inlined_call_operand.vmem [shape: f32[32,32], index: 4, kind: input, shape index: {}]   ;;  %s8245_s1 = inlined_call_operand.vmem [shape: f32[32,32], index: 1, kind: input, shape index: {}]   ;;  %s8246_s2 = inlined_call_operand.vmem [shape: f32[32,32], index: 2, kind: input, shape index: {}]   ;;  %s8247_s11 = inlined_call_operand.vmem [shape: bf16[32,32], index: 11, kind: input, shape index: {}]   ;;  %s8248_s12 = inlined_call_operand.vmem [shape: bf16[32,128], index: 12, kind: input, shape index: {}]   ;;  %s8249_s15 = inlined_call_operand.vmem [shape: bf16[64,32], index: 15, kind: input, shape index: {}]   ;;  %s8250_s5 = inlined_call_operand.vmem [shape: f32[32,1], index: 5, kind: input, shape index: {}]   ;;  %s8251_s16 = inlined_call_operand.vmem [shape: bf16[32,2], index: 16, kind: input, shape index: {}]   ;;  %s8252_s17 = inlined_call_operand.vmem [shape: f32[8,128], index: 17, kind: output, shape index: {}]  }
   0x1   :  { %8296 = sst [smem:[#allocation14_spill]] %s8235_s0  ;;  %v57_v45 = vld [vmem:[%s8237_s6] sm:$0xff]  ;;  %s6422_s28 = smov 80   ;;  %vm295_vm3 = vcmask 130048   ;;  %vm769_vm4 = vcmask 195584   ;;  %vm4903_vm5 = vcmask 1040384  }
   0x2   :  { %8297 = sst [smem:[#allocation15_spill]] %s8236_s7  ;;  %v6550_v43 = vshrl.u32 %v146_v39, 7  ;;  %s6423_s29 = smov 72   ;;  %v87_v39 = vld [vmem:[%s8238_s3] sm:$0x3]  ;;  %vm4905_vm6 = vcmask 1041408  }
   0x3   :  { %s8298_s26 = sld [smem:[#allocation14_spill]]  ;;  %s6424_s0 = smov 56   ;;  %vm4907_vm7 = vcmask 1042432   ;;  %vm5044_vm8 = vcmask 517120   ;;  %vm5090_vm9 = vcmask 523264   ;;  %vm2025_vm10 = vcmask 7168  }
   0x4   :  { %s8299_s20 = sld [smem:[#allocation15_spill]]  ;;  %8300 = vst [vmem:[#allocation2_spill] sm:$0xff] %v6550_v43  ;;  %v6553_v44 = vsub.s32 0, %v6550_v43  ;;  %v6562_v49 = vsub.s32 1, %v6550_v43  ;;  %s6425_s30 = smov 48   ;;  %vm5198_vm11 = vcmask 8192  }
   0x5   :  { %s8267_s18 = smov 112   ;;  %s8257_s3 = smov 88   ;;  %vm5210_vm12 = vcmask 15360   ;;  %vm5220_vm13 = vcmask 1043456   ;;  %vm5222_vm14 = vcmask 1044480   ;;  %vm5224_vm15 = vcmask 1045504  }
   0x6   :  { %v6559_v48 = vrot.slane %v57_v45, %v6553_v44  ;;  %v6566_v54 = vrot.slane %v57_v45, %v6562_v49  ;;  %s8259_s21 = smov 64   ;;  %s8255_s22 = smov 40  }
   0x7   :  { %s8265_s23 = smov 8   ;;  %s8263_s24 = smov 16  }
   0x8   :  { %s8261_s19 = smov 24   ;;  %s8319_s7 = smov 24  }
   0x9   :  { %v88_v0 = vld [vmem:[%s8298_s26] sm:$0xff]  ;;  %v90_v1 = vld [vmem:[%s8298_s26 + $0x10] sm:$0xff]  ;;  %v89_v2 = vld [vmem:[%s8298_s26 + $0x8] sm:$0xff] }
   0xa   :  { %v93_v3 = vsel %vm92_vm0, %v88_v0, 0.0  ;;  %v99_v4 = vsel %vm92_vm0, %v90_v1, 0.0  ;;  %v91_v5 = vld [vmem:[%s8298_s26 + $0x18] sm:$0xff]  ;;  %v96_v6 = vsel %vm92_vm0, %v89_v2, 0.0  ;;  %v6068_v28 = vld [vmem:[%s8299_s20 + $0x8] sm:$0xff]   ;;  %v6069_v29 = vld [vmem:[%s8299_s20] sm:$0xff]  }
   0xb   :  { %94 = vadd.xlane.f32.xlu0 %v93_v3  ;;  %100 = vadd.xlane.f32.xlu1 %v99_v4  ;;  %v102_v7 = vsel %vm92_vm0, %v91_v5, 0.0  ;;  %v8271_v3 = vmov 0.0   ;;  %s6420_s26 = smov 120  }
   0xc   :  { %5511 = vmatprep.subr.bf16.mxu0 %v6068_v28  ;;  %5519 = vmatprep.subr.bf16.mxu1 %v8271_v3 }
   0xd   :  { %5512 = vmatpush3.bf16.msra.mxu0 %v6068_v28  ;;  %5521 = vmatprep.mubr.msk.bf16.mxu1 %vm6418_vm1, %v8271_v3 }
   0xe   :  { %5513 = vmatprep.subr.bf16.mxu0 %v6069_v29 }
   0xf   :  { %97 = vadd.xlane.f32.xlu0 %v96_v6  ;;  %103 = vadd.xlane.f32.xlu1 %v102_v7 }
  0x11   :  { %5514 = vmatpush3.bf16.msra.mxu0 %v6069_v29 }
  0x12   :  { %5525 = vmatprep.subr.bf16.mxu0 %v8271_v3 }
  0x94   :  { %v95_v8 = vpop.xlane.xlu0 %94  ;;  %v101_v9 = vpop.xlane.xlu1 %100 }
  0x95   :  { %v106_v10 = vmul.f32 0.03125, %v95_v8  ;;  %v108_v11 = vmul.f32 0.03125, %v101_v9 }
  0x97   :  { %v110_v12 = vsub.f32 %v88_v0, %v106_v10  ;;  %v112_v13 = vsub.f32 %v90_v1, %v108_v11 }
  0x98   :  { %v98_v14 = vpop.xlane.xlu0 %97  ;;  %v104_v15 = vpop.xlane.xlu1 %103 }
  0x99   :  { %v107_v16 = vmul.f32 0.03125, %v98_v14  ;;  %v109_v17 = vmul.f32 0.03125, %v104_v15  ;;  %v114_v18 = vmul.f32 %v110_v12, %v110_v12  ;;  %v116_v19 = vmul.f32 %v112_v13, %v112_v13 }
  0x9b   :  { %v111_v20 = vsub.f32 %v89_v2, %v107_v16  ;;  %v113_v21 = vsub.f32 %v91_v5, %v109_v17  ;;  %v118_v22 = vsel %vm92_vm0, %v114_v18, 0.0  ;;  %v124_v23 = vsel %vm92_vm0, %v116_v19, 0.0 }
  0x9c   :  { %119 = vadd.xlane.f32.xlu0 %v118_v22  ;;  %v8270_v5 = vsub.s32 2, %v6550_v43 }
  0x9d   :  { %v115_v24 = vmul.f32 %v111_v20, %v111_v20  ;;  %v117_v25 = vmul.f32 %v113_v21, %v113_v21 }
  0x9e   :  { %v6598_v8 = vrot.slane %v57_v45, %v8270_v5 }
  0x9f   :  { %v121_v26 = vsel %vm92_vm0, %v115_v24, 0.0  ;;  %v127_v27 = vsel %vm92_vm0, %v117_v25, 0.0 }
  0xa0   :  { %125 = vadd.xlane.f32.xlu0 %v124_v23  ;;  %122 = vadd.xlane.f32.xlu1 %v121_v26 }
  0xa4   :  { %128 = vadd.xlane.f32.xlu1 %v127_v27 }
 0x125   :  { %v120_v30 = vpop.xlane.xlu0 %119 }
 0x126   :  { %v130_v31 = vmul.f32 0.03125, %v120_v30 }
 0x128   :  { %v134_v32 = vadd.f32 1e-12, %v130_v31 }
 0x129   :  { %v123_v33 = vpop.xlane.xlu1 %122  ;;  %v126_v34 = vpop.xlane.xlu0 %125 }
 0x12a   :  { %6096 = vrsqrt.f32 %v134_v32  ;;  %v131_v35 = vmul.f32 0.03125, %v123_v33  ;;  %v132_v36 = vmul.f32 0.03125, %v126_v34 }
 0x12c   :  { %v135_v37 = vadd.f32 1e-12, %v131_v35  ;;  %v136_v38 = vadd.f32 1e-12, %v132_v36 }
 0x12d   :  { %v129_v40 = vpop.xlane.xlu1 %128 }
 0x12e   :  { %6098 = vrsqrt.f32 %v135_v37  ;;  %v133_v41 = vmul.f32 0.03125, %v129_v40  ;;  %v6682_v40 = vrot.slane %v87_v39, %v6553_v44 }
 0x12f   :  { %6100 = vrsqrt.f32 %v136_v38 }
 0x130   :  { %v137_v42 = vadd.f32 1e-12, %v133_v41 }
 0x132   :  { %6102 = vrsqrt.f32 %v137_v42 }
 0x137   :  { %v6097_v46 = vpop.eup %6096 }
 0x138   :  { %v142_v47 = vmul.f32 %v6097_v46, %v110_v12 }
 0x13a   :  { %v150_v53 = vmul.f32 %v6559_v48, %v142_v47 }
 0x13b   :  { %v6099_v50 = vpop.eup %6098 }
 0x13c   :  { %v6101_v51 = vpop.eup %6100  ;;  %v143_v52 = vmul.f32 %v6099_v50, %v111_v20  ;;  %v6570_v58 = vadd.f32 %v6566_v54, %v150_v53 }
 0x13d   :  { %v144_v55 = vmul.f32 %v6101_v51, %v112_v13 }
 0x13e   :  { %v151_v56 = vmul.f32 %v6559_v48, %v143_v52 }
 0x13f   :  { %v6103_v57 = vpop.eup %6102  ;;  %v152_v61 = vmul.f32 %v6559_v48, %v144_v55 }
 0x140   :  { %v6573_v59 = vadd.f32 %v6566_v54, %v151_v56  ;;  %v145_v60 = vmul.f32 %v6103_v57, %v113_v21 }
 0x141   :  { %v6581_v0 = vadd.f32 %v6566_v54, %v152_v61 }
 0x142   :  { %v162_v62 = vpack.c.bf16 %v6573_v59, %v6570_v58  ;;  %v153_v63 = vmul.f32 %v6559_v48, %v145_v60 }
 0x144   :  { %5515 = vmatprep.mubr.msk.bf16.mxu0 %vm92_vm0, %v162_v62  ;;  %v6584_v1 = vadd.f32 %v6566_v54, %v153_v63 }
 0x146   :  { %v163_v2 = vpack.c.bf16 %v6584_v1, %v6581_v0 }
 0x148   :  { %5516 = vmatmul.mubr.msk.bf16.vlgmr.msra.gmra.mxu0 %vm92_vm0, %v163_v2 }
 0x149   :  { %5527 = vmatprep.mubr.msk.bf16.mxu0 %vm6418_vm1, %v8271_v3 }
 0x208   :  { %v5517_v4 = vpop.f32.mrf.mxu0 }
 0x209   :  { %v229_v14 = vadd.f32 %v5517_v4, %v6598_v8 }
 0x20a   :  { %v220_v6 = vpop.f32.mrf.mxu0 }
 0x20b   :  { %v221_v10 = vadd.f32 %v220_v6, %v6598_v8 }
 0x20c   :  { %v5518_v7 = vpop.f32.mrf.mxu0 }
 0x20d   :  { %v232_v13 = vadd.f32 %v5518_v7, %v6598_v8 }
 0x20e   :  { %v223_v9 = vpop.f32.mrf.mxu0 }
 0x20f   :  { %v224_v11 = vadd.f32 %v223_v9, %v6598_v8  ;;  %v6618_v15 = vpack.c.bf16 %v232_v13, %v229_v14 }
 0x211   :  { %v6602_v12 = vpack.c.bf16 %v224_v11, %v221_v10 }
 0x213   :  { %368 = vrot.lane.b32.xlu1 %v6602_v12, %s6419_s25  ;;  %237 = vrot.lane.b32.xlu0 %v6602_v12, %s6420_s26 }
 0x217   :  { %366 = vrot.lane.b32.xlu1 %v6602_v12, %s6421_s27  ;;  %491 = vrot.lane.b32.xlu0 %v6602_v12, %s6422_s28 }
 0x21b   :  { %493 = vrot.lane.b32.xlu1 %v6602_v12, %s6423_s29  ;;  %616 = vrot.lane.b32.xlu0 %v6602_v12, %s6424_s0 }
 0x21f   :  { %618 = vrot.lane.b32.xlu1 %v6602_v12, %s6425_s30  ;;  %903 = vrot.lane.b32.xlu0 %v6618_v15, %s6419_s25 }
 0x223   :  { %774 = vrot.lane.b32.xlu1 %v6618_v15, %s6420_s26  ;;  %1028 = vrot.lane.b32.xlu0 %v6618_v15, %s6423_s29 }
 0x227   :  { %901 = vrot.lane.b32.xlu1 %v6618_v15, %s6421_s27  ;;  %1153 = vrot.lane.b32.xlu0 %v6618_v15, %s6425_s30 }
 0x22b   :  { %1026 = vrot.lane.b32.xlu1 %v6618_v15, %s6422_s28  ;;  %319 = vrot.lane.b32.xlu0 %v6602_v12, %s8267_s18 }
 0x22f   :  { %1151 = vrot.lane.b32.xlu1 %v6618_v15, %s6424_s0 }
 0x285   :  { %v238_v16 = vpop.permute.xlu0 %237  ;;  %v369_v18 = vpop.permute.xlu1 %368 }
 0x286   :  { %v244_v17 = vsel %vm239_vm2, %v238_v16, 0  ;;  %v374_v22 = vsel %vm239_vm2, %v369_v18, 0 }
 0x287   :  { %5520 = vmatpush3.bf16.xpose.msra.mxu1 %v244_v17 }
 0x288   :  { %5531 = vmatprep.subr.bf16.mxu1 %v8271_v3 }
 0x289   :  { %v492_v19 = vpop.permute.xlu0 %491  ;;  %v367_v20 = vpop.permute.xlu1 %366 }
 0x28d   :  { %v617_v21 = vpop.permute.xlu0 %616  ;;  %v494_v24 = vpop.permute.xlu1 %493 }
 0x28e   :  { %5522 = vmatmul.mubr.msk.bf16.vlgmr.msra.gmra.mxu1 %vm239_vm2, %v6602_v12  ;;  %v499_v26 = vsel %vm239_vm2, %v494_v24, 0 }
 0x28f   :  { %5532 = vmatpush3.bf16.xpose.msra.mxu1 %v374_v22  ;;  %5533 = vmatprep.mubr.msk.bf16.mxu1 %vm6418_vm1, %v8271_v3 }
 0x290   :  { %5543 = vmatprep.subr.bf16.mxu1 %v8271_v3 }
 0x291   :  { %v904_v23 = vpop.permute.xlu0 %903  ;;  %v619_v28 = vpop.permute.xlu1 %618 }
 0x292   :  { %v624_v30 = vsel %vm239_vm2, %v619_v28, 0  ;;  %v909_v33 = vsel %vm239_vm2, %v904_v23, 0 }
 0x295   :  { %v1029_v25 = vpop.permute.xlu0 %1028  ;;  %v775_v31 = vpop.permute.xlu1 %774 }
 0x296   :  { %5534 = vmatmul.mubr.msk.bf16.vlgmr.msra.gmra.mxu1 %vm239_vm2, %v367_v20  ;;  %v780_v32 = vsel %vm239_vm2, %v775_v31, 0  ;;  %v1034_v35 = vsel %vm239_vm2, %v1029_v25, 0  ;;  %v6717_v25 = vrot.slane %v87_v39, %v6562_v49 }
 0x297   :  { %5544 = vmatpush3.bf16.xpose.msra.mxu1 %v499_v26  ;;  %5545 = vmatprep.mubr.msk.bf16.mxu1 %vm6418_vm1, %v8271_v3 }
 0x298   :  { %5555 = vmatprep.subr.bf16.mxu1 %v8271_v3 }
 0x299   :  { %v1154_v27 = vpop.permute.xlu0 %1153  ;;  %v902_v34 = vpop.permute.xlu1 %901 }
 0x29a   :  { %v1159_v37 = vsel %vm239_vm2, %v1154_v27, 0 }
 0x29d   :  { %v320_v29 = vpop.permute.xlu0 %319  ;;  %v1027_v36 = vpop.permute.xlu1 %1026 }
 0x29e   :  { %5526 = vmatpush3.bf16.msra.mxu0 %v320_v29  ;;  %5546 = vmatmul.mubr.msk.bf16.vlgmr.msra.gmra.mxu1 %vm239_vm2, %v492_v19 }
 0x29f   :  { %5556 = vmatpush3.bf16.xpose.msra.mxu1 %v624_v30  ;;  %5557 = vmatprep.mubr.msk.bf16.mxu1 %vm6418_vm1, %v8271_v3 }
 0x2a0   :  { %5567 = vmatprep.subr.bf16.mxu1 %v8271_v3  ;;  %5537 = vmatprep.subr.bf16.mxu0 %v8271_v3 }
 0x2a1   :  { %v1152_v38 = vpop.permute.xlu1 %1151 }
 0x2a6   :  { %5558 = vmatmul.mubr.msk.bf16.vlgmr.msra.gmra.mxu1 %vm239_vm2, %v617_v21 }
 0x2a7   :  { %5568 = vmatpush3.bf16.xpose.msra.mxu1 %v780_v32  ;;  %5569 = vmatprep.mubr.msk.bf16.mxu1 %vm6418_vm1, %v8271_v3 }
 0x2a8   :  { %5579 = vmatprep.subr.bf16.mxu1 %v8271_v3 }
 0x2ae   :  { %5570 = vmatmul.mubr.msk.bf16.vlgmr.msra.gmra.mxu1 %vm239_vm2, %v6618_v15 }
 0x2af   :  { %5580 = vmatpush3.bf16.xpose.msra.mxu1 %v909_v33  ;;  %5581 = vmatprep.mubr.msk.bf16.mxu1 %vm6418_vm1, %v8271_v3 }
 0x2b0   :  { %5591 = vmatprep.subr.bf16.mxu1 %v8271_v3 }
 0x2b6   :  { %5582 = vmatmul.mubr.msk.bf16.vlgmr.msra.gmra.mxu1 %vm239_vm2, %v902_v34 }
 0x2b7   :  { %5592 = vmatpush3.bf16.xpose.msra.mxu1 %v1034_v35  ;;  %5593 = vmatprep.mubr.msk.bf16.mxu1 %vm6418_vm1, %v8271_v3 }
 0x2b8   :  { %5603 = vmatprep.subr.bf16.mxu1 %v8271_v3 }
 0x2be   :  { %5594 = vmatmul.mubr.msk.bf16.vlgmr.msra.gmra.mxu1 %vm239_vm2, %v1027_v36 }
 0x2bf   :  { %5604 = vmatpush3.bf16.xpose.msra.mxu1 %v1159_v37  ;;  %5605 = vmatprep.mubr.msk.bf16.mxu1 %vm6418_vm1, %v8271_v3 }
 0x2c6   :  { %5606 = vmatmul.mubr.msk.bf16.vlgmr.msra.gmra.mxu1 %vm239_vm2, %v1152_v38 }
 0x34e   :  { %v280_v41 = vpop.f32.mrf.mxu1 }
 0x34f   :  { %v287_v42 = vmul.f32 0.35355338, %v280_v41 }
 0x350   :  { %v5523_v45 = vpop.f32.mrf.mxu1 }
 0x351   :  { %v6685_v46 = vadd.f32 %v6682_v40, %v287_v42 }
 0x352   :  { %v283_v47 = vpop.f32.mrf.mxu1 }
 0x353   :  { %v288_v50 = vmul.f32 0.35355338, %v283_v47  ;;  %v296_v51 = vsel %vm295_vm3, %v6685_v46, -inf }
 0x354   :  { %297 = vmax.xlane.f32.xlu0 %v296_v51  ;;  %v5524_v52 = vpop.f32.mrf.mxu1 }
 0x355   :  { %v6690_v53 = vadd.f32 %v6682_v40, %v288_v50 }
 0x356   :  { %v410_v55 = vpop.f32.mrf.mxu1 }
 0x357   :  { %v417_v56 = vmul.f32 0.35355338, %v410_v55  ;;  %v299_v57 = vsel %vm295_vm3, %v6690_v53, -inf }
 0x358   :  { %300 = vmax.xlane.f32.xlu1 %v299_v57  ;;  %v5535_v60 = vpop.f32.mrf.mxu1 }
 0x359   :  { %v6695_v61 = vadd.f32 %v417_v56, %v6682_v40 }
 0x35a   :  { %v413_v62 = vpop.f32.mrf.mxu1 }
 0x35b   :  { %v418_v63 = vmul.f32 0.35355338, %v413_v62  ;;  %v421_v2 = vsel %vm295_vm3, %v6695_v61, -inf }
 0x35c   :  { %422 = vmax.xlane.f32.xlu0 %v421_v2  ;;  %v5536_v4 = vpop.f32.mrf.mxu1 }
 0x35d   :  { %v6700_v6 = vadd.f32 %v418_v63, %v6682_v40 }
 0x35e   :  { %v535_v7 = vpop.f32.mrf.mxu1 }
 0x35f   :  { %v542_v9 = vmul.f32 0.35355338, %v535_v7  ;;  %v424_v10 = vsel %vm295_vm3, %v6700_v6, -inf }
 0x360   :  { %425 = vmax.xlane.f32.xlu0 %v424_v10  ;;  %v5547_v11 = vpop.f32.mrf.mxu1 }
 0x361   :  { %v6705_v13 = vadd.f32 %v542_v9, %v6682_v40 }
 0x362   :  { %v538_v14 = vpop.f32.mrf.mxu1 }
 0x363   :  { %v546_v16 = vsel %vm295_vm3, %v6705_v13, -inf  ;;  %v543_v52 = vmul.f32 0.35355338, %v538_v14 }
 0x364   :  { %547 = vmax.xlane.f32.xlu0 %v546_v16  ;;  %v5548_v17 = vpop.f32.mrf.mxu1 }
 0x365   :  { %v6735_v63 = vadd.f32 %v543_v52, %v6682_v40 }
 0x366   :  { %v660_v18 = vpop.f32.mrf.mxu1 }
 0x367   :  { %v667_v19 = vmul.f32 0.35355338, %v660_v18  ;;  %v549_v11 = vsel %vm295_vm3, %v6735_v63, -inf }
 0x368   :  { %v5559_v20 = vpop.f32.mrf.mxu1 }
 0x369   :  { %444 = vrot.lane.b32.xlu1 %v6602_v12, %s8257_s3  ;;  %v6712_v21 = vadd.f32 %v667_v19, %v6682_v40 }
 0x36a   :  { %v663_v22 = vpop.f32.mrf.mxu1 }
 0x36b   :  { %v671_v23 = vsel %vm295_vm3, %v6712_v21, -inf  ;;  %v668_v60 = vmul.f32 0.35355338, %v663_v22 }
 0x36c   :  { %672 = vmax.xlane.f32.xlu0 %v671_v23  ;;  %v5560_v24 = vpop.f32.mrf.mxu1 }
 0x36d   :  { %v6745_v14 = vadd.f32 %v668_v60, %v6682_v40 }
 0x36e   :  { %v816_v26 = vpop.f32.mrf.mxu1 }
 0x36f   :  { %v823_v27 = vmul.f32 0.35355338, %v816_v26  ;;  %v674_v17 = vsel %vm295_vm3, %v6745_v14, -inf }
 0x370   :  { %v5571_v28 = vpop.f32.mrf.mxu1 }
 0x371   :  { %v6720_v29 = vadd.f32 %v6717_v25, %v823_v27 }
 0x372   :  { %v819_v30 = vpop.f32.mrf.mxu1 }
 0x373   :  { %v831_v31 = vsel %vm295_vm3, %v6720_v29, -inf  ;;  %v824_v9 = vmul.f32 0.35355338, %v819_v30 }
 0x374   :  { %832 = vmax.xlane.f32.xlu0 %v831_v31  ;;  %v5572_v32 = vpop.f32.mrf.mxu1 }
 0x375   :  { %v6750_v18 = vadd.f32 %v6717_v25, %v824_v9 }
 0x376   :  { %v945_v33 = vpop.f32.mrf.mxu1 }
 0x377   :  { %v952_v34 = vmul.f32 0.35355338, %v945_v33  ;;  %v834_v20 = vsel %vm295_vm3, %v6750_v18, -inf }
 0x378   :  { %v5583_v35 = vpop.f32.mrf.mxu1 }
 0x379   :  { %v6725_v36 = vadd.f32 %v952_v34, %v6717_v25 }
 0x37a   :  { %v948_v37 = vpop.f32.mrf.mxu1 }
 0x37b   :  { %v956_v38 = vsel %vm295_vm3, %v6725_v36, -inf  ;;  %v953_v16 = vmul.f32 0.35355338, %v948_v37 }
 0x37c   :  { %957 = vmax.xlane.f32.xlu0 %v956_v38  ;;  %v5584_v39 = vpop.f32.mrf.mxu1 }
 0x37d   :  { %v6755_v22 = vadd.f32 %v953_v16, %v6717_v25 }
 0x37e   :  { %v1070_v41 = vpop.f32.mrf.mxu1 }
 0x37f   :  { %v1077_v42 = vmul.f32 0.35355338, %v1070_v41  ;;  %v959_v24 = vsel %vm295_vm3, %v6755_v22, -inf }
 0x380   :  { %v5595_v45 = vpop.f32.mrf.mxu1 }
 0x381   :  { %v6730_v47 = vadd.f32 %v1077_v42, %v6717_v25 }
 0x382   :  { %v1073_v50 = vpop.f32.mrf.mxu1 }
 0x383   :  { %v1081_v51 = vsel %vm295_vm3, %v6730_v47, -inf  ;;  %v1078_v19 = vmul.f32 0.35355338, %v1073_v50 }
 0x384   :  { %1082 = vmax.xlane.f32.xlu0 %v1081_v51  ;;  %v5596_v55 = vpop.f32.mrf.mxu1 }
 0x385   :  { %v6760_v26 = vadd.f32 %v1078_v19, %v6717_v25 }
 0x386   :  { %v1195_v56 = vpop.f32.mrf.mxu1 }
 0x387   :  { %v1202_v57 = vmul.f32 0.35355338, %v1195_v56  ;;  %v1084_v27 = vsel %vm295_vm3, %v6760_v26, -inf }
 0x388   :  { %v5607_v62 = vpop.f32.mrf.mxu1 }
 0x389   :  { %v6738_v2 = vadd.f32 %v1202_v57, %v6717_v25 }
 0x38a   :  { %v1198_v4 = vpop.f32.mrf.mxu1 }
 0x38b   :  { %v1206_v7 = vsel %vm295_vm3, %v6738_v2, -inf  ;;  %v1203_v23 = vmul.f32 0.35355338, %v1198_v4 }
 0x38c   :  { %1207 = vmax.xlane.f32.xlu0 %v1206_v7  ;;  %v5608_v10 = vpop.f32.mrf.mxu1 }
 0x38d   :  { %550 = vmax.xlane.f32.xlu1 %v549_v11  ;;  %v6765_v28 = vadd.f32 %v1203_v23, %v6717_v25 }
 0x38f   :  { %v1209_v30 = vsel %vm295_vm3, %v6765_v28, -inf }
 0x391   :  { %675 = vmax.xlane.f32.xlu1 %v674_v17 }
 0x395   :  { %835 = vmax.xlane.f32.xlu1 %v834_v20 }
 0x399   :  { %960 = vmax.xlane.f32.xlu1 %v959_v24 }
 0x39d   :  { %1085 = vmax.xlane.f32.xlu1 %v1084_v27 }
 0x3a1   :  { %1210 = vmax.xlane.f32.xlu1 %v1209_v30 }
 0x3a2   :  { %569 = vrot.lane.b32.xlu0 %v6602_v12, %s8259_s21 }
 0x3b2   :  { %694 = vrot.lane.b32.xlu1 %v6602_v12, %s8255_s22 }
 0x3dd   :  { %v298_v31 = vpop.xlane.xlu0 %297 }
 0x3de   :  { %v302_v32 = vsub.f32 %v6685_v46, %v298_v31 }
 0x3e0   :  { %v304_v33 = vmul.f32 1.442695, %v302_v32 }
 0x3e1   :  { %v301_v34 = vpop.xlane.xlu1 %300 }
 0x3e2   :  { %6104 = vpow2.f32 %v304_v33  ;;  %v303_v35 = vsub.f32 %v6690_v53, %v301_v34 }
 0x3e4   :  { %v306_v37 = vmul.f32 1.442695, %v303_v35 }
 0x3e5   :  { %v423_v38 = vpop.xlane.xlu0 %422  ;;  %v6803_v11 = vpop.permute.xlu1 %444 }
 0x3e6   :  { %6106 = vpow2.f32 %v306_v37  ;;  %v427_v39 = vsub.f32 %v6695_v61, %v423_v38 }
 0x3e8   :  { %v429_v41 = vmul.f32 1.442695, %v427_v39 }
 0x3e9   :  { %v426_v42 = vpop.xlane.xlu0 %425 }
 0x3ea   :  { %6108 = vpow2.f32 %v429_v41  ;;  %v428_v45 = vsub.f32 %v6700_v6, %v426_v42 }
 0x3ec   :  { %v431_v50 = vmul.f32 1.442695, %v428_v45 }
 0x3ed   :  { %v548_v12 = vpop.xlane.xlu0 %547 }
 0x3ee   :  { %6110 = vpow2.f32 %v431_v50  ;;  %v552_v46 = vsub.f32 %v6705_v13, %v548_v12 }
 0x3ef   :  { %v6778_v51 = vpop.eup %6104 }
 0x3f0   :  { %v554_v52 = vmul.f32 1.442695, %v552_v46  ;;  %v308_v53 = vsel %vm295_vm3, %v6778_v51, 0.0 }
 0x3f1   :  { %309 = vadd.xlane.f32.xlu0 %v308_v53 }
 0x3f2   :  { %6112 = vpow2.f32 %v554_v52 }
 0x3f3   :  { %v6782_v55 = vpop.eup %6106 }
 0x3f4   :  { %v311_v61 = vsel %vm295_vm3, %v6782_v55, 0.0 }
 0x3f5   :  { %312 = vadd.xlane.f32.xlu1 %v311_v61  ;;  %v673_v6 = vpop.xlane.xlu0 %672 }
 0x3f6   :  { %v677_v56 = vsub.f32 %v6712_v21, %v673_v6 }
 0x3f7   :  { %v6787_v57 = vpop.eup %6108 }
 0x3f8   :  { %v679_v13 = vmul.f32 1.442695, %v677_v56  ;;  %v433_v60 = vsel %vm295_vm3, %v6787_v57, 0.0 }
 0x3f9   :  { %434 = vadd.xlane.f32.xlu0 %v433_v60 }
 0x3fa   :  { %6114 = vpow2.f32 %v679_v13 }
 0x3fb   :  { %v6791_v62 = vpop.eup %6110 }
 0x3fc   :  { %v436_v4 = vsel %vm295_vm3, %v6791_v62, 0.0 }
 0x3fd   :  { %437 = vadd.xlane.f32.xlu1 %v436_v4  ;;  %v833_v16 = vpop.xlane.xlu0 %832 }
 0x3fe   :  { %v837_v20 = vsub.f32 %v6720_v29, %v833_v16 }
 0x3ff   :  { %v6795_v7 = vpop.eup %6112 }
 0x400   :  { %v558_v9 = vsel %vm295_vm3, %v6795_v7, 0.0  ;;  %v839_v30 = vmul.f32 1.442695, %v837_v20 }
 0x401   :  { %559 = vadd.xlane.f32.xlu0 %v558_v9 }
 0x405   :  { %v958_v31 = vpop.xlane.xlu0 %957 }
 0x406   :  { %v962_v38 = vsub.f32 %v6725_v36, %v958_v31 }
 0x407   :  { %v6799_v21 = vpop.eup %6114 }
 0x408   :  { %v683_v10 = vsel %vm295_vm3, %v6799_v21, 0.0 }
 0x409   :  { %684 = vadd.xlane.f32.xlu0 %v683_v10 }
 0x40d   :  { %v1083_v35 = vpop.xlane.xlu0 %1082 }
 0x415   :  { %v1208_v39 = vpop.xlane.xlu0 %1207 }
 0x416   :  { %v551_v17 = vpop.xlane.xlu1 %550  ;;  %v1212_v50 = vsub.f32 %v6738_v2, %v1208_v39 }
 0x417   :  { %v553_v19 = vsub.f32 %v6735_v63, %v551_v17 }
 0x419   :  { %v556_v23 = vmul.f32 1.442695, %v553_v19  ;;  %v570_v31 = vpop.permute.xlu0 %569 }
 0x41a   :  { %v676_v24 = vpop.xlane.xlu1 %675 }
 0x41b   :  { %6116 = vpow2.f32 %v556_v23  ;;  %v678_v27 = vsub.f32 %v6745_v14, %v676_v24  ;;  %v1087_v14 = vsub.f32 %v6730_v47, %v1083_v35  ;;  %v1214_v47 = vmul.f32 1.442695, %v1212_v50 }
 0x41d   :  { %v681_v32 = vmul.f32 1.442695, %v678_v27  ;;  %v1089_v12 = vmul.f32 1.442695, %v1087_v14 }
 0x41e   :  { %v836_v33 = vpop.xlane.xlu1 %835 }
 0x41f   :  { %6118 = vpow2.f32 %v681_v32  ;;  %v838_v34 = vsub.f32 %v6750_v18, %v836_v33  ;;  %854 = vrot.lane.b32.xlu0 %v6618_v15, %s8267_s18  ;;  %v964_v18 = vmul.f32 1.442695, %v962_v38 }
 0x420   :  { %6120 = vpow2.f32 %v839_v30 }
 0x421   :  { %v841_v63 = vmul.f32 1.442695, %v838_v34 }
 0x422   :  { %v961_v37 = vpop.xlane.xlu1 %960 }
 0x423   :  { %v963_v29 = vsub.f32 %v6755_v22, %v961_v37  ;;  %6122 = vpow2.f32 %v841_v63 }
 0x425   :  { %v966_v41 = vmul.f32 1.442695, %v963_v29 }
 0x426   :  { %v1086_v42 = vpop.xlane.xlu1 %1085 }
 0x427   :  { %6124 = vpow2.f32 %v966_v41  ;;  %v1088_v46 = vsub.f32 %v6760_v26, %v1086_v42 }
 0x428   :  { %v6814_v45 = vpop.eup %6116  ;;  %6126 = vpow2.f32 %v964_v18 }
 0x429   :  { %v561_v22 = vsel %vm295_vm3, %v6814_v45, 0.0  ;;  %6128 = vpow2.f32 %v1089_v12  ;;  %v1091_v53 = vmul.f32 1.442695, %v1088_v46 }
 0x42a   :  { %v1211_v52 = vpop.xlane.xlu1 %1210  ;;  %562 = vadd.xlane.f32.xlu1 %v561_v22  ;;  %6130 = vpow2.f32 %v1214_v47 }
 0x42b   :  { %v1213_v61 = vsub.f32 %v6765_v28, %v1211_v52  ;;  %6132 = vpow2.f32 %v1091_v53 }
 0x42c   :  { %v6820_v36 = vpop.eup %6118 }
 0x42d   :  { %v686_v2 = vsel %vm295_vm3, %v6820_v36, 0.0  ;;  %v6825_v6 = vpop.eup %6120  ;;  %v1216_v26 = vmul.f32 1.442695, %v1213_v61 }
 0x42e   :  { %687 = vadd.xlane.f32.xlu1 %v686_v2  ;;  %v843_v56 = vsel %vm295_vm3, %v6825_v6, 0.0  ;;  %v695_v32 = vpop.permute.xlu1 %694 }
 0x42f   :  { %6134 = vpow2.f32 %v1216_v26 }
 0x430   :  { %v6829_v13 = vpop.eup %6122 }
 0x431   :  { %v846_v60 = vsel %vm295_vm3, %v6829_v13, 0.0 }
 0x432   :  { %844 = vadd.xlane.f32.xlu1 %v843_v56 }
 0x434   :  { %v6833_v28 = vpop.eup %6124 }
 0x435   :  { %v6835_v4 = vpop.eup %6126  ;;  %v971_v9 = vsel %vm295_vm3, %v6833_v28, 0.0 }
 0x436   :  { %847 = vadd.xlane.f32.xlu1 %v846_v60  ;;  %v6839_v10 = vpop.eup %6128  ;;  %v968_v17 = vsel %vm295_vm3, %v6835_v4, 0.0 }
 0x437   :  { %v6841_v16 = vpop.eup %6130  ;;  %v1093_v19 = vsel %vm295_vm3, %v6839_v10, 0.0 }
 0x438   :  { %v6847_v20 = vpop.eup %6132  ;;  %v1218_v24 = vsel %vm295_vm3, %v6841_v16, 0.0 }
 0x439   :  { %v1096_v23 = vsel %vm295_vm3, %v6847_v20, 0.0 }
 0x43a   :  { %972 = vadd.xlane.f32.xlu1 %v971_v9 }
 0x43c   :  { %v6853_v27 = vpop.eup %6134 }
 0x43d   :  { %v1221_v30 = vsel %vm295_vm3, %v6853_v27, 0.0 }
 0x43e   :  { %969 = vadd.xlane.f32.xlu0 %v968_v17  ;;  %1094 = vadd.xlane.f32.xlu1 %v1093_v19 }
 0x442   :  { %1097 = vadd.xlane.f32.xlu1 %v1096_v23  ;;  %1219 = vadd.xlane.f32.xlu0 %v1218_v24 }
 0x446   :  { %1222 = vadd.xlane.f32.xlu1 %v1221_v30 }
 0x457   :  { %979 = vrot.lane.b32.xlu1 %v6618_v15, %s8257_s3 }
 0x458   :  { %1104 = vrot.lane.b32.xlu0 %v6618_v15, %s8259_s21 }
 0x45c   :  { %1229 = vrot.lane.b32.xlu0 %v6618_v15, %s8255_s22  ;;  %s8317_s22 = smov 8  }
 0x47a   :  { %v310_v33 = vpop.xlane.xlu0 %309 }
 0x47b   :  { %6136 = vrcp.f32 %v310_v33 }
 0x47e   :  { %v313_v34 = vpop.xlane.xlu1 %312 }
 0x47f   :  { %6138 = vrcp.f32 %v313_v34 }
 0x482   :  { %v435_v35 = vpop.xlane.xlu0 %434 }
 0x483   :  { %6140 = vrcp.f32 %v435_v35 }
 0x486   :  { %v438_v63 = vpop.xlane.xlu1 %437 }
 0x487   :  { %6142 = vrcp.f32 %v438_v63 }
 0x488   :  { %v6137_v37 = vpop.eup %6136 }
 0x489   :  { %v316_v38 = vmul.f32 %v6137_v37, %v6778_v51 }
 0x48a   :  { %v560_v51 = vpop.xlane.xlu0 %559 }
 0x48b   :  { %6144 = vrcp.f32 %v560_v51 }
 0x48c   :  { %v6139_v29 = vpop.eup %6138 }
 0x48d   :  { %v317_v14 = vmul.f32 %v6139_v29, %v6782_v55 }
 0x48f   :  { %v318_v39 = vpack.c.bf16 %v317_v14, %v316_v38 }
 0x490   :  { %v6141_v15 = vpop.eup %6140 }
 0x491   :  { %5528 = vmatmul.mubr.msk.bf16.vlgmr.msra.gmra.mxu0 %vm295_vm3, %v318_v39  ;;  %v441_v42 = vmul.f32 %v6141_v15, %v6787_v57 }
 0x492   :  { %5538 = vmatpush3.bf16.msra.mxu0 %v6803_v11  ;;  %5539 = vmatprep.mubr.msk.bf16.mxu0 %vm6418_vm1, %v8271_v3  ;;  %v685_v11 = vpop.xlane.xlu0 %684 }
 0x493   :  { %5549 = vmatprep.subr.bf16.mxu0 %v8271_v3 }
 0x494   :  { %v6143_v41 = vpop.eup %6142 }
 0x495   :  { %v442_v18 = vmul.f32 %v6143_v41, %v6791_v62 }
 0x496   :  { %v855_v53 = vpop.permute.xlu0 %854 }
 0x497   :  { %v443_v50 = vpack.c.bf16 %v442_v18, %v441_v42 }
 0x498   :  { %v6145_v46 = vpop.eup %6144 }
 0x499   :  { %5540 = vmatmul.mubr.msk.bf16.vlgmr.msra.gmra.mxu0 %vm295_vm3, %v443_v50  ;;  %v566_v52 = vmul.f32 %v6145_v46, %v6795_v7 }
 0x49a   :  { %5550 = vmatpush3.bf16.msra.mxu0 %v570_v31  ;;  %5551 = vmatprep.mubr.msk.bf16.mxu0 %vm6418_vm1, %v8271_v3 }
 0x49b   :  { %5561 = vmatprep.subr.bf16.mxu0 %v8271_v3 }
 0x4b3   :  { %v563_v55 = vpop.xlane.xlu1 %562 }
 0x4b4   :  { %6146 = vrcp.f32 %v563_v55 }
 0x4b7   :  { %v688_v12 = vpop.xlane.xlu1 %687 }
 0x4b8   :  { %6148 = vrcp.f32 %v688_v12 }
 0x4b9   :  { %6150 = vrcp.f32 %v685_v11 }
 0x4bb   :  { %v845_v57 = vpop.xlane.xlu1 %844 }
 0x4bf   :  { %v848_v62 = vpop.xlane.xlu1 %847 }
 0x4c0   :  { %6152 = vrcp.f32 %v848_v62 }
 0x4c1   :  { %v6147_v22 = vpop.eup %6146  ;;  %6154 = vrcp.f32 %v845_v57 }
 0x4c2   :  { %v567_v47 = vmul.f32 %v6147_v22, %v6814_v45 }
 0x4c3   :  { %v973_v61 = vpop.xlane.xlu1 %972 }
 0x4c4   :  { %v568_v2 = vpack.c.bf16 %v567_v47, %v566_v52 }
 0x4c5   :  { %v6149_v26 = vpop.eup %6148 }
 0x4c6   :  { %5552 = vmatmul.mubr.msk.bf16.vlgmr.msra.gmra.mxu0 %vm295_vm3, %v568_v2  ;;  %v6151_v56 = vpop.eup %6150  ;;  %v692_v17 = vmul.f32 %v6149_v26, %v6820_v36 }
 0x4c7   :  { %5562 = vmatpush3.bf16.msra.mxu0 %v695_v32  ;;  %v1095_v60 = vpop.xlane.xlu1 %1094  ;;  %v970_v9 = vpop.xlane.xlu0 %969  ;;  %5563 = vmatprep.mubr.msk.bf16.mxu0 %vm6418_vm1, %v8271_v3  ;;  %v691_v7 = vmul.f32 %v6151_v56, %v6799_v21 }
 0x4c8   :  { %5573 = vmatprep.subr.bf16.mxu0 %v8271_v3  ;;  %6156 = vrcp.f32 %v970_v9 }
 0x4c9   :  { %6158 = vrcp.f32 %v973_v61  ;;  %v693_v19 = vpack.c.bf16 %v692_v17, %v691_v7 }
 0x4cb   :  { %v1098_v45 = vpop.xlane.xlu1 %1097  ;;  %v1220_v35 = vpop.xlane.xlu0 %1219 }
 0x4cc   :  { %6160 = vrcp.f32 %v1098_v45 }
 0x4cd   :  { %v6153_v23 = vpop.eup %6152  ;;  %6162 = vrcp.f32 %v1095_v60 }
 0x4ce   :  { %5564 = vmatmul.mubr.msk.bf16.vlgmr.msra.gmra.mxu0 %vm295_vm3, %v693_v19  ;;  %v6155_v24 = vpop.eup %6154  ;;  %v852_v36 = vmul.f32 %v6153_v23, %v6829_v13 }
 0x4cf   :  { %5574 = vmatpush3.bf16.msra.mxu0 %v855_v53  ;;  %5575 = vmatprep.mubr.msk.bf16.mxu0 %vm6418_vm1, %v8271_v3  ;;  %v1223_v30 = vpop.xlane.xlu1 %1222  ;;  %v851_v31 = vmul.f32 %v6155_v24, %v6825_v6  ;;  %v1105_v29 = vpop.permute.xlu0 %1104 }
 0x4d0   :  { %5585 = vmatprep.subr.bf16.mxu0 %v8271_v3  ;;  %6164 = vrcp.f32 %v1223_v30  ;;  %v6070_v30 = vld [vmem:[%s8239_s8 + $0x8] sm:$0xff]  }
 0x4d1   :  { %v853_v21 = vpack.c.bf16 %v852_v36, %v851_v31  ;;  %6166 = vrcp.f32 %v1220_v35  ;;  %5615 = vmatprep.subr.bf16.mxu1 %v6070_v30 }
 0x4d2   :  { %5616 = vmatpush3.bf16.msra.mxu1 %v6070_v30 }
 0x4d3   :  { %v980_v33 = vpop.permute.xlu1 %979  ;;  %v1230_v41 = vpop.permute.xlu0 %1229 }
 0x4d5   :  { %v6157_v32 = vpop.eup %6156 }
 0x4d6   :  { %5576 = vmatmul.mubr.msk.bf16.vlgmr.msra.gmra.mxu0 %vm295_vm3, %v853_v21  ;;  %v6159_v34 = vpop.eup %6158  ;;  %v976_v63 = vmul.f32 %v6157_v32, %v6835_v4  ;;  %v6071_v32 = vld [vmem:[%s8239_s8] sm:$0xff]  }
 0x4d7   :  { %5586 = vmatpush3.bf16.msra.mxu0 %v980_v33  ;;  %5587 = vmatprep.mubr.msk.bf16.mxu0 %vm6418_vm1, %v8271_v3  ;;  %v977_v13 = vmul.f32 %v6159_v34, %v6833_v28 }
 0x4d8   :  { %5597 = vmatprep.subr.bf16.mxu0 %v8271_v3  ;;  %5617 = vmatprep.subr.bf16.mxu1 %v6071_v32 }
 0x4d9   :  { %v978_v6 = vpack.c.bf16 %v977_v13, %v976_v63  ;;  %v6161_v37 = vpop.eup %6160  ;;  %5618 = vmatpush3.bf16.msra.mxu1 %v6071_v32 }
 0x4da   :  { %v6163_v38 = vpop.eup %6162  ;;  %v1102_v14 = vmul.f32 %v6161_v37, %v6847_v20 }
 0x4db   :  { %v1101_v39 = vmul.f32 %v6163_v38, %v6839_v10 }
 0x4dd   :  { %v1103_v4 = vpack.c.bf16 %v1102_v14, %v1101_v39  ;;  %v6165_v15 = vpop.eup %6164 }
 0x4de   :  { %5588 = vmatmul.mubr.msk.bf16.vlgmr.msra.gmra.mxu0 %vm295_vm3, %v978_v6  ;;  %v6167_v28 = vpop.eup %6166  ;;  %v1227_v42 = vmul.f32 %v6165_v15, %v6853_v27 }
 0x4df   :  { %5598 = vmatpush3.bf16.msra.mxu0 %v1105_v29  ;;  %5599 = vmatprep.mubr.msk.bf16.mxu0 %vm6418_vm1, %v8271_v3  ;;  %v1226_v18 = vmul.f32 %v6167_v28, %v6841_v16 }
 0x4e0   :  { %5609 = vmatprep.subr.bf16.mxu0 %v8271_v3 }
 0x4e1   :  { %v1228_v50 = vpack.c.bf16 %v1227_v42, %v1226_v18 }
 0x4e6   :  { %5600 = vmatmul.mubr.msk.bf16.vlgmr.msra.gmra.mxu0 %vm295_vm3, %v1103_v4 }
 0x4e7   :  { %5610 = vmatpush3.bf16.msra.mxu0 %v1230_v41  ;;  %5611 = vmatprep.mubr.msk.bf16.mxu0 %vm6418_vm1, %v8271_v3 }
 0x4ee   :  { %5612 = vmatmul.mubr.msk.bf16.vlgmr.msra.gmra.mxu0 %vm295_vm3, %v1228_v50 }
 0x551   :  { %v6908_v20 = vpop.f32.mrf.mxu0 }
 0x553   :  { %v5529_v10 = vpop.f32.mrf.mxu0 }
 0x555   :  { %v362_v51 = vpop.f32.mrf.mxu0 }
 0x557   :  { %v5530_v55 = vpop.f32.mrf.mxu0 }
 0x559   :  { %v484_v11 = vpop.f32.mrf.mxu0 }
 0x55b   :  { %v5541_v12 = vpop.f32.mrf.mxu0 }
 0x55d   :  { %v487_v57 = vpop.f32.mrf.mxu0 }
 0x55e   :  { %v5978_v46 = vpack.i.bf16 %v487_v57, %v484_v11 }
 0x55f   :  { %v5542_v62 = vpop.f32.mrf.mxu0 }
 0x560   :  { %5979 = vrot.lane.b32.xlu0 %v5978_v46, %s8265_s23 }
 0x586   :  { %v609_v22 = vpop.f32.mrf.mxu0 }
 0x588   :  { %v5553_v27 = vpop.f32.mrf.mxu0 }
 0x58a   :  { %v612_v52 = vpop.f32.mrf.mxu0 }
 0x58b   :  { %v5983_v16 = vpack.i.bf16 %v612_v52, %v609_v22 }
 0x58c   :  { %v5554_v47 = vpop.f32.mrf.mxu0 }
 0x58d   :  { %5984 = vrot.lane.b32.xlu1 %v5983_v16, %s8263_s24 }
 0x58e   :  { %v734_v53 = vpop.f32.mrf.mxu0 }
 0x590   :  { %v5565_v61 = vpop.f32.mrf.mxu0 }
 0x592   :  { %v737_v2 = vpop.f32.mrf.mxu0 }
 0x593   :  { %v5988_v26 = vpack.i.bf16 %v737_v2, %v734_v53 }
 0x594   :  { %v5566_v56 = vpop.f32.mrf.mxu0 }
 0x595   :  { %5989 = vrot.lane.b32.xlu1 %v5988_v26, %s8261_s19 }
 0x596   :  { %v894_v60 = vpop.f32.mrf.mxu0 }
 0x598   :  { %v5577_v9 = vpop.f32.mrf.mxu0 }
 0x59a   :  { %v897_v17 = vpop.f32.mrf.mxu0 }
 0x59c   :  { %v5578_v7 = vpop.f32.mrf.mxu0 }
 0x59e   :  { %v1019_v45 = vpop.f32.mrf.mxu0 }
 0x5a0   :  { %v5589_v19 = vpop.f32.mrf.mxu0 }
 0x5a1   :  { %v8269_v19 = vsub.s32 3, %v6550_v43 }
 0x5a2   :  { %v1022_v23 = vpop.f32.mrf.mxu0 }
 0x5a3   :  { %v5993_v24 = vpack.i.bf16 %v1022_v23, %v1019_v45 }
 0x5a4   :  { %v5590_v36 = vpop.f32.mrf.mxu0 }
 0x5a5   :  { %5994 = vrot.lane.b32.xlu0 %v5993_v24, %s8265_s23 }
 0x5a6   :  { %v1144_v31 = vpop.f32.mrf.mxu0 }
 0x5a8   :  { %v5601_v21 = vpop.f32.mrf.mxu0 }
 0x5aa   :  { %v1147_v33 = vpop.f32.mrf.mxu0 }
 0x5ab   :  { %v5998_v34 = vpack.i.bf16 %v1147_v33, %v1144_v31 }
 0x5ac   :  { %v5602_v35 = vpop.f32.mrf.mxu0 }
 0x5ad   :  { %5999 = vrot.lane.b32.xlu0 %v5998_v34, %s8263_s24 }
 0x5ae   :  { %v1269_v63 = vpop.f32.mrf.mxu0 }
 0x5b0   :  { %v5613_v13 = vpop.f32.mrf.mxu0 }
 0x5b2   :  { %v1272_v6 = vpop.f32.mrf.mxu0 }
 0x5b3   :  { %v6003_v37 = vpack.i.bf16 %v1272_v6, %v1269_v63 }
 0x5b4   :  { %v5614_v29 = vpop.f32.mrf.mxu0 }
 0x5b5   :  { %6004 = vrot.lane.b32.xlu1 %v6003_v37, %s8261_s19 }
 0x5d2   :  { %v5980_v38 = vpop.permute.xlu0 %5979 }
 0x5d3   :  { %v5982_v39 = vunpack.i.h.bf16 %v5980_v38  ;;  %v5981_v4 = vunpack.i.l.bf16 %v5980_v38 }
 0x5d5   :  { %v766_v42 = vsel %vm239_vm2, %v362_v51, %v5982_v39  ;;  %v765_v18 = vsel %vm239_vm2, %v6908_v20, %v5981_v4 }
 0x5ff   :  { %v5985_v14 = vpop.permute.xlu1 %5984 }
 0x600   :  { %v5987_v15 = vunpack.i.h.bf16 %v5985_v14  ;;  %v5986_v41 = vunpack.i.l.bf16 %v5985_v14 }
 0x602   :  { %v767_v55 = vsel %vm295_vm3, %v765_v18, %v5986_v41  ;;  %v768_v11 = vsel %vm295_vm3, %v766_v42, %v5987_v15 }
 0x607   :  { %v5990_v28 = vpop.permute.xlu1 %5989 }
 0x608   :  { %v5992_v50 = vunpack.i.h.bf16 %v5990_v28  ;;  %v5991_v10 = vunpack.i.l.bf16 %v5990_v28 }
 0x60a   :  { %v770_v12 = vsel %vm769_vm4, %v767_v55, %v5991_v10  ;;  %v771_v57 = vsel %vm769_vm4, %v768_v11, %v5992_v50 }
 0x60b   :  { %v1306_v46 = vpack.c.bf16 %v771_v57, %v770_v12 }
 0x60d   :  { %5619 = vmatprep.mubr.msk.bf16.mxu1 %vm92_vm0, %v1306_v46 }
 0x617   :  { %v5995_v62 = vpop.permute.xlu0 %5994 }
 0x618   :  { %v5997_v27 = vunpack.i.h.bf16 %v5995_v62  ;;  %v5996_v51 = vunpack.i.l.bf16 %v5995_v62 }
 0x61a   :  { %v1301_v47 = vsel %vm239_vm2, %v897_v17, %v5997_v27  ;;  %v1300_v53 = vsel %vm239_vm2, %v894_v60, %v5996_v51  ;;  %v6941_v17 = vld [vmem:[%s8237_s6] sm:$0xff] }
 0x61b   :  { %v6946_v60 = vrot.slane %v6941_v17, %v8269_v19  ;;  %v6073_v27 = vld [vmem:[%s8240_s9] sm:$0xff]  }
 0x61f   :  { %v6000_v22 = vpop.permute.xlu0 %5999 }
 0x620   :  { %v6002_v52 = vunpack.i.h.bf16 %v6000_v22  ;;  %v6001_v16 = vunpack.i.l.bf16 %v6000_v22  ;;  %v6072_v22 = vld [vmem:[%s8240_s9 + $0x8] sm:$0xff]  }
 0x621   :  { %5623 = vmatprep.subr.bf16.mxu0 %v6072_v22 }
 0x622   :  { %v1302_v26 = vsel %vm295_vm3, %v1300_v53, %v6001_v16  ;;  %v1303_v56 = vsel %vm295_vm3, %v1301_v47, %v6002_v52  ;;  %5624 = vmatpush3.bf16.msra.mxu0 %v6072_v22 }
 0x623   :  { %5625 = vmatprep.subr.bf16.mxu0 %v6073_v27 }
 0x626   :  { %5626 = vmatpush3.bf16.msra.mxu0 %v6073_v27 }
 0x627   :  { %v6005_v20 = vpop.permute.xlu1 %6004 }
 0x628   :  { %v6007_v61 = vunpack.i.h.bf16 %v6005_v20  ;;  %v6006_v2 = vunpack.i.l.bf16 %v6005_v20 }
 0x62a   :  { %v1304_v9 = vsel %vm769_vm4, %v1302_v26, %v6006_v2  ;;  %v1305_v7 = vsel %vm769_vm4, %v1303_v56, %v6007_v61 }
 0x62b   :  { %v1307_v45 = vpack.c.bf16 %v1305_v7, %v1304_v9 }
 0x62d   :  { %5620 = vmatmul.mubr.msk.bf16.vlgmr.msra.gmra.mxu1 %vm92_vm0, %v1307_v45  ;;  %v1437_v45 = vsub.s32 4, %v6550_v43 }
 0x6ed   :  { %v5621_v23 = vpop.f32.mrf.mxu1 }
 0x6ee   :  { %v1373_v30 = vadd.f32 %v5621_v23, %v6946_v60 }
 0x6ef   :  { %v1364_v24 = vpop.f32.mrf.mxu1 }
 0x6f0   :  { %v1365_v36 = vadd.f32 %v1364_v24, %v6946_v60  ;;  %v1381_v63 = vadd.f32 %v1373_v30, %v6581_v0  ;;  %v6974_v30 = vrot.slane %v6941_v17, %v1437_v45 }
 0x6f1   :  { %v5622_v31 = vpop.f32.mrf.mxu1 }
 0x6f2   :  { %v1379_v21 = vadd.f32 %v1365_v36, %v6570_v58  ;;  %v1376_v33 = vadd.f32 %v5622_v31, %v6946_v60  ;;  %v1389_v37 = vsel %vm92_vm0, %v1381_v63, 0.0  ;;  %8301 = vst [vmem:[#allocation3_spill] sm:$0xff] %v6974_v30  ;;  %v1445_v36 = vsub.s32 5, %v6550_v43 }
 0x6f3   :  { %v1367_v32 = vpop.f32.mrf.mxu1 }
 0x6f4   :  { %v1368_v34 = vadd.f32 %v1367_v32, %v6946_v60  ;;  %v1383_v35 = vsel %vm92_vm0, %v1379_v21, 0.0  ;;  %v1382_v29 = vadd.f32 %v1376_v33, %v6584_v1 }
 0x6f5   :  { %1384 = vadd.xlane.f32.xlu0 %v1383_v35 }
 0x6f6   :  { %v1380_v13 = vadd.f32 %v1368_v34, %v6573_v59  ;;  %v1392_v58 = vsel %vm92_vm0, %v1382_v29, 0.0  ;;  %v6981_v34 = vrot.slane %v6941_v17, %v1445_v36 }
 0x6f8   :  { %v1386_v6 = vsel %vm92_vm0, %v1380_v13, 0.0  ;;  %8302 = vst [vmem:[#allocation4_spill] sm:$0xff] %v6981_v34 }
 0x6f9   :  { %1387 = vadd.xlane.f32.xlu1 %v1386_v6  ;;  %1390 = vadd.xlane.f32.xlu0 %v1389_v37 }
 0x6fd   :  { %1393 = vadd.xlane.f32.xlu0 %v1392_v58 }
 0x77e   :  { %v1385_v38 = vpop.xlane.xlu0 %1384 }
 0x77f   :  { %v1395_v14 = vmul.f32 0.03125, %v1385_v38 }
 0x781   :  { %v1399_v39 = vsub.f32 %v1379_v21, %v1395_v14 }
 0x782   :  { %v1388_v4 = vpop.xlane.xlu1 %1387  ;;  %v1391_v15 = vpop.xlane.xlu0 %1390 }
 0x783   :  { %v1396_v0 = vmul.f32 0.03125, %v1388_v4  ;;  %v1397_v41 = vmul.f32 0.03125, %v1391_v15  ;;  %v1403_v28 = vmul.f32 %v1399_v39, %v1399_v39 }
 0x785   :  { %v1400_v59 = vsub.f32 %v1380_v13, %v1396_v0  ;;  %v1401_v42 = vsub.f32 %v1381_v63, %v1397_v41  ;;  %v1407_v18 = vsel %vm92_vm0, %v1403_v28, 0.0  ;;  %v6074_v0 = vld [vmem:[%s8241_s10 + $0x38] sm:$0xff]   ;;  %v6075_v41 = vld [vmem:[%s8241_s10 + $0x30] sm:$0xff]   ;;  %v6076_v28 = vld [vmem:[%s8241_s10 + $0x28] sm:$0xff]  }
 0x786   :  { %1408 = vadd.xlane.f32.xlu0 %v1407_v18  ;;  %v1394_v50 = vpop.xlane.xlu0 %1393  ;;  %5631 = vmatprep.subr.bf16.mxu1 %v6074_v0  ;;  %v6079_v18 = vld [vmem:[%s8241_s10 + $0x10] sm:$0xff]  }
 0x787   :  { %v1398_v1 = vmul.f32 0.03125, %v1394_v50  ;;  %v1404_v10 = vmul.f32 %v1400_v59, %v1400_v59  ;;  %v1405_v55 = vmul.f32 %v1401_v42, %v1401_v42  ;;  %5632 = vmatpush3.bf16.msra.mxu1 %v6074_v0  ;;  %v6080_v50 = vld [vmem:[%s8241_s10 + $0x8] sm:$0xff]  }
 0x788   :  { %5633 = vmatprep.subr.bf16.mxu1 %v6075_v41 }
 0x789   :  { %v1402_v11 = vsub.f32 %v1382_v29, %v1398_v1  ;;  %v1410_v12 = vsel %vm92_vm0, %v1404_v10, 0.0  ;;  %v1413_v57 = vsel %vm92_vm0, %v1405_v55, 0.0  ;;  %v6081_v1 = vld [vmem:[%s8241_s10] sm:$0xff]   ;;  %v1455_v10 = vsub.s32 6, %v6550_v43 }
 0x78a   :  { %1411 = vadd.xlane.f32.xlu1 %v1410_v12  ;;  %1414 = vadd.xlane.f32.xlu0 %v1413_v57 }
 0x78b   :  { %v1406_v46 = vmul.f32 %v1402_v11, %v1402_v11  ;;  %5634 = vmatpush3.bf16.msra.mxu1 %v6075_v41  ;;  %v7031_v55 = vrot.slane %v6941_v17, %v1455_v10 }
 0x78c   :  { %5635 = vmatprep.subr.bf16.mxu1 %v6076_v28 }
 0x78d   :  { %v1416_v62 = vsel %vm92_vm0, %v1406_v46, 0.0  ;;  %8303 = vst [vmem:[#allocation5_spill] sm:$0xff] %v7031_v55 }
 0x78e   :  { %1417 = vadd.xlane.f32.xlu1 %v1416_v62 }
 0x78f   :  { %5636 = vmatpush3.bf16.msra.mxu1 %v6076_v28 }
 0x80f   :  { %v1409_v51 = vpop.xlane.xlu0 %1408 }
 0x810   :  { %v1419_v52 = vmul.f32 0.03125, %v1409_v51 }
 0x812   :  { %v1423_v16 = vadd.f32 1e-12, %v1419_v52 }
 0x813   :  { %v1412_v20 = vpop.xlane.xlu1 %1411  ;;  %v1415_v47 = vpop.xlane.xlu0 %1414 }
 0x814   :  { %6168 = vrsqrt.f32 %v1423_v16  ;;  %v1420_v53 = vmul.f32 0.03125, %v1412_v20  ;;  %v1421_v61 = vmul.f32 0.03125, %v1415_v47 }
 0x816   :  { %v1424_v2 = vadd.f32 1e-12, %v1420_v53  ;;  %v1425_v26 = vadd.f32 1e-12, %v1421_v61 }
 0x817   :  { %v1418_v56 = vpop.xlane.xlu1 %1417 }
 0x818   :  { %6170 = vrsqrt.f32 %v1424_v2  ;;  %v1422_v9 = vmul.f32 0.03125, %v1418_v56 }
 0x819   :  { %6172 = vrsqrt.f32 %v1425_v26 }
 0x81a   :  { %v1426_v7 = vadd.f32 1e-12, %v1422_v9 }
 0x81c   :  { %6174 = vrsqrt.f32 %v1426_v7 }
 0x821   :  { %v6169_v23 = vpop.eup %6168 }
 0x822   :  { %v1431_v24 = vmul.f32 %v6169_v23, %v1399_v39 }
 0x824   :  { %v1439_v33 = vmul.f32 %v6974_v30, %v1431_v24 }
 0x825   :  { %v6171_v31 = vpop.eup %6170 }
 0x826   :  { %v6173_v21 = vpop.eup %6172  ;;  %v1432_v32 = vmul.f32 %v6171_v31, %v1400_v59  ;;  %v6985_v37 = vadd.f32 %v6981_v34, %v1439_v33  ;;  %v6077_v59 = vld [vmem:[%s8241_s10 + $0x20] sm:$0xff]  }
 0x827   :  { %v1433_v35 = vmul.f32 %v6173_v21, %v1401_v42  ;;  %5637 = vmatprep.subr.bf16.mxu1 %v6077_v59  ;;  %v6078_v42 = vld [vmem:[%s8241_s10 + $0x18] sm:$0xff]  }
 0x828   :  { %v1440_v63 = vmul.f32 %v6974_v30, %v1432_v32  ;;  %5638 = vmatpush3.bf16.msra.mxu1 %v6077_v59 }
 0x829   :  { %v6175_v13 = vpop.eup %6174  ;;  %v1441_v58 = vmul.f32 %v6974_v30, %v1433_v35  ;;  %5639 = vmatprep.subr.bf16.mxu1 %v6078_v42 }
 0x82a   :  { %v1434_v6 = vmul.f32 %v6175_v13, %v1402_v11  ;;  %v6988_v29 = vadd.f32 %v6981_v34, %v1440_v63 }
 0x82b   :  { %v6996_v39 = vadd.f32 %v6981_v34, %v1441_v58 }
 0x82c   :  { %v1451_v38 = vpack.c.bf16 %v6988_v29, %v6985_v37  ;;  %v1442_v14 = vmul.f32 %v6974_v30, %v1434_v6  ;;  %5640 = vmatpush3.bf16.msra.mxu1 %v6078_v42 }
 0x82d   :  { %5641 = vmatprep.subr.bf16.mxu1 %v6079_v18 }
 0x82e   :  { %5627 = vmatprep.mubr.msk.bf16.mxu0 %vm92_vm0, %v1451_v38  ;;  %v6999_v4 = vadd.f32 %v6981_v34, %v1442_v14 }
 0x830   :  { %v1452_v15 = vpack.c.bf16 %v6999_v4, %v6996_v39  ;;  %5642 = vmatpush3.bf16.msra.mxu1 %v6079_v18 }
 0x831   :  { %5643 = vmatprep.subr.bf16.mxu1 %v6080_v50 }
 0x832   :  { %5628 = vmatmul.mubr.msk.bf16.vlgmr.msra.gmra.mxu0 %vm92_vm0, %v1452_v15 }
 0x834   :  { %5644 = vmatpush3.bf16.msra.mxu1 %v6080_v50 }
 0x835   :  { %5645 = vmatprep.subr.bf16.mxu1 %v6081_v1 }
 0x838   :  { %5646 = vmatpush3.bf16.msra.mxu1 %v6081_v1 }
 0x839   :  { %5679 = vmatprep.subr.bf16.mxu1 %v8271_v3 }
 0x8f2   :  { %v5629_v11 = vpop.f32.mrf.mxu0 }
 0x8f3   :  { %v1518_v12 = vadd.f32 %v5629_v11, %v7031_v55 }
 0x8f4   :  { %v1509_v57 = vpop.f32.mrf.mxu0 }
 0x8f5   :  { %v1530_v46 = vmul.f32 0.044715, %v1518_v12  ;;  %v1510_v62 = vadd.f32 %v1509_v57, %v7031_v55  ;;  %v1526_v50 = vmul.f32 0.5, %v1518_v12 }
 0x8f6   :  { %v5630_v22 = vpop.f32.mrf.mxu0 }
 0x8f7   :  { %v1534_v27 = vmul.f32 %v1530_v46, %v1518_v12  ;;  %v1528_v51 = vmul.f32 0.044715, %v1510_v62  ;;  %v1521_v52 = vadd.f32 %v5630_v22, %v7031_v55  ;;  %v1524_v59 = vmul.f32 0.5, %v1510_v62 }
 0x8f8   :  { %v1512_v16 = vpop.f32.mrf.mxu0 }
 0x8f9   :  { %v1538_v20 = vmul.f32 %v1534_v27, %v1518_v12  ;;  %v1532_v47 = vmul.f32 %v1528_v51, %v1510_v62  ;;  %v1531_v53 = vmul.f32 0.044715, %v1521_v52  ;;  %v1513_v61 = vadd.f32 %v1512_v16, %v7031_v55 }
 0x8fa   :  { %v1527_v41 = vmul.f32 0.5, %v1521_v52  ;;  %v1564_v27 = vsub.s32 7, %v6550_v43 }
 0x8fb   :  { %v1542_v2 = vadd.f32 %v1538_v20, %v1518_v12  ;;  %v1536_v26 = vmul.f32 %v1532_v47, %v1510_v62  ;;  %v1535_v56 = vmul.f32 %v1531_v53, %v1521_v52  ;;  %v1529_v9 = vmul.f32 0.044715, %v1513_v61 }
 0x8fc   :  { %v1525_v42 = vmul.f32 0.5, %v1513_v61  ;;  %v7041_v51 = vrot.slane %v6941_v17, %v1564_v27 }
 0x8fd   :  { %v1539_v7 = vmul.f32 %v1535_v56, %v1521_v52  ;;  %v1533_v23 = vmul.f32 %v1529_v9, %v1513_v61  ;;  %v1540_v24 = vadd.f32 %v1536_v26, %v1510_v62  ;;  %v1546_v31 = vmul.f32 0.7978846, %v1542_v2 }
 0x8fe   :  { %8304 = vst [vmem:[#allocation6_spill] sm:$0xff] %v7041_v51 }
 0x8ff   :  { %v1543_v21 = vadd.f32 %v1539_v7, %v1521_v52  ;;  %v1537_v32 = vmul.f32 %v1533_v23, %v1513_v61  ;;  %v1544_v33 = vmul.f32 0.7978846, %v1540_v24 }
 0x901   :  { %v1547_v35 = vmul.f32 0.7978846, %v1543_v21  ;;  %v1541_v63 = vadd.f32 %v1537_v32, %v1513_v61  ;;  %6176 = vtanh.f32 %v1544_v33 }
 0x902   :  { %6178 = vtanh.f32 %v1546_v31 }
 0x903   :  { %6180 = vtanh.f32 %v1547_v35  ;;  %v1545_v13 = vmul.f32 0.7978846, %v1541_v63 }
 0x905   :  { %6182 = vtanh.f32 %v1545_v13 }
 0x90e   :  { %v6177_v6 = vpop.eup %6176 }
 0x90f   :  { %v6179_v58 = vpop.eup %6178  ;;  %v1552_v14 = vadd.f32 1.0, %v6177_v6 }
 0x910   :  { %v6181_v38 = vpop.eup %6180  ;;  %v1554_v28 = vadd.f32 1.0, %v6179_v58 }
 0x911   :  { %v1555_v15 = vadd.f32 1.0, %v6181_v38  ;;  %v1556_v10 = vmul.f32 %v1552_v14, %v1524_v59 }
 0x912   :  { %v6183_v0 = vpop.eup %6182  ;;  %v1558_v57 = vmul.f32 %v1554_v28, %v1526_v50 }
 0x913   :  { %v1553_v18 = vadd.f32 1.0, %v6183_v0  ;;  %v1559_v1 = vmul.f32 %v1555_v15, %v1527_v41 }
 0x915   :  { %v1557_v11 = vmul.f32 %v1553_v18, %v1525_v42  ;;  %v1561_v22 = vpack.c.bf16 %v1559_v1, %v1558_v57  ;;  %v6082_v42 = vld [vmem:[%s8242_s13 + $0x8] sm:$0xff]   ;;  %v6083_v18 = vld [vmem:[%s8242_s13] sm:$0xff]   ;;  %s8315_s13 = smov 40  }
 0x916   :  { %5651 = vmatprep.subr.bf16.mxu0 %v6082_v42 }
 0x917   :  { %v1560_v46 = vpack.c.bf16 %v1557_v11, %v1556_v10  ;;  %5652 = vmatpush3.bf16.msra.mxu0 %v6082_v42 }
 0x918   :  { %5653 = vmatprep.subr.bf16.mxu0 %v6083_v18 }
 0x919   :  { %5647 = vmatprep.mubr.bf16.mxu1 %v1560_v46 }
 0x91a   :  { %5648 = vmatmul.mubr.bf16.vlgmr.msra.gmra.mxu1 %v1561_v22 }
 0x91b   :  { %5681 = vmatprep.mubr.msk.bf16.mxu1 %vm6418_vm1, %v8271_v3  ;;  %5654 = vmatpush3.bf16.msra.mxu0 %v6083_v18 }
 0x9da   :  { %v5649_v62 = vpop.f32.mrf.mxu1 }
 0x9db   :  { %v1657_v12 = vadd.f32 %v5649_v62, %v7041_v51 }
 0x9dc   :  { %v1648_v52 = vpop.f32.mrf.mxu1 }
 0x9dd   :  { %v1649_v16 = vadd.f32 %v1648_v52, %v7041_v51  ;;  %v1665_v56 = vadd.f32 %v1657_v12, %v6996_v39 }
 0x9de   :  { %v5650_v20 = vpop.f32.mrf.mxu1 }
 0x9df   :  { %v1663_v47 = vadd.f32 %v1649_v16, %v6985_v37  ;;  %v1660_v61 = vadd.f32 %v5650_v20, %v7041_v51  ;;  %v1673_v7 = vsel %vm92_vm0, %v1665_v56, 0.0  ;;  %v58_v20 = vld [vmem:[%s8237_s6 + $0x8] sm:$0xff] }
 0x9e0   :  { %v1651_v53 = vpop.f32.mrf.mxu1 }
 0x9e1   :  { %v1652_v2 = vadd.f32 %v1651_v53, %v7041_v51  ;;  %v1667_v26 = vsel %vm92_vm0, %v1663_v47, 0.0  ;;  %v1666_v23 = vadd.f32 %v1660_v61, %v6999_v4  ;;  %v7069_v61 = vrot.slane %v58_v20, %v6553_v44 }
 0x9e2   :  { %1668 = vadd.xlane.f32.xlu0 %v1667_v26 }
 0x9e3   :  { %v1664_v17 = vadd.f32 %v1652_v2, %v6988_v29  ;;  %v1676_v37 = vsel %vm92_vm0, %v1666_v23, 0.0  ;;  %8305 = vst [vmem:[#allocation7_spill] sm:$0xff] %v7069_v61 }
 0x9e5   :  { %v1670_v9 = vsel %vm92_vm0, %v1664_v17, 0.0 }
 0x9e6   :  { %1671 = vadd.xlane.f32.xlu1 %v1670_v9  ;;  %1674 = vadd.xlane.f32.xlu0 %v1673_v7  ;;  %v7073_v9 = vrot.slane %v58_v20, %v6562_v49 }
 0x9e8   :  { %8306 = vst [vmem:[#allocation8_spill] sm:$0xff] %v7073_v9 }
 0x9ea   :  { %1677 = vadd.xlane.f32.xlu1 %v1676_v37 }
 0xa6b   :  { %v1669_v24 = vpop.xlane.xlu0 %1668 }
 0xa6c   :  { %v1679_v31 = vmul.f32 0.03125, %v1669_v24 }
 0xa6e   :  { %v1683_v21 = vsub.f32 %v1663_v47, %v1679_v31 }
 0xa6f   :  { %v1672_v32 = vpop.xlane.xlu1 %1671  ;;  %v1675_v33 = vpop.xlane.xlu0 %1674 }
 0xa70   :  { %v1680_v39 = vmul.f32 0.03125, %v1672_v32  ;;  %v1681_v35 = vmul.f32 0.03125, %v1675_v33  ;;  %v1687_v63 = vmul.f32 %v1683_v21, %v1683_v21 }
 0xa72   :  { %v1684_v29 = vsub.f32 %v1664_v17, %v1680_v39  ;;  %v1685_v13 = vsub.f32 %v1665_v56, %v1681_v35  ;;  %v1691_v6 = vsel %vm92_vm0, %v1687_v63, 0.0  ;;  %v6084_v63 = vld [vmem:[%s8243_s14 + $0x8] sm:$0xff]  }
 0xa73   :  { %v1678_v58 = vpop.xlane.xlu1 %1677  ;;  %1692 = vadd.xlane.f32.xlu0 %v1691_v6  ;;  %5659 = vmatprep.subr.bf16.mxu0 %v6084_v63 }
 0xa74   :  { %v1682_v4 = vmul.f32 0.03125, %v1678_v58  ;;  %v1688_v38 = vmul.f32 %v1684_v29, %v1684_v29  ;;  %v1689_v14 = vmul.f32 %v1685_v13, %v1685_v13  ;;  %v1744_v58 = vrot.slane %v58_v20, %v1437_v45  ;;  %v6402_v45 = vld [vmem:[%s8299_s20] sm:$0xff]  }
 0xa76   :  { %v1686_v15 = vsub.f32 %v1666_v23, %v1682_v4  ;;  %v1694_v0 = vsel %vm92_vm0, %v1688_v38, 0.0  ;;  %v1697_v41 = vsel %vm92_vm0, %v1689_v14, 0.0 }
 0xa77   :  { %1695 = vadd.xlane.f32.xlu1 %v1694_v0  ;;  %1698 = vadd.xlane.f32.xlu0 %v1697_v41 }
 0xa78   :  { %v1690_v28 = vmul.f32 %v1686_v15, %v1686_v15 }
 0xa7a   :  { %v1700_v59 = vsel %vm92_vm0, %v1690_v28, 0.0 }
 0xa7b   :  { %1701 = vadd.xlane.f32.xlu1 %v1700_v59 }
 0xafc   :  { %v1693_v50 = vpop.xlane.xlu0 %1692 }
 0xafd   :  { %v1703_v1 = vmul.f32 0.03125, %v1693_v50 }
 0xaff   :  { %v1707_v10 = vadd.f32 1e-12, %v1703_v1 }
 0xb00   :  { %v1696_v11 = vpop.xlane.xlu1 %1695  ;;  %v1699_v57 = vpop.xlane.xlu0 %1698 }
 0xb01   :  { %6184 = vrsqrt.f32 %v1707_v10  ;;  %v1704_v46 = vmul.f32 0.03125, %v1696_v11  ;;  %v1705_v22 = vmul.f32 0.03125, %v1699_v57  ;;  %v1825_v11 = vrot.slane %v58_v20, %v1445_v36 }
 0xb03   :  { %v1708_v27 = vadd.f32 1e-12, %v1704_v46  ;;  %v1709_v62 = vadd.f32 1e-12, %v1705_v22 }
 0xb04   :  { %v1702_v52 = vpop.xlane.xlu1 %1701 }
 0xb05   :  { %6186 = vrsqrt.f32 %v1708_v27  ;;  %v1706_v12 = vmul.f32 0.03125, %v1702_v52 }
 0xb06   :  { %6188 = vrsqrt.f32 %v1709_v62 }
 0xb07   :  { %v1710_v16 = vadd.f32 1e-12, %v1706_v12 }
 0xb09   :  { %6190 = vrsqrt.f32 %v1710_v16 }
 0xb0e   :  { %v6185_v47 = vpop.eup %6184 }
 0xb0f   :  { %v1715_v53 = vmul.f32 %v6185_v47, %v1683_v21 }
 0xb11   :  { %v1723_v17 = vmul.f32 %v7069_v61, %v1715_v53 }
 0xb12   :  { %v6187_v2 = vpop.eup %6186 }
 0xb13   :  { %v6189_v26 = vpop.eup %6188  ;;  %v1716_v56 = vmul.f32 %v6187_v2, %v1684_v29  ;;  %v1731_v31 = vadd.f32 %v7073_v9, %v1723_v17  ;;  %v6085_v29 = vld [vmem:[%s8243_s14] sm:$0xff]  }
 0xb14   :  { %v1717_v7 = vmul.f32 %v6189_v26, %v1685_v13  ;;  %v6401_v13 = vld [vmem:[%s8299_s20 + $0x8] sm:$0xff]  }
 0xb15   :  { %v1724_v23 = vmul.f32 %v7069_v61, %v1716_v56 }
 0xb16   :  { %v6191_v37 = vpop.eup %6190  ;;  %v1725_v44 = vmul.f32 %v7069_v61, %v1717_v7 }
 0xb17   :  { %v1718_v24 = vmul.f32 %v6191_v37, %v1686_v15  ;;  %v1732_v21 = vadd.f32 %v7073_v9, %v1724_v23 }
 0xb18   :  { %v1733_v39 = vadd.f32 %v7073_v9, %v1725_v44  ;;  %v1893_v44 = vld [vmem:[%s8244_s4] sm:$0xff] }
 0xb19   :  { %v1739_v32 = vpack.c.bf16 %v1732_v21, %v1731_v31  ;;  %v1726_v33 = vmul.f32 %v7069_v61, %v1718_v24  ;;  %v1895_v31 = vld [vmem:[%s8244_s4 + $0x10] sm:$0xff] }
 0xb1b   :  { %5655 = vmatprep.mubr.msk.bf16.mxu0 %vm92_vm0, %v1739_v32  ;;  %v1734_v49 = vadd.f32 %v7073_v9, %v1726_v33 }
 0xb1d   :  { %v1740_v35 = vpack.c.bf16 %v1734_v49, %v1733_v39 }
 0xb1f   :  { %5656 = vmatmul.mubr.msk.bf16.vlgmr.msra.gmra.mxu0 %vm92_vm0, %v1740_v35  ;;  %v1894_v35 = vld [vmem:[%s8244_s4 + $0x8] sm:$0xff] }
 0xb20   :  { %5660 = vmatpush3.bf16.msra.mxu0 %v6084_v63  ;;  %v2062_v63 = vld [vmem:[%s8245_s1] sm:$0xff] }
 0xb21   :  { %5661 = vmatprep.subr.bf16.mxu0 %v6085_v29 }
 0xb24   :  { %5662 = vmatpush3.bf16.msra.mxu0 %v6085_v29  ;;  %v2064_v29 = vld [vmem:[%s8245_s1 + $0x10] sm:$0xff] }
 0xb25   :  { %5667 = vmatprep.subr.bf16.mxu0 %v6401_v13 }
 0xbdf   :  { %v5657_v6 = vpop.f32.mrf.mxu0 }
 0xbe0   :  { %v1806_v0 = vadd.f32 %v5657_v6, %v1744_v58 }
 0xbe1   :  { %v1797_v4 = vpop.f32.mrf.mxu0 }
 0xbe2   :  { %v1798_v14 = vadd.f32 %v1797_v4, %v1744_v58  ;;  %v1814_v50 = vmax.f32 %v1806_v0, 0.0  ;;  %v2063_v0 = vld [vmem:[%s8245_s1 + $0x8] sm:$0xff] }
 0xbe3   :  { %v5658_v38 = vpop.f32.mrf.mxu0 }
 0xbe4   :  { %v1809_v15 = vadd.f32 %v5658_v38, %v1744_v58  ;;  %v1812_v42 = vmax.f32 %v1798_v14, 0.0 }
 0xbe5   :  { %v1800_v41 = vpop.f32.mrf.mxu0 }
 0xbe6   :  { %v1801_v28 = vadd.f32 %v1800_v41, %v1744_v58  ;;  %v1815_v59 = vmax.f32 %v1809_v15, 0.0  ;;  %v2066_v58 = vld [vmem:[%s8246_s2] sm:$0xff]  ;;  %v1896_v15 = vld [vmem:[%s8244_s4 + $0x18] sm:$0xff]  ;;  %v2068_v41 = vld [vmem:[%s8246_s2 + $0x10] sm:$0xff] }
 0xbe8   :  { %v1813_v18 = vmax.f32 %v1801_v28, 0.0  ;;  %v1821_v10 = vpack.c.bf16 %v1815_v59, %v1814_v50 }
 0xbea   :  { %v1820_v1 = vpack.c.bf16 %v1813_v18, %v1812_v42  ;;  %v2067_v18 = vld [vmem:[%s8246_s2 + $0x8] sm:$0xff] }
 0xbec   :  { %5663 = vmatprep.mubr.msk.bf16.mxu0 %vm92_vm0, %v1820_v1 }
 0xbed   :  { %5664 = vmatmul.mubr.msk.bf16.vlgmr.msra.gmra.mxu0 %vm92_vm0, %v1821_v10 }
 0xbee   :  { %5668 = vmatpush3.bf16.msra.mxu0 %v6401_v13 }
 0xbef   :  { %5669 = vmatprep.subr.bf16.mxu0 %v6402_v45 }
 0xbf2   :  { %5670 = vmatpush3.bf16.msra.mxu0 %v6402_v45 }
 0xbf3   :  { %5685 = vmatprep.subr.bf16.mxu0 %v8271_v3 }
 0xcad   :  { %v5665_v57 = vpop.f32.mrf.mxu0 }
 0xcae   :  { %v7103_v46 = vadd.f32 %v5665_v57, %v1825_v11 }
 0xcaf   :  { %v1878_v22 = vpop.f32.mrf.mxu0 }
 0xcb0   :  { %8307 = vst [vmem:[#allocation9_spill] sm:$0xff] %v7103_v46  ;;  %v1899_v27 = vmul.f32 0.5, %v7103_v46  ;;  %v7106_v62 = vadd.f32 %v1878_v22, %v1825_v11 }
 0xcb1   :  { %v5666_v52 = vpop.f32.mrf.mxu0 }
 0xcb2   :  { %8308 = vst [vmem:[#allocation10_spill] sm:$0xff] %v7106_v62  ;;  %v1905_v12 = vmul.f32 1.442695, %v1899_v27  ;;  %v1897_v16 = vmul.f32 0.5, %v7106_v62  ;;  %v7109_v47 = vadd.f32 %v5666_v52, %v1825_v11  ;;  %v2079_v27 = vadd.f32 %v2067_v18, %v2063_v0  ;;  %v2069_v52 = vld [vmem:[%s8246_s2 + $0x18] sm:$0xff]  ;;  %s8313_s2 = smov 64  }
 0xcb3   :  { %v1881_v53 = vpop.f32.mrf.mxu0 }
 0xcb4   :  { %8309 = vst [vmem:[#allocation11_spill] sm:$0xff] %v7109_v47  ;;  %6192 = vpow2.f32 %v1905_v12  ;;  %v1901_v2 = vmul.f32 1.442695, %v1897_v16  ;;  %v7111_v26 = vadd.f32 %v1881_v53, %v1825_v11  ;;  %v1900_v36 = vmul.f32 0.5, %v7109_v47  ;;  %v2065_v11 = vld [vmem:[%s8245_s1 + $0x18] sm:$0xff]  ;;  %s8312_s1 = smov 112  }
 0xcb6   :  { %8310 = vst [vmem:[#allocation12_spill] sm:$0xff] %v7111_v26  ;;  %6194 = vpow2.f32 %v1901_v2  ;;  %v1898_v20 = vmul.f32 0.5, %v7111_v26  ;;  %v1907_v17 = vmul.f32 1.442695, %v1900_v36  ;;  %v2097_v36 = vsel %vm92_vm0, %v2079_v27, 0.0 }
 0xcb8   :  { %v1903_v56 = vmul.f32 1.442695, %v1898_v20  ;;  %v2078_v20 = vadd.f32 %v2066_v58, %v2062_v63 }
 0xcba   :  { %6196 = vpow2.f32 %v1903_v56  ;;  %v2081_v56 = vadd.f32 %v2069_v52, %v2065_v11 }
 0xcbb   :  { %6198 = vpow2.f32 %v1907_v17 }
 0xcc1   :  { %v6193_v7 = vpop.eup %6192 }
 0xcc2   :  { %1917 = vrot.lane.b32.xlu1 %v6193_v7, %s6419_s25  ;;  %v2094_v7 = vsel %vm92_vm0, %v2078_v20, 0.0 }
 0xcc3   :  { %v6195_v23 = vpop.eup %6194 }
 0xcc4   :  { %1913 = vrot.lane.b32.xlu0 %v6195_v23, %s6419_s25  ;;  %v2103_v23 = vsel %vm92_vm0, %v2081_v56, 0.0 }
 0xcc7   :  { %v6197_v37 = vpop.eup %6196 }
 0xcc8   :  { %1915 = vrot.lane.b32.xlu1 %v6197_v37, %s6419_s25  ;;  %v6199_v24 = vpop.eup %6198  ;;  %v2080_v37 = vadd.f32 %v2068_v41, %v2064_v29 }
 0xccc   :  { %1919 = vrot.lane.b32.xlu1 %v6199_v24, %s6419_s25  ;;  %v2100_v24 = vsel %vm92_vm0, %v2080_v37, 0.0 }
 0xd34   :  { %v1918_v21 = vpop.permute.xlu1 %1917 }
 0xd35   :  { %v1927_v32 = vmul.f32 %v1918_v21, %v1895_v31 }
 0xd36   :  { %v1914_v33 = vpop.permute.xlu0 %1913 }
 0xd37   :  { %v1931_v39 = vadd.f32 %v1927_v32, %v7103_v46  ;;  %v1925_v49 = vmul.f32 %v1914_v33, %v1893_v44 }
 0xd39   :  { %v1929_v13 = vadd.f32 %v1925_v49, %v7106_v62  ;;  %v2072_v14 = vmul.f32 %v2064_v29, %v1931_v39 }
 0xd3a   :  { %v1916_v6 = vpop.permute.xlu1 %1915 }
 0xd3b   :  { %v1926_v4 = vmul.f32 %v1916_v6, %v1894_v35  ;;  %v2070_v38 = vmul.f32 %v2062_v63, %v1929_v13  ;;  %v2076_v45 = vadd.f32 %v2072_v14, %v2068_v41 }
 0xd3d   :  { %v1930_v28 = vadd.f32 %v1926_v4, %v7111_v26  ;;  %v2074_v59 = vadd.f32 %v2070_v38, %v2066_v58  ;;  %v2088_v16 = vsel %vm92_vm0, %v2076_v45, 0.0 }
 0xd3e   :  { %v1920_v42 = vpop.permute.xlu1 %1919 }
 0xd3f   :  { %v1928_v50 = vmul.f32 %v1920_v42, %v1896_v15  ;;  %v2082_v1 = vsel %vm92_vm0, %v2074_v59, 0.0  ;;  %v2071_v10 = vmul.f32 %v2063_v0, %v1930_v28 }
 0xd40   :  { %2083 = vadd.xlane.f32.xlu0 %v2082_v1 }
 0xd41   :  { %v1932_v57 = vadd.f32 %v1928_v50, %v7109_v47  ;;  %v2075_v22 = vadd.f32 %v2071_v10, %v2067_v18 }
 0xd43   :  { %v2085_v12 = vsel %vm92_vm0, %v2075_v22, 0.0  ;;  %v2073_v53 = vmul.f32 %v2065_v11, %v1932_v57 }
 0xd44   :  { %2086 = vadd.xlane.f32.xlu1 %v2085_v12  ;;  %2089 = vadd.xlane.f32.xlu0 %v2088_v16 }
 0xd45   :  { %v2077_v2 = vadd.f32 %v2073_v53, %v2069_v52 }
 0xd47   :  { %v2091_v17 = vsel %vm92_vm0, %v2077_v2, 0.0 }
 0xd48   :  { %2092 = vadd.xlane.f32.xlu0 %v2091_v17  ;;  %2098 = vadd.xlane.f32.xlu1 %v2097_v36 }
 0xd4c   :  { %2095 = vadd.xlane.f32.xlu0 %v2094_v7  ;;  %2104 = vadd.xlane.f32.xlu1 %v2103_v23 }
 0xd50   :  { %2101 = vadd.xlane.f32.xlu0 %v2100_v24 }
 0xdc9   :  { %v2084_v31 = vpop.xlane.xlu0 %2083 }
 0xdca   :  { %v2106_v21 = vmul.f32 0.03125, %v2084_v31 }
 0xdcc   :  { %v7167_v44 = vsub.f32 %v2074_v59, %v2106_v21 }
 0xdcd   :  { %v2087_v32 = vpop.xlane.xlu1 %2086  ;;  %v2090_v33 = vpop.xlane.xlu0 %2089 }
 0xdce   :  { %v2107_v39 = vmul.f32 0.03125, %v2087_v32  ;;  %v2108_v49 = vmul.f32 0.03125, %v2090_v33  ;;  %v2122_v35 = vmul.f32 %v7167_v44, %v7167_v44 }
 0xdd0   :  { %v7171_v63 = vsub.f32 %v2075_v22, %v2107_v39  ;;  %v7173_v13 = vsub.f32 %v2076_v45, %v2108_v49  ;;  %v2130_v29 = vsel %vm92_vm0, %v2122_v35, 0.0 }
 0xdd1   :  { %2131 = vadd.xlane.f32.xlu0 %v2130_v29  ;;  %v2093_v6 = vpop.xlane.xlu0 %2092  ;;  %v2099_v58 = vpop.xlane.xlu1 %2098 }
 0xdd2   :  { %v2109_v4 = vmul.f32 0.03125, %v2093_v6  ;;  %v2123_v38 = vmul.f32 %v7171_v63, %v7171_v63  ;;  %v2111_v14 = vmul.f32 0.03125, %v2099_v58  ;;  %v2124_v15 = vmul.f32 %v7173_v13, %v7173_v13 }
 0xdd4   :  { %v7180_v0 = vsub.f32 %v2077_v2, %v2109_v4  ;;  %v2133_v41 = vsel %vm92_vm0, %v2123_v38, 0.0  ;;  %v7183_v28 = vsub.f32 %v2079_v27, %v2111_v14  ;;  %v2136_v59 = vsel %vm92_vm0, %v2124_v15, 0.0 }
 0xdd5   :  { %2134 = vadd.xlane.f32.xlu1 %v2133_v41  ;;  %2137 = vadd.xlane.f32.xlu0 %v2136_v59  ;;  %v2096_v42 = vpop.xlane.xlu0 %2095  ;;  %v2105_v18 = vpop.xlane.xlu1 %2104 }
 0xdd6   :  { %v2110_v50 = vmul.f32 0.03125, %v2096_v42  ;;  %v2113_v1 = vmul.f32 0.03125, %v2105_v18  ;;  %v2125_v10 = vmul.f32 %v7180_v0, %v7180_v0  ;;  %v2127_v45 = vmul.f32 %v7183_v28, %v7183_v28 }
 0xdd8   :  { %v7190_v11 = vsub.f32 %v2078_v20, %v2110_v50  ;;  %v7192_v57 = vsub.f32 %v2081_v56, %v2113_v1  ;;  %v2139_v22 = vsel %vm92_vm0, %v2125_v10, 0.0  ;;  %v2145_v12 = vsel %vm92_vm0, %v2127_v45, 0.0 }
 0xdd9   :  { %2140 = vadd.xlane.f32.xlu1 %v2139_v22  ;;  %v2102_v27 = vpop.xlane.xlu0 %2101 }
 0xdda   :  { %v2112_v52 = vmul.f32 0.03125, %v2102_v27  ;;  %v2126_v16 = vmul.f32 %v7190_v11, %v7190_v11  ;;  %v2129_v53 = vmul.f32 %v7192_v57, %v7192_v57 }
 0xddc   :  { %v7200_v2 = vsub.f32 %v2080_v37, %v2112_v52  ;;  %v2142_v36 = vsel %vm92_vm0, %v2126_v16, 0.0  ;;  %v2151_v20 = vsel %vm92_vm0, %v2129_v53, 0.0 }
 0xddd   :  { %2146 = vadd.xlane.f32.xlu1 %v2145_v12  ;;  %2143 = vadd.xlane.f32.xlu0 %v2142_v36 }
 0xdde   :  { %v2128_v56 = vmul.f32 %v7200_v2, %v7200_v2 }
 0xde0   :  { %v2148_v17 = vsel %vm92_vm0, %v2128_v56, 0.0 }
 0xde1   :  { %2152 = vadd.xlane.f32.xlu1 %v2151_v20  ;;  %2149 = vadd.xlane.f32.xlu0 %v2148_v17 }
 0xe5a   :  { %v2132_v7 = vpop.xlane.xlu0 %2131 }
 0xe5b   :  { %v2154_v23 = vmul.f32 0.03125, %v2132_v7 }
 0xe5d   :  { %v2162_v24 = vadd.f32 1e-12, %v2154_v23 }
 0xe5e   :  { %v2135_v31 = vpop.xlane.xlu1 %2134  ;;  %v2138_v21 = vpop.xlane.xlu0 %2137 }
 0xe5f   :  { %6200 = vrsqrt.f32 %v2162_v24  ;;  %v2155_v37 = vmul.f32 0.03125, %v2135_v31  ;;  %v2156_v32 = vmul.f32 0.03125, %v2138_v21 }
 0xe61   :  { %v2163_v33 = vadd.f32 1e-12, %v2155_v37  ;;  %v2164_v39 = vadd.f32 1e-12, %v2156_v32 }
 0xe62   :  { %v2141_v49 = vpop.xlane.xlu1 %2140 }
 0xe63   :  { %6202 = vrsqrt.f32 %v2163_v33  ;;  %v2157_v35 = vmul.f32 0.03125, %v2141_v49 }
 0xe64   :  { %6204 = vrsqrt.f32 %v2164_v39 }
 0xe65   :  { %v2165_v29 = vadd.f32 1e-12, %v2157_v35 }
 0xe66   :  { %v2147_v6 = vpop.xlane.xlu1 %2146  ;;  %v2144_v58 = vpop.xlane.xlu0 %2143 }
 0xe67   :  { %6206 = vrsqrt.f32 %v2165_v29  ;;  %v2159_v4 = vmul.f32 0.03125, %v2147_v6  ;;  %v2158_v38 = vmul.f32 0.03125, %v2144_v58 }
 0xe69   :  { %v2167_v14 = vadd.f32 1e-12, %v2159_v4  ;;  %v2166_v15 = vadd.f32 1e-12, %v2158_v38 }
 0xe6a   :  { %v2153_v41 = vpop.xlane.xlu1 %2152  ;;  %v2150_v59 = vpop.xlane.xlu0 %2149 }
 0xe6b   :  { %6208 = vrsqrt.f32 %v2167_v14  ;;  %v2161_v42 = vmul.f32 0.03125, %v2153_v41  ;;  %v2160_v18 = vmul.f32 0.03125, %v2150_v59 }
 0xe6c   :  { %v6201_v50 = vpop.eup %6200  ;;  %6210 = vrsqrt.f32 %v2166_v15 }
 0xe6d   :  { %v2169_v1 = vadd.f32 1e-12, %v2161_v42  ;;  %v2168_v10 = vadd.f32 1e-12, %v2160_v18  ;;  %v2178_v45 = vmul.f32 %v6201_v50, %v7167_v44 }
 0xe6f   :  { %6212 = vrsqrt.f32 %v2169_v1  ;;  %v2186_v12 = vmul.f32 %v2178_v45, %v6559_v48 }
 0xe70   :  { %v6203_v22 = vpop.eup %6202  ;;  %6214 = vrsqrt.f32 %v2168_v10 }
 0xe71   :  { %v6205_v27 = vpop.eup %6204  ;;  %v2179_v52 = vmul.f32 %v6203_v22, %v7171_v63  ;;  %v7214_v56 = vadd.f32 %v2186_v12, %v6566_v54 }
 0xe72   :  { %v2180_v16 = vmul.f32 %v6205_v27, %v7173_v13 }
 0xe73   :  { %v2187_v53 = vmul.f32 %v2179_v52, %v6559_v48 }
 0xe74   :  { %v6207_v36 = vpop.eup %6206  ;;  %v2188_v17 = vmul.f32 %v2180_v16, %v6559_v48 }
 0xe75   :  { %v2181_v20 = vmul.f32 %v6207_v36, %v7180_v0  ;;  %v7217_v44 = vadd.f32 %v2187_v53, %v6566_v54 }
 0xe76   :  { %v7225_v24 = vadd.f32 %v2188_v17, %v6566_v54 }
 0xe77   :  { %v2202_v63 = vpack.c.bf16 %v7217_v44, %v7214_v56  ;;  %v2189_v7 = vmul.f32 %v2181_v20, %v6559_v48 }
 0xe78   :  { %v6209_v23 = vpop.eup %6208 }
 0xe79   :  { %v6211_v13 = vpop.eup %6210  ;;  %5671 = vmatprep.mubr.msk.bf16.mxu0 %vm92_vm0, %v2202_v63  ;;  %v7228_v0 = vadd.f32 %v2189_v7, %v6566_v54  ;;  %v2183_v31 = vmul.f32 %v6209_v23, %v7183_v28 }
 0xe7a   :  { %v2182_v21 = vmul.f32 %v6211_v13, %v7190_v11 }
 0xe7b   :  { %v2203_v37 = vpack.c.bf16 %v7228_v0, %v7225_v24  ;;  %v2191_v32 = vmul.f32 %v2183_v31, %v6559_v48 }
 0xe7c   :  { %v6213_v33 = vpop.eup %6212  ;;  %v2190_v39 = vmul.f32 %v2182_v21, %v6559_v48 }
 0xe7d   :  { %v6215_v49 = vpop.eup %6214  ;;  %5672 = vmatmul.mubr.msk.bf16.vlgmr.msra.gmra.mxu0 %vm92_vm0, %v2203_v37  ;;  %v7238_v35 = vadd.f32 %v2191_v32, %v6566_v54  ;;  %v2185_v29 = vmul.f32 %v6213_v33, %v7192_v57 }
 0xe7e   :  { %v7242_v28 = vadd.f32 %v2190_v39, %v6566_v54  ;;  %v2184_v11 = vmul.f32 %v6215_v49, %v7200_v2 }
 0xe7f   :  { %v2193_v6 = vmul.f32 %v2185_v29, %v6559_v48 }
 0xe80   :  { %v2204_v58 = vpack.c.bf16 %v7238_v35, %v7242_v28  ;;  %v2192_v4 = vmul.f32 %v2184_v11, %v6559_v48 }
 0xe81   :  { %v7250_v38 = vadd.f32 %v2193_v6, %v6566_v54 }
 0xe82   :  { %5675 = vmatprep.mubr.msk.bf16.mxu0 %vm92_vm0, %v2204_v58  ;;  %v7254_v14 = vadd.f32 %v2192_v4, %v6566_v54 }
 0xe83   :  { %8311 = vst [vmem:[#allocation13_spill] sm:$0xff] %v7250_v38 }
 0xe84   :  { %v2205_v57 = vpack.c.bf16 %v7250_v38, %v7254_v14 }
 0xe86   :  { %5676 = vmatmul.mubr.msk.bf16.gmra.mxu0 %vm92_vm0, %v2205_v57 }
 0xe87   :  { %5687 = vmatprep.mubr.msk.bf16.mxu0 %vm6418_vm1, %v8271_v3 }
 0xf3d   :  { %v5673_v2 = vpop.f32.mrf.mxu0 }
 0xf3e   :  { %v2261_v10 = vadd.f32 %v5673_v2, %v6598_v8 }
 0xf3f   :  { %v2252_v15 = vpop.f32.mrf.mxu0 }
 0xf40   :  { %v2253_v59 = vadd.f32 %v2252_v15, %v6598_v8 }
 0xf41   :  { %v5674_v41 = vpop.f32.mrf.mxu0 }
 0xf42   :  { %v2264_v50 = vadd.f32 %v5674_v41, %v6598_v8 }
 0xf43   :  { %v2255_v48 = vpop.f32.mrf.mxu0 }
 0xf44   :  { %v2256_v42 = vadd.f32 %v2255_v48, %v6598_v8  ;;  %v7271_v45 = vpack.c.bf16 %v2264_v50, %v2261_v10 }
 0xf46   :  { %v2283_v18 = vpack.c.bf16 %v2256_v42, %v2253_v59  ;;  %v5677_v54 = vpop.f32.mrf.mxu0 }
 0xf47   :  { %v2277_v36 = vadd.f32 %v5677_v54, %v6598_v8 }
 0xf48   :  { %2410 = vrot.lane.b32.xlu1 %v2283_v18, %s6419_s25  ;;  %2285 = vrot.lane.b32.xlu0 %v2283_v18, %s6420_s26  ;;  %v2268_v1 = vpop.f32.mrf.mxu0 }
 0xf49   :  { %v2269_v12 = vadd.f32 %v2268_v1, %v6598_v8 }
 0xf4a   :  { %v5678_v22 = vpop.f32.mrf.mxu0 }
 0xf4b   :  { %v2280_v53 = vadd.f32 %v5678_v22, %v6598_v8 }
 0xf4c   :  { %2408 = vrot.lane.b32.xlu1 %v2283_v18, %s6421_s27  ;;  %2533 = vrot.lane.b32.xlu0 %v2283_v18, %s6422_s28  ;;  %v2271_v27 = vpop.f32.mrf.mxu0 }
 0xf4d   :  { %v2272_v52 = vadd.f32 %v2271_v27, %v6598_v8  ;;  %v7306_v20 = vpack.c.bf16 %v2280_v53, %v2277_v36 }
 0xf4f   :  { %v7286_v16 = vpack.c.bf16 %v2272_v52, %v2269_v12 }
 0xf50   :  { %2535 = vrot.lane.b32.xlu1 %v2283_v18, %s6423_s29  ;;  %2658 = vrot.lane.b32.xlu0 %v2283_v18, %s6424_s0 }
 0xf54   :  { %2660 = vrot.lane.b32.xlu1 %v2283_v18, %s6425_s30  ;;  %2940 = vrot.lane.b32.xlu0 %v7271_v45, %s6419_s25 }
 0xf58   :  { %2815 = vrot.lane.b32.xlu1 %v7271_v45, %s6420_s26  ;;  %3065 = vrot.lane.b32.xlu0 %v7271_v45, %s6423_s29 }
 0xf5c   :  { %2938 = vrot.lane.b32.xlu1 %v7271_v45, %s6421_s27  ;;  %3190 = vrot.lane.b32.xlu0 %v7271_v45, %s6425_s30 }
 0xf60   :  { %3063 = vrot.lane.b32.xlu1 %v7271_v45, %s6422_s28  ;;  %3345 = vrot.lane.b32.xlu0 %v7286_v16, %s6420_s26 }
 0xf64   :  { %3188 = vrot.lane.b32.xlu1 %v7271_v45, %s6424_s0  ;;  %3468 = vrot.lane.b32.xlu0 %v7286_v16, %s6421_s27 }
 0xf68   :  { %3470 = vrot.lane.b32.xlu1 %v7286_v16, %s6419_s25  ;;  %3593 = vrot.lane.b32.xlu0 %v7286_v16, %s6422_s28 }
 0xf6c   :  { %3595 = vrot.lane.b32.xlu1 %v7286_v16, %s6423_s29  ;;  %3718 = vrot.lane.b32.xlu0 %v7286_v16, %s6424_s0 }
 0xf70   :  { %3720 = vrot.lane.b32.xlu1 %v7286_v16, %s6425_s30  ;;  %4000 = vrot.lane.b32.xlu0 %v7306_v20, %s6419_s25 }
 0xf74   :  { %3875 = vrot.lane.b32.xlu1 %v7306_v20, %s6420_s26  ;;  %4125 = vrot.lane.b32.xlu0 %v7306_v20, %s6423_s29  ;;  %s8314_s26 = smov 88  }
 0xf78   :  { %3998 = vrot.lane.b32.xlu1 %v7306_v20, %s6421_s27  ;;  %4250 = vrot.lane.b32.xlu0 %v7306_v20, %s6425_s30 }
 0xf7c   :  { %4123 = vrot.lane.b32.xlu1 %v7306_v20, %s6422_s28  ;;  %2361 = vrot.lane.b32.xlu0 %v2283_v18, %s8312_s1 }
 0xf80   :  { %4248 = vrot.lane.b32.xlu1 %v7306_v20, %s6424_s0  ;;  %2611 = vrot.lane.b32.xlu0 %v2283_v18, %s8313_s2 }
 0xf84   :  { %2486 = vrot.lane.b32.xlu1 %v2283_v18, %s8314_s26  ;;  %2736 = vrot.lane.b32.xlu0 %v2283_v18, %s8315_s13 }
 0xf88   :  { %2891 = vrot.lane.b32.xlu1 %v7271_v45, %s8312_s1  ;;  %3016 = vrot.lane.b32.xlu0 %v7271_v45, %s8314_s26 }
 0xf8c   :  { %3141 = vrot.lane.b32.xlu1 %v7271_v45, %s8313_s2  ;;  %3266 = vrot.lane.b32.xlu0 %v7271_v45, %s8315_s13 }
 0xf90   :  { %3421 = vrot.lane.b32.xlu1 %v7286_v16, %s8312_s1 }
 0xfba   :  { %v2286_v8 = vpop.permute.xlu0 %2285  ;;  %v2411_v63 = vpop.permute.xlu1 %2410 }
 0xfbb   :  { %v2291_v17 = vsel %vm239_vm2, %v2286_v8, 0  ;;  %v2416_v31 = vsel %vm239_vm2, %v2411_v63, 0 }
 0xfbc   :  { %5680 = vmatpush3.bf16.xpose.msra.mxu1 %v2291_v17 }
 0xfbd   :  { %5691 = vmatprep.subr.bf16.mxu1 %v8271_v3 }
 0xfbe   :  { %v2534_v7 = vpop.permute.xlu0 %2533  ;;  %v2409_v23 = vpop.permute.xlu1 %2408 }
 0xfc2   :  { %v2659_v13 = vpop.permute.xlu0 %2658  ;;  %v2536_v37 = vpop.permute.xlu1 %2535 }
 0xfc3   :  { %5682 = vmatmul.mubr.msk.bf16.vlgmr.msra.gmra.mxu1 %vm239_vm2, %v2283_v18  ;;  %v2541_v33 = vsel %vm239_vm2, %v2536_v37, 0 }
 0xfc4   :  { %5692 = vmatpush3.bf16.xpose.msra.mxu1 %v2416_v31  ;;  %5693 = vmatprep.mubr.msk.bf16.mxu1 %vm6418_vm1, %v8271_v3 }
 0xfc5   :  { %5703 = vmatprep.subr.bf16.mxu1 %v8271_v3 }
 0xfc6   :  { %v2941_v21 = vpop.permute.xlu0 %2940  ;;  %v2661_v49 = vpop.permute.xlu1 %2660 }
 0xfc7   :  { %v2666_v11 = vsel %vm239_vm2, %v2661_v49, 0  ;;  %v2946_v41 = vsel %vm239_vm2, %v2941_v21, 0  ;;  %v6403_v21 = vld [vmem:[%s8239_s8 + $0x8] sm:$0xff]  }
 0xfca   :  { %v3066_v32 = vpop.permute.xlu0 %3065  ;;  %v2816_v58 = vpop.permute.xlu1 %2815 }
 0xfcb   :  { %5694 = vmatmul.mubr.msk.bf16.vlgmr.msra.gmra.mxu1 %vm239_vm2, %v2409_v23  ;;  %v2821_v57 = vsel %vm239_vm2, %v2816_v58, 0  ;;  %v3071_v18 = vsel %vm239_vm2, %v3066_v32, 0  ;;  %v6404_v32 = vld [vmem:[%s8239_s8] sm:$0xff]  }
 0xfcc   :  { %5704 = vmatpush3.bf16.xpose.msra.mxu1 %v2541_v33  ;;  %5705 = vmatprep.mubr.msk.bf16.mxu1 %vm6418_vm1, %v8271_v3  ;;  %v6405_v33 = vld [vmem:[%s8241_s10 + $0x38] sm:$0xff]  }
 0xfcd   :  { %5715 = vmatprep.subr.bf16.mxu1 %v8271_v3 }
 0xfce   :  { %v3191_v39 = vpop.permute.xlu0 %3190  ;;  %v2939_v59 = vpop.permute.xlu1 %2938 }
 0xfcf   :  { %v3196_v1 = vsel %vm239_vm2, %v3191_v39, 0 }
 0xfd2   :  { %v3346_v29 = vpop.permute.xlu0 %3345  ;;  %v3064_v50 = vpop.permute.xlu1 %3063 }
 0xfd3   :  { %5706 = vmatmul.mubr.msk.bf16.vlgmr.msra.gmra.mxu1 %vm239_vm2, %v2534_v7 }
 0xfd4   :  { %5716 = vmatpush3.bf16.xpose.msra.mxu1 %v2666_v11  ;;  %5717 = vmatprep.mubr.msk.bf16.mxu1 %vm6418_vm1, %v8271_v3 }
 0xfd5   :  { %5727 = vmatprep.subr.bf16.mxu1 %v8271_v3 }
 0xfd6   :  { %v3469_v6 = vpop.permute.xlu0 %3468  ;;  %v3189_v10 = vpop.permute.xlu1 %3188 }
 0xfda   :  { %v3594_v4 = vpop.permute.xlu0 %3593  ;;  %v3471_v22 = vpop.permute.xlu1 %3470 }
 0xfdb   :  { %5718 = vmatmul.mubr.msk.bf16.vlgmr.msra.gmra.mxu1 %vm239_vm2, %v2659_v13  ;;  %v3476_v27 = vsel %vm239_vm2, %v3471_v22, 0 }
 0xfdc   :  { %5728 = vmatpush3.bf16.xpose.msra.mxu1 %v2821_v57  ;;  %5729 = vmatprep.mubr.msk.bf16.mxu1 %vm6418_vm1, %v8271_v3 }
 0xfdd   :  { %5739 = vmatprep.subr.bf16.mxu1 %v8271_v3 }
 0xfde   :  { %v3719_v2 = vpop.permute.xlu0 %3718  ;;  %v3596_v52 = vpop.permute.xlu1 %3595 }
 0xfdf   :  { %v3601_v12 = vsel %vm239_vm2, %v3596_v52, 0 }
 0xfe2   :  { %v4001_v15 = vpop.permute.xlu0 %4000  ;;  %v3721_v53 = vpop.permute.xlu1 %3720 }
 0xfe3   :  { %5730 = vmatmul.mubr.msk.bf16.vlgmr.msra.gmra.mxu1 %vm239_vm2, %v7271_v45  ;;  %v3351_v45 = vsel %vm239_vm2, %v3346_v29, 0  ;;  %v3726_v36 = vsel %vm239_vm2, %v3721_v53, 0  ;;  %v4006_v63 = vsel %vm239_vm2, %v4001_v15, 0 }
 0xfe4   :  { %5740 = vmatpush3.bf16.xpose.msra.mxu1 %v2946_v41  ;;  %5741 = vmatprep.mubr.msk.bf16.mxu1 %vm6418_vm1, %v8271_v3 }
 0xfe5   :  { %5751 = vmatprep.subr.bf16.mxu1 %v8271_v3 }
 0xfe6   :  { %v4126_v48 = vpop.permute.xlu0 %4125  ;;  %v3876_v8 = vpop.permute.xlu1 %3875 }
 0xfe7   :  { %v3881_v17 = vsel %vm239_vm2, %v3876_v8, 0  ;;  %v4131_v23 = vsel %vm239_vm2, %v4126_v48, 0 }
 0xfea   :  { %v4251_v42 = vpop.permute.xlu0 %4250  ;;  %v3999_v7 = vpop.permute.xlu1 %3998 }
 0xfeb   :  { %5742 = vmatmul.mubr.msk.bf16.vlgmr.msra.gmra.mxu1 %vm239_vm2, %v2939_v59  ;;  %v4256_v31 = vsel %vm239_vm2, %v4251_v42, 0 }
 0xfec   :  { %5752 = vmatpush3.bf16.xpose.msra.mxu1 %v3071_v18  ;;  %5753 = vmatprep.mubr.msk.bf16.mxu1 %vm6418_vm1, %v8271_v3 }
 0xfed   :  { %5763 = vmatprep.subr.bf16.mxu1 %v8271_v3 }
 0xfee   :  { %v2362_v54 = vpop.permute.xlu0 %2361  ;;  %v4124_v13 = vpop.permute.xlu1 %4123 }
 0xfef   :  { %5686 = vmatpush3.bf16.msra.mxu0 %v2362_v54 }
 0xff0   :  { %5697 = vmatprep.subr.bf16.mxu0 %v8271_v3 }
 0xff2   :  { %v4249_v37 = vpop.permute.xlu1 %4248 }
 0xff3   :  { %5754 = vmatmul.mubr.msk.bf16.vlgmr.msra.gmra.mxu1 %vm239_vm2, %v3064_v50 }
 0xff4   :  { %5764 = vmatpush3.bf16.xpose.msra.mxu1 %v3196_v1  ;;  %5765 = vmatprep.mubr.msk.bf16.mxu1 %vm6418_vm1, %v8271_v3 }
 0xff5   :  { %5775 = vmatprep.subr.bf16.mxu1 %v8271_v3 }
 0xffb   :  { %5766 = vmatmul.mubr.msk.bf16.vlgmr.msra.gmra.mxu1 %vm239_vm2, %v3189_v10 }
 0xffc   :  { %5776 = vmatpush3.bf16.xpose.msra.mxu1 %v3351_v45  ;;  %5777 = vmatprep.mubr.msk.bf16.mxu1 %vm6418_vm1, %v8271_v3 }
 0xffd   :  { %5787 = vmatprep.subr.bf16.mxu1 %v8271_v3 }
0x1003   :  { %5778 = vmatmul.mubr.msk.bf16.vlgmr.msra.gmra.mxu1 %vm239_vm2, %v7286_v16 }
0x1004   :  { %5788 = vmatpush3.bf16.xpose.msra.mxu1 %v3476_v27  ;;  %5789 = vmatprep.mubr.msk.bf16.mxu1 %vm6418_vm1, %v8271_v3 }
0x1005   :  { %5799 = vmatprep.subr.bf16.mxu1 %v8271_v3 }
0x100b   :  { %5790 = vmatmul.mubr.msk.bf16.vlgmr.msra.gmra.mxu1 %vm239_vm2, %v3469_v6 }
0x100c   :  { %5800 = vmatpush3.bf16.xpose.msra.mxu1 %v3601_v12  ;;  %5801 = vmatprep.mubr.msk.bf16.mxu1 %vm6418_vm1, %v8271_v3 }
0x100d   :  { %5811 = vmatprep.subr.bf16.mxu1 %v8271_v3 }
0x1013   :  { %5802 = vmatmul.mubr.msk.bf16.vlgmr.msra.gmra.mxu1 %vm239_vm2, %v3594_v4 }
0x1014   :  { %5812 = vmatpush3.bf16.xpose.msra.mxu1 %v3726_v36  ;;  %5813 = vmatprep.mubr.msk.bf16.mxu1 %vm6418_vm1, %v8271_v3 }
0x1015   :  { %5823 = vmatprep.subr.bf16.mxu1 %v8271_v3 }
0x101b   :  { %5814 = vmatmul.mubr.msk.bf16.vlgmr.msra.gmra.mxu1 %vm239_vm2, %v3719_v2 }
0x101c   :  { %5824 = vmatpush3.bf16.xpose.msra.mxu1 %v3881_v17  ;;  %5825 = vmatprep.mubr.msk.bf16.mxu1 %vm6418_vm1, %v8271_v3 }
0x101d   :  { %5835 = vmatprep.subr.bf16.mxu1 %v8271_v3 }
0x1023   :  { %5826 = vmatmul.mubr.msk.bf16.vlgmr.msra.gmra.mxu1 %vm239_vm2, %v7306_v20 }
0x1024   :  { %5836 = vmatpush3.bf16.xpose.msra.mxu1 %v4006_v63  ;;  %5837 = vmatprep.mubr.msk.bf16.mxu1 %vm6418_vm1, %v8271_v3 }
0x1025   :  { %5847 = vmatprep.subr.bf16.mxu1 %v8271_v3 }
0x102b   :  { %5838 = vmatmul.mubr.msk.bf16.vlgmr.msra.gmra.mxu1 %vm239_vm2, %v3999_v7 }
0x102c   :  { %5848 = vmatpush3.bf16.xpose.msra.mxu1 %v4131_v23  ;;  %5849 = vmatprep.mubr.msk.bf16.mxu1 %vm6418_vm1, %v8271_v3 }
0x102d   :  { %5859 = vmatprep.subr.bf16.mxu1 %v8271_v3 }
0x1033   :  { %5850 = vmatmul.mubr.msk.bf16.vlgmr.msra.gmra.mxu1 %vm239_vm2, %v4124_v13 }
0x1034   :  { %5860 = vmatpush3.bf16.xpose.msra.mxu1 %v4256_v31  ;;  %5861 = vmatprep.mubr.msk.bf16.mxu1 %vm6418_vm1, %v8271_v3  ;;  %v7583_v3 = vpop.permute.xlu1 %2486 }
0x1035   :  { %5871 = vmatprep.subr.bf16.mxu1 %v6403_v21 }
0x103b   :  { %5862 = vmatmul.mubr.msk.bf16.vlgmr.msra.gmra.mxu1 %vm239_vm2, %v4249_v37 }
0x103c   :  { %5872 = vmatpush3.bf16.msra.mxu1 %v6403_v21 }
0x103d   :  { %5873 = vmatprep.subr.bf16.mxu1 %v6404_v32 }
0x1040   :  { %5874 = vmatpush3.bf16.msra.mxu1 %v6404_v32 }
0x1041   :  { %5895 = vmatprep.subr.bf16.mxu1 %v6405_v33 }
0x1083   :  { %v2327_v39 = vpop.f32.mrf.mxu1 }
0x1084   :  { %v2334_v49 = vmul.f32 0.35355338, %v2327_v39 }
0x1085   :  { %v5683_v29 = vpop.f32.mrf.mxu1 }
0x1086   :  { %v7429_v11 = vadd.f32 %v2334_v49, %v6682_v40 }
0x1087   :  { %v2330_v6 = vpop.f32.mrf.mxu1 }
0x1088   :  { %v2335_v58 = vmul.f32 0.35355338, %v2330_v6  ;;  %v2338_v4 = vsel %vm295_vm3, %v7429_v11, -inf }
0x1089   :  { %2339 = vmax.xlane.f32.xlu0 %v2338_v4  ;;  %v5684_v57 = vpop.f32.mrf.mxu1 }
0x108a   :  { %v7434_v2 = vadd.f32 %v2335_v58, %v6682_v40 }
0x108b   :  { %v2452_v15 = vpop.f32.mrf.mxu1 }
0x108c   :  { %v2459_v41 = vmul.f32 0.35355338, %v2452_v15  ;;  %v2341_v48 = vsel %vm295_vm3, %v7434_v2, -inf }
0x108d   :  { %2342 = vmax.xlane.f32.xlu1 %v2341_v48  ;;  %v5695_v59 = vpop.f32.mrf.mxu1 }
0x108e   :  { %v7439_v42 = vadd.f32 %v2459_v41, %v6682_v40 }
0x108f   :  { %v2455_v18 = vpop.f32.mrf.mxu1 }
0x1090   :  { %v2460_v54 = vmul.f32 0.35355338, %v2455_v18  ;;  %v2463_v50 = vsel %vm295_vm3, %v7439_v42, -inf }
0x1091   :  { %2464 = vmax.xlane.f32.xlu0 %v2463_v50  ;;  %v5696_v1 = vpop.f32.mrf.mxu1 }
0x1092   :  { %v7444_v10 = vadd.f32 %v2460_v54, %v6682_v40 }
0x1093   :  { %v2577_v45 = vpop.f32.mrf.mxu1 }
0x1094   :  { %v2584_v22 = vmul.f32 0.35355338, %v2577_v45  ;;  %v2466_v27 = vsel %vm295_vm3, %v7444_v10, -inf }
0x1095   :  { %2467 = vmax.xlane.f32.xlu0 %v2466_v27  ;;  %v5707_v52 = vpop.f32.mrf.mxu1 }
0x1096   :  { %v7449_v12 = vadd.f32 %v2584_v22, %v6682_v40 }
0x1097   :  { %v2580_v53 = vpop.f32.mrf.mxu1 }
0x1098   :  { %v2585_v36 = vmul.f32 0.35355338, %v2580_v53  ;;  %v2588_v8 = vsel %vm295_vm3, %v7449_v12, -inf }
0x1099   :  { %2589 = vmax.xlane.f32.xlu0 %v2588_v8  ;;  %v5708_v17 = vpop.f32.mrf.mxu1 }
0x109a   :  { %v7454_v63 = vadd.f32 %v2585_v36, %v6682_v40 }
0x109b   :  { %v2702_v7 = vpop.f32.mrf.mxu1 }
0x109c   :  { %v2709_v23 = vmul.f32 0.35355338, %v2702_v7  ;;  %v2591_v13 = vsel %vm295_vm3, %v7454_v63, -inf }
0x109d   :  { %2592 = vmax.xlane.f32.xlu1 %v2591_v13  ;;  %v5719_v31 = vpop.f32.mrf.mxu1 }
0x109e   :  { %v7459_v21 = vadd.f32 %v2709_v23, %v6682_v40 }
0x109f   :  { %v2705_v37 = vpop.f32.mrf.mxu1 }
0x10a0   :  { %v2710_v32 = vmul.f32 0.35355338, %v2705_v37  ;;  %v2713_v33 = vsel %vm295_vm3, %v7459_v21, -inf }
0x10a1   :  { %2714 = vmax.xlane.f32.xlu0 %v2713_v33  ;;  %v5720_v39 = vpop.f32.mrf.mxu1 }
0x10a2   :  { %v7464_v49 = vadd.f32 %v2710_v32, %v6682_v40 }
0x10a3   :  { %v2857_v29 = vpop.f32.mrf.mxu1 }
0x10a4   :  { %v2864_v6 = vmul.f32 0.35355338, %v2857_v29  ;;  %v2716_v58 = vsel %vm295_vm3, %v7464_v49, -inf }
0x10a5   :  { %2717 = vmax.xlane.f32.xlu1 %v2716_v58  ;;  %v5731_v4 = vpop.f32.mrf.mxu1 }
0x10a6   :  { %v7469_v57 = vadd.f32 %v2864_v6, %v6717_v25 }
0x10a7   :  { %v2860_v15 = vpop.f32.mrf.mxu1 }
0x10a8   :  { %v2865_v41 = vmul.f32 0.35355338, %v2860_v15  ;;  %v2868_v48 = vsel %vm295_vm3, %v7469_v57, -inf }
0x10a9   :  { %2869 = vmax.xlane.f32.xlu0 %v2868_v48  ;;  %v5732_v59 = vpop.f32.mrf.mxu1 }
0x10aa   :  { %v7474_v18 = vadd.f32 %v2865_v41, %v6717_v25 }
0x10ab   :  { %v2982_v54 = vpop.f32.mrf.mxu1 }
0x10ac   :  { %v2989_v50 = vmul.f32 0.35355338, %v2982_v54  ;;  %v2871_v1 = vsel %vm295_vm3, %v7474_v18, -inf }
0x10ad   :  { %2872 = vmax.xlane.f32.xlu1 %v2871_v1  ;;  %v5743_v45 = vpop.f32.mrf.mxu1 }
0x10ae   :  { %v7479_v22 = vadd.f32 %v2989_v50, %v6717_v25 }
0x10af   :  { %v2985_v27 = vpop.f32.mrf.mxu1 }
0x10b0   :  { %v2990_v52 = vmul.f32 0.35355338, %v2985_v27  ;;  %v2993_v53 = vsel %vm295_vm3, %v7479_v22, -inf }
0x10b1   :  { %2994 = vmax.xlane.f32.xlu0 %v2993_v53  ;;  %v5744_v36 = vpop.f32.mrf.mxu1 }
0x10b2   :  { %v7484_v8 = vadd.f32 %v2990_v52, %v6717_v25 }
0x10b3   :  { %v3107_v17 = vpop.f32.mrf.mxu1 }
0x10b4   :  { %v3114_v7 = vmul.f32 0.35355338, %v3107_v17  ;;  %v2996_v23 = vsel %vm295_vm3, %v7484_v8, -inf }
0x10b5   :  { %2997 = vmax.xlane.f32.xlu1 %v2996_v23  ;;  %v5755_v13 = vpop.f32.mrf.mxu1 }
0x10b6   :  { %v7489_v31 = vadd.f32 %v3114_v7, %v6717_v25 }
0x10b7   :  { %v3110_v37 = vpop.f32.mrf.mxu1 }
0x10b8   :  { %v3115_v32 = vmul.f32 0.35355338, %v3110_v37  ;;  %v3118_v33 = vsel %vm295_vm3, %v7489_v31, -inf }
0x10b9   :  { %3119 = vmax.xlane.f32.xlu0 %v3118_v33  ;;  %v5756_v39 = vpop.f32.mrf.mxu1 }
0x10ba   :  { %v7494_v29 = vadd.f32 %v3115_v32, %v6717_v25 }
0x10bb   :  { %v3232_v6 = vpop.f32.mrf.mxu1 }
0x10bc   :  { %v3239_v58 = vmul.f32 0.35355338, %v3232_v6  ;;  %v3121_v4 = vsel %vm295_vm3, %v7494_v29, -inf }
0x10bd   :  { %3122 = vmax.xlane.f32.xlu1 %v3121_v4  ;;  %v5767_v15 = vpop.f32.mrf.mxu1 }
0x10be   :  { %v7499_v41 = vadd.f32 %v3239_v58, %v6717_v25 }
0x10bf   :  { %v3235_v48 = vpop.f32.mrf.mxu1 }
0x10c0   :  { %v3240_v59 = vmul.f32 0.35355338, %v3235_v48  ;;  %v3243_v54 = vsel %vm295_vm3, %v7499_v41, -inf }
0x10c1   :  { %3244 = vmax.xlane.f32.xlu0 %v3243_v54  ;;  %v5768_v50 = vpop.f32.mrf.mxu1 }
0x10c2   :  { %v7504_v1 = vadd.f32 %v3240_v59, %v6717_v25 }
0x10c3   :  { %v3387_v45 = vpop.f32.mrf.mxu1 }
0x10c4   :  { %v3394_v27 = vmul.f32 0.35355338, %v3387_v45  ;;  %v3246_v52 = vsel %vm295_vm3, %v7504_v1, -inf }
0x10c5   :  { %3247 = vmax.xlane.f32.xlu1 %v3246_v52  ;;  %v5779_v53 = vpop.f32.mrf.mxu1 }
0x10c6   :  { %v7509_v36 = vadd.f32 %v3394_v27, %v6682_v40 }
0x10c7   :  { %v3390_v17 = vpop.f32.mrf.mxu1 }
0x10c8   :  { %v3395_v7 = vmul.f32 0.35355338, %v3390_v17  ;;  %v3398_v23 = vsel %vm295_vm3, %v7509_v36, -inf }
0x10c9   :  { %3399 = vmax.xlane.f32.xlu0 %v3398_v23  ;;  %v5780_v13 = vpop.f32.mrf.mxu1 }
0x10ca   :  { %v7514_v37 = vadd.f32 %v3395_v7, %v6682_v40 }
0x10cb   :  { %v3512_v32 = vpop.f32.mrf.mxu1 }
0x10cc   :  { %v3519_v33 = vmul.f32 0.35355338, %v3512_v32  ;;  %v3401_v39 = vsel %vm295_vm3, %v7514_v37, -inf }
0x10cd   :  { %3402 = vmax.xlane.f32.xlu1 %v3401_v39  ;;  %v5791_v6 = vpop.f32.mrf.mxu1 }
0x10ce   :  { %v7519_v58 = vadd.f32 %v3519_v33, %v6682_v40 }
0x10cf   :  { %v3515_v4 = vpop.f32.mrf.mxu1 }
0x10d0   :  { %v3520_v15 = vmul.f32 0.35355338, %v3515_v4  ;;  %v3523_v48 = vsel %vm295_vm3, %v7519_v58, -inf }
0x10d1   :  { %3524 = vmax.xlane.f32.xlu0 %v3523_v48  ;;  %v5792_v59 = vpop.f32.mrf.mxu1 }
0x10d2   :  { %v7524_v54 = vadd.f32 %v3520_v15, %v6682_v40 }
0x10d3   :  { %v3637_v50 = vpop.f32.mrf.mxu1 }
0x10d4   :  { %v3644_v45 = vmul.f32 0.35355338, %v3637_v50  ;;  %v3526_v27 = vsel %vm295_vm3, %v7524_v54, -inf }
0x10d5   :  { %3527 = vmax.xlane.f32.xlu1 %v3526_v27  ;;  %v5803_v52 = vpop.f32.mrf.mxu1 }
0x10d6   :  { %v7529_v53 = vadd.f32 %v3644_v45, %v6682_v40 }
0x10d7   :  { %v3640_v17 = vpop.f32.mrf.mxu1 }
0x10d8   :  { %v3645_v7 = vmul.f32 0.35355338, %v3640_v17  ;;  %v3648_v23 = vsel %vm295_vm3, %v7529_v53, -inf }
0x10d9   :  { %3649 = vmax.xlane.f32.xlu0 %v3648_v23  ;;  %v5804_v13 = vpop.f32.mrf.mxu1 }
0x10da   :  { %v7534_v32 = vadd.f32 %v3645_v7, %v6682_v40 }
0x10db   :  { %v3762_v33 = vpop.f32.mrf.mxu1 }
0x10dc   :  { %v3769_v39 = vmul.f32 0.35355338, %v3762_v33  ;;  %v3651_v6 = vsel %vm295_vm3, %v7534_v32, -inf }
0x10dd   :  { %3652 = vmax.xlane.f32.xlu1 %v3651_v6  ;;  %v5815_v4 = vpop.f32.mrf.mxu1 }
0x10de   :  { %v7539_v15 = vadd.f32 %v3769_v39, %v6682_v40 }
0x10df   :  { %v3765_v48 = vpop.f32.mrf.mxu1 }
0x10e0   :  { %v3770_v59 = vmul.f32 0.35355338, %v3765_v48  ;;  %v3773_v50 = vsel %vm295_vm3, %v7539_v15, -inf }
0x10e1   :  { %3774 = vmax.xlane.f32.xlu0 %v3773_v50  ;;  %v5816_v45 = vpop.f32.mrf.mxu1 }
0x10e2   :  { %v7544_v27 = vadd.f32 %v3770_v59, %v6682_v40 }
0x10e3   :  { %v3917_v52 = vpop.f32.mrf.mxu1 }
0x10e4   :  { %v3924_v17 = vmul.f32 0.35355338, %v3917_v52  ;;  %v3776_v7 = vsel %vm295_vm3, %v7544_v27, -inf }
0x10e5   :  { %3777 = vmax.xlane.f32.xlu1 %v3776_v7  ;;  %v5827_v23 = vpop.f32.mrf.mxu1 }
0x10e6   :  { %v7549_v13 = vadd.f32 %v3924_v17, %v6717_v25 }
0x10e7   :  { %v3920_v33 = vpop.f32.mrf.mxu1 }
0x10e8   :  { %v3925_v39 = vmul.f32 0.35355338, %v3920_v33  ;;  %v3928_v6 = vsel %vm295_vm3, %v7549_v13, -inf }
0x10e9   :  { %3929 = vmax.xlane.f32.xlu0 %v3928_v6  ;;  %v5828_v4 = vpop.f32.mrf.mxu1 }
0x10ea   :  { %v7554_v40 = vadd.f32 %v3925_v39, %v6717_v25 }
0x10eb   :  { %v4042_v48 = vpop.f32.mrf.mxu1 }
0x10ec   :  { %v4049_v59 = vmul.f32 0.35355338, %v4042_v48  ;;  %v3931_v50 = vsel %vm295_vm3, %v7554_v40, -inf }
0x10ed   :  { %3932 = vmax.xlane.f32.xlu1 %v3931_v50  ;;  %v5839_v45 = vpop.f32.mrf.mxu1 }
0x10ee   :  { %v7559_v52 = vadd.f32 %v4049_v59, %v6717_v25 }
0x10ef   :  { %v4045_v17 = vpop.f32.mrf.mxu1 }
0x10f0   :  { %v4050_v7 = vmul.f32 0.35355338, %v4045_v17  ;;  %v4053_v23 = vsel %vm295_vm3, %v7559_v52, -inf }
0x10f1   :  { %4054 = vmax.xlane.f32.xlu0 %v4053_v23  ;;  %v5840_v33 = vpop.f32.mrf.mxu1 }
0x10f2   :  { %v7564_v39 = vadd.f32 %v4050_v7, %v6717_v25 }
0x10f3   :  { %v4167_v6 = vpop.f32.mrf.mxu1 }
0x10f4   :  { %v4174_v4 = vmul.f32 0.35355338, %v4167_v6  ;;  %v4056_v48 = vsel %vm295_vm3, %v7564_v39, -inf  ;;  %v7576_v6 = vpop.permute.xlu0 %2611 }
0x10f5   :  { %4057 = vmax.xlane.f32.xlu1 %v4056_v48  ;;  %v5851_v50 = vpop.f32.mrf.mxu1 }
0x10f6   :  { %v7569_v59 = vadd.f32 %v4174_v4, %v6717_v25 }
0x10f7   :  { %v4170_v45 = vpop.f32.mrf.mxu1 }
0x10f8   :  { %v4175_v17 = vmul.f32 0.35355338, %v4170_v45  ;;  %v4178_v19 = vsel %vm295_vm3, %v7569_v59, -inf  ;;  %v7587_v43 = vpop.permute.xlu0 %2736 }
0x10f9   :  { %4179 = vmax.xlane.f32.xlu0 %v4178_v19  ;;  %v5852_v23 = vpop.f32.mrf.mxu1 }
0x10fa   :  { %v7574_v7 = vadd.f32 %v4175_v17, %v6717_v25 }
0x10fb   :  { %v4292_v33 = vpop.f32.mrf.mxu1 }
0x10fc   :  { %v4299_v5 = vmul.f32 0.35355338, %v4292_v33  ;;  %v4181_v48 = vsel %vm295_vm3, %v7574_v7, -inf }
0x10fd   :  { %4182 = vmax.xlane.f32.xlu1 %v4181_v48  ;;  %v5863_v4 = vpop.f32.mrf.mxu1 }
0x10fe   :  { %v7581_v50 = vadd.f32 %v4299_v5, %v6717_v25  ;;  %v7594_v5 = vpop.permute.xlu1 %2891  ;;  %v7596_v4 = vpop.permute.xlu0 %3016 }
0x10ff   :  { %v4295_v45 = vpop.f32.mrf.mxu1 }
0x1100   :  { %v4300_v19 = vmul.f32 0.35355338, %v4295_v45  ;;  %v4303_v17 = vsel %vm295_vm3, %v7581_v50, -inf }
0x1101   :  { %4304 = vmax.xlane.f32.xlu1 %v4303_v17  ;;  %v5864_v23 = vpop.f32.mrf.mxu1 }
0x1102   :  { %v7590_v33 = vadd.f32 %v4300_v19, %v6717_v25  ;;  %v7598_v46 = vpop.permute.xlu1 %3141  ;;  %v7600_v45 = vpop.permute.xlu0 %3266 }
0x1104   :  { %v4306_v48 = vsel %vm295_vm3, %v7590_v33, -inf }
0x1105   :  { %4307 = vmax.xlane.f32.xlu1 %v4306_v48 }
0x1106   :  { %v7602_v9 = vpop.permute.xlu1 %3421 }
0x1112   :  { %v2340_v17 = vpop.xlane.xlu0 %2339 }
0x1113   :  { %v2344_v23 = vsub.f32 %v7429_v11, %v2340_v17 }
0x1115   :  { %v2346_v61 = vmul.f32 1.442695, %v2344_v23 }
0x1116   :  { %v2343_v25 = vpop.xlane.xlu1 %2342 }
0x1117   :  { %6216 = vpow2.f32 %v2346_v61  ;;  %v2345_v19 = vsub.f32 %v7434_v2, %v2343_v25 }
0x1119   :  { %v2348_v47 = vmul.f32 1.442695, %v2345_v19 }
0x111a   :  { %v2465_v48 = vpop.xlane.xlu0 %2464 }
0x111b   :  { %6218 = vpow2.f32 %v2348_v47  ;;  %v2469_v26 = vsub.f32 %v7439_v42, %v2465_v48 }
0x111d   :  { %v2471_v62 = vmul.f32 1.442695, %v2469_v26 }
0x111e   :  { %v2468_v51 = vpop.xlane.xlu0 %2467 }
0x111f   :  { %6220 = vpow2.f32 %v2471_v62  ;;  %v2470_v55 = vsub.f32 %v7444_v10, %v2468_v51 }
0x1121   :  { %v2473_v34 = vmul.f32 1.442695, %v2470_v55 }
0x1122   :  { %v2590_v30 = vpop.xlane.xlu0 %2589 }
0x1123   :  { %6222 = vpow2.f32 %v2473_v34  ;;  %v2594_v11 = vsub.f32 %v7449_v12, %v2590_v30 }
0x1124   :  { %v7609_v17 = vpop.eup %6216 }
0x1125   :  { %v2596_v61 = vmul.f32 1.442695, %v2594_v11  ;;  %v2350_v2 = vsel %vm295_vm3, %v7609_v17, 0.0 }
0x1126   :  { %v2593_v23 = vpop.xlane.xlu1 %2592  ;;  %2351 = vadd.xlane.f32.xlu0 %v2350_v2 }
0x1127   :  { %6224 = vpow2.f32 %v2596_v61  ;;  %v2595_v47 = vsub.f32 %v7454_v63, %v2593_v23 }
0x1128   :  { %v7614_v26 = vpop.eup %6218 }
0x1129   :  { %v2598_v62 = vmul.f32 1.442695, %v2595_v47  ;;  %v2353_v55 = vsel %vm295_vm3, %v7614_v26, 0.0 }
0x112a   :  { %2354 = vadd.xlane.f32.xlu1 %v2353_v55  ;;  %v2715_v34 = vpop.xlane.xlu0 %2714 }
0x112b   :  { %6226 = vpow2.f32 %v2598_v62  ;;  %v2719_v30 = vsub.f32 %v7459_v21, %v2715_v34 }
0x112c   :  { %v7619_v51 = vpop.eup %6220 }
0x112d   :  { %v2721_v42 = vmul.f32 1.442695, %v2719_v30  ;;  %v2475_v10 = vsel %vm295_vm3, %v7619_v51, 0.0 }
0x112e   :  { %v2718_v12 = vpop.xlane.xlu1 %2717  ;;  %2476 = vadd.xlane.f32.xlu0 %v2475_v10 }
0x112f   :  { %6228 = vpow2.f32 %v2721_v42  ;;  %v2720_v63 = vsub.f32 %v7464_v49, %v2718_v12 }
0x1130   :  { %v7624_v25 = vpop.eup %6222 }
0x1131   :  { %v2723_v19 = vmul.f32 1.442695, %v2720_v63  ;;  %v2478_v48 = vsel %vm295_vm3, %v7624_v25, 0.0 }
0x1132   :  { %2479 = vadd.xlane.f32.xlu1 %v2478_v48  ;;  %v2870_v11 = vpop.xlane.xlu0 %2869 }
0x1133   :  { %6230 = vpow2.f32 %v2723_v19  ;;  %v2874_v21 = vsub.f32 %v7469_v57, %v2870_v11 }
0x1134   :  { %v7629_v61 = vpop.eup %6224 }
0x1135   :  { %v2876_v2 = vmul.f32 1.442695, %v2874_v21  ;;  %v2600_v23 = vsel %vm295_vm3, %v7629_v61, 0.0 }
0x1136   :  { %v2873_v47 = vpop.xlane.xlu1 %2872  ;;  %2601 = vadd.xlane.f32.xlu0 %v2600_v23 }
0x1137   :  { %6232 = vpow2.f32 %v2876_v2  ;;  %v2875_v49 = vsub.f32 %v7474_v18, %v2873_v47 }
0x1138   :  { %v7634_v62 = vpop.eup %6226 }
0x1139   :  { %v2878_v55 = vmul.f32 1.442695, %v2875_v49  ;;  %v2603_v34 = vsel %vm295_vm3, %v7634_v62, 0.0 }
0x113a   :  { %2604 = vadd.xlane.f32.xlu1 %v2603_v34  ;;  %v2995_v42 = vpop.xlane.xlu0 %2994 }
0x113b   :  { %6234 = vpow2.f32 %v2878_v55 }
0x113c   :  { %v7638_v57 = vpop.eup %6228 }
0x113d   :  { %v2725_v30 = vsel %vm295_vm3, %v7638_v57, 0.0 }
0x113e   :  { %v2998_v10 = vpop.xlane.xlu1 %2997  ;;  %2726 = vadd.xlane.f32.xlu0 %v2725_v30 }
0x113f   :  { %v3000_v12 = vsub.f32 %v7484_v8, %v2998_v10 }
0x1140   :  { %v7643_v63 = vpop.eup %6230 }
0x1141   :  { %v3003_v18 = vmul.f32 1.442695, %v3000_v12  ;;  %v2728_v19 = vsel %vm295_vm3, %v7643_v63, 0.0 }
0x1142   :  { %2729 = vadd.xlane.f32.xlu1 %v2728_v19  ;;  %v3120_v48 = vpop.xlane.xlu0 %3119  ;;  %v2999_v19 = vsub.f32 %v7479_v22, %v2995_v42 }
0x1143   :  { %6236 = vpow2.f32 %v3003_v18  ;;  %v3124_v11 = vsub.f32 %v7489_v31, %v3120_v48 }
0x1144   :  { %v7648_v21 = vpop.eup %6232 }
0x1145   :  { %v3126_v2 = vmul.f32 1.442695, %v3124_v11  ;;  %v2880_v23 = vsel %vm295_vm3, %v7648_v21, 0.0  ;;  %v3001_v11 = vmul.f32 1.442695, %v2999_v19 }
0x1146   :  { %v3123_v47 = vpop.xlane.xlu1 %3122  ;;  %2881 = vadd.xlane.f32.xlu1 %v2880_v23 }
0x1147   :  { %6238 = vpow2.f32 %v3126_v2  ;;  %v3125_v8 = vsub.f32 %v7494_v29, %v3123_v47 }
0x1148   :  { %v7653_v49 = vpop.eup %6234 }
0x1149   :  { %v3128_v55 = vmul.f32 1.442695, %v3125_v8  ;;  %v2883_v34 = vsel %vm295_vm3, %v7653_v49, 0.0 }
0x114a   :  { %2884 = vadd.xlane.f32.xlu1 %v2883_v34 }
0x114b   :  { %6240 = vpow2.f32 %v3128_v55 }
0x114c   :  { %6242 = vpow2.f32 %v3001_v11  ;;  %v3245_v11 = vpop.xlane.xlu0 %3244 }
0x114e   :  { %v3248_v48 = vpop.xlane.xlu1 %3247 }
0x114f   :  { %v3250_v2 = vsub.f32 %v7504_v1, %v3248_v48 }
0x1150   :  { %v7657_v31 = vpop.eup %6236 }
0x1151   :  { %v3008_v30 = vsel %vm295_vm3, %v7657_v31, 0.0  ;;  %v3253_v47 = vmul.f32 1.442695, %v3250_v2 }
0x1152   :  { %3009 = vadd.xlane.f32.xlu1 %v3008_v30 }
0x1153   :  { %6244 = vpow2.f32 %v3253_v47  ;;  %v3400_v47 = vpop.xlane.xlu0 %3399 }
0x1154   :  { %v7661_v10 = vpop.eup %6238  ;;  %3546 = vrot.lane.b32.xlu0 %v7286_v16, %s8314_s26 }
0x1155   :  { %v3130_v29 = vsel %vm295_vm3, %v7661_v10, 0.0 }
0x1156   :  { %3131 = vadd.xlane.f32.xlu1 %v3130_v29  ;;  %v3403_v23 = vpop.xlane.xlu1 %3402 }
0x1157   :  { %v3405_v8 = vsub.f32 %v7514_v37, %v3403_v23 }
0x1158   :  { %v7667_v12 = vpop.eup %6240 }
0x1159   :  { %v3133_v18 = vsel %vm295_vm3, %v7667_v12, 0.0  ;;  %v3408_v34 = vmul.f32 1.442695, %v3405_v8 }
0x115a   :  { %3134 = vadd.xlane.f32.xlu1 %v3133_v18  ;;  %v7678_v18 = vpop.eup %6242 }
0x115b   :  { %6246 = vpow2.f32 %v3408_v34  ;;  %v3404_v34 = vsub.f32 %v7509_v36, %v3400_v47 }
0x115e   :  { %v3528_v55 = vpop.xlane.xlu1 %3527 }
0x115f   :  { %v3530_v30 = vsub.f32 %v7524_v54, %v3528_v55  ;;  %v3005_v54 = vsel %vm295_vm3, %v7678_v18, 0.0 }
0x1160   :  { %v7683_v48 = vpop.eup %6244 }
0x1161   :  { %v3533_v38 = vmul.f32 1.442695, %v3530_v30 }
0x1163   :  { %6248 = vpow2.f32 %v3533_v38  ;;  %v3258_v38 = vsel %vm295_vm3, %v7683_v48, 0.0 }
0x1166   :  { %v3653_v29 = vpop.xlane.xlu1 %3652 }
0x1167   :  { %v3655_v22 = vsub.f32 %v7534_v32, %v3653_v29  ;;  %v3249_v32 = vsub.f32 %v7499_v41, %v3245_v11  ;;  %v3525_v41 = vpop.xlane.xlu0 %3524 }
0x1168   :  { %v7688_v23 = vpop.eup %6246 }
0x1169   :  { %v3658_v1 = vmul.f32 1.442695, %v3655_v22  ;;  %v3251_v55 = vmul.f32 1.442695, %v3249_v32  ;;  %v3413_v30 = vsel %vm295_vm3, %v7688_v23, 0.0 }
0x116a   :  { %v3406_v22 = vmul.f32 1.442695, %v3404_v34 }
0x116b   :  { %3671 = vrot.lane.b32.xlu1 %v7286_v16, %s8313_s2  ;;  %6250 = vpow2.f32 %v3658_v1  ;;  %v3529_v1 = vsub.f32 %v7519_v58, %v3525_v41 }
0x116d   :  { %v3531_v11 = vmul.f32 1.442695, %v3529_v1 }
0x116e   :  { %v3778_v42 = vpop.xlane.xlu1 %3777 }
0x116f   :  { %v3780_v37 = vsub.f32 %v7544_v27, %v3778_v42 }
0x1170   :  { %v7694_v29 = vpop.eup %6248 }
0x1171   :  { %v3783_v19 = vmul.f32 1.442695, %v3780_v37 }
0x1173   :  { %3006 = vadd.xlane.f32.xlu0 %v3005_v54  ;;  %6252 = vpow2.f32 %v3783_v19  ;;  %v3650_v19 = vpop.xlane.xlu0 %3649 }
0x1174   :  { %v3654_v32 = vsub.f32 %v7529_v53, %v3650_v19 }
0x1176   :  { %v3933_v2 = vpop.xlane.xlu1 %3932  ;;  %v3656_v47 = vmul.f32 1.442695, %v3654_v32 }
0x1177   :  { %v3935_v27 = vsub.f32 %v7554_v40, %v3933_v2  ;;  %3259 = vadd.xlane.f32.xlu0 %v3258_v38  ;;  %v3538_v40 = vsel %vm295_vm3, %v7694_v29, 0.0  ;;  %v3775_v58 = vpop.xlane.xlu0 %3774 }
0x1178   :  { %v7699_v37 = vpop.eup %6250 }
0x1179   :  { %v3938_v8 = vmul.f32 1.442695, %v3935_v27  ;;  %v3663_v2 = vsel %vm295_vm3, %v7699_v37, 0.0  ;;  %v3779_v27 = vsub.f32 %v7539_v15, %v3775_v58 }
0x117b   :  { %6254 = vpow2.f32 %v3938_v8  ;;  %3414 = vadd.xlane.f32.xlu0 %v3413_v30 }
0x117c   :  { %6256 = vpow2.f32 %v3251_v55  ;;  %v3930_v55 = vpop.xlane.xlu0 %3929 }
0x117d   :  { %6258 = vpow2.f32 %v3406_v22  ;;  %v3781_v22 = vmul.f32 1.442695, %v3779_v27  ;;  %v3934_v1 = vsub.f32 %v7549_v13, %v3930_v55 }
0x117e   :  { %v4058_v42 = vpop.xlane.xlu1 %4057 }
0x117f   :  { %v4060_v36 = vsub.f32 %v7564_v39, %v4058_v42  ;;  %3539 = vadd.xlane.f32.xlu0 %v3538_v40  ;;  %v3936_v40 = vmul.f32 1.442695, %v3934_v1 }
0x1180   :  { %v7705_v38 = vpop.eup %6252  ;;  %v4055_v15 = vpop.xlane.xlu0 %4054 }
0x1181   :  { %v4063_v54 = vmul.f32 1.442695, %v4060_v36  ;;  %v3788_v39 = vsel %vm295_vm3, %v7705_v38, 0.0 }
0x1183   :  { %6260 = vpow2.f32 %v4063_v54  ;;  %3664 = vadd.xlane.f32.xlu0 %v3663_v2 }
0x1184   :  { %6262 = vpow2.f32 %v3531_v11  ;;  %v4180_v54 = vpop.xlane.xlu0 %4179 }
0x1185   :  { %6264 = vpow2.f32 %v3656_v47  ;;  %v4184_v2 = vsub.f32 %v7569_v59, %v4180_v54 }
0x1186   :  { %v4183_v8 = vpop.xlane.xlu1 %4182 }
0x1187   :  { %v4185_v34 = vsub.f32 %v7574_v7, %v4183_v8  ;;  %3789 = vadd.xlane.f32.xlu0 %v3788_v39  ;;  %v4059_v7 = vsub.f32 %v7559_v52, %v4055_v15  ;;  %v4186_v27 = vmul.f32 1.442695, %v4184_v2 }
0x1188   :  { %v7711_v53 = vpop.eup %6254 }
0x1189   :  { %v4188_v30 = vmul.f32 1.442695, %v4185_v34  ;;  %v3943_v41 = vsel %vm295_vm3, %v7711_v53, 0.0  ;;  %v7716_v42 = vpop.eup %6256  ;;  %v4061_v32 = vmul.f32 1.442695, %v4059_v7 }
0x118a   :  { %v3255_v19 = vsel %vm295_vm3, %v7716_v42, 0.0  ;;  %v7721_v36 = vpop.eup %6258  ;;  %v4305_v47 = vpop.xlane.xlu1 %4304 }
0x118b   :  { %6266 = vpow2.f32 %v4188_v30  ;;  %3944 = vadd.xlane.f32.xlu0 %v3943_v41  ;;  %v3410_v52 = vsel %vm295_vm3, %v7721_v36, 0.0  ;;  %v4309_v8 = vsub.f32 %v7581_v50, %v4305_v47 }
0x118c   :  { %6268 = vpow2.f32 %v3781_v22 }
0x118d   :  { %6270 = vpow2.f32 %v3936_v40  ;;  %v4311_v30 = vmul.f32 1.442695, %v4309_v8 }
0x118e   :  { %6272 = vpow2.f32 %v4061_v32  ;;  %v4308_v2 = vpop.xlane.xlu1 %4307 }
0x118f   :  { %3256 = vadd.xlane.f32.xlu1 %v3255_v19  ;;  %6274 = vpow2.f32 %v4186_v27  ;;  %v4310_v27 = vsub.f32 %v7590_v33, %v4308_v2  ;;  %v8316_v2 = vmov 0.0  }
0x1190   :  { %v7723_v11 = vpop.eup %6260  ;;  %6276 = vpow2.f32 %v4311_v30 }
0x1191   :  { %v4068_v13 = vsel %vm295_vm3, %v7723_v11, 0.0  ;;  %v7730_v58 = vpop.eup %6262 }
0x1192   :  { %4069 = vadd.xlane.f32.xlu0 %v4068_v13  ;;  %v3535_v39 = vsel %vm295_vm3, %v7730_v58, 0.0  ;;  %v7735_v55 = vpop.eup %6264 }
0x1193   :  { %3411 = vadd.xlane.f32.xlu1 %v3410_v52  ;;  %v3660_v41 = vsel %vm295_vm3, %v7735_v55, 0.0 }
0x1197   :  { %3536 = vadd.xlane.f32.xlu1 %v3535_v39  ;;  %v4313_v39 = vmul.f32 1.442695, %v4310_v27 }
0x1198   :  { %v7737_v34 = vpop.eup %6266 }
0x1199   :  { %v4193_v59 = vsel %vm295_vm3, %v7737_v34, 0.0  ;;  %v7743_v22 = vpop.eup %6268 }
0x119a   :  { %4194 = vadd.xlane.f32.xlu0 %v4193_v59  ;;  %v3785_v50 = vsel %vm295_vm3, %v7743_v22, 0.0  ;;  %v7747_v1 = vpop.eup %6270 }
0x119b   :  { %3661 = vadd.xlane.f32.xlu1 %v3660_v41  ;;  %v3940_v15 = vsel %vm295_vm3, %v7747_v1, 0.0  ;;  %v7751_v40 = vpop.eup %6272 }
0x119c   :  { %v4065_v7 = vsel %vm295_vm3, %v7751_v40, 0.0  ;;  %v7755_v19 = vpop.eup %6274 }
0x119d   :  { %v4190_v54 = vsel %vm295_vm3, %v7755_v19, 0.0  ;;  %v7759_v13 = vpop.eup %6276 }
0x119e   :  { %v4315_v32 = vsel %vm295_vm3, %v7759_v13, 0.0 }
0x119f   :  { %3786 = vadd.xlane.f32.xlu1 %v3785_v50 }
0x11a3   :  { %3941 = vadd.xlane.f32.xlu1 %v3940_v15 }
0x11a7   :  { %4066 = vadd.xlane.f32.xlu1 %v4065_v7 }
0x11ab   :  { %4191 = vadd.xlane.f32.xlu1 %v4190_v54 }
0x11af   :  { %4316 = vadd.xlane.f32.xlu1 %v4315_v32  ;;  %v2352_v52 = vpop.xlane.xlu0 %2351 }
0x11b0   :  { %3796 = vrot.lane.b32.xlu0 %v7286_v16, %s8315_s13  ;;  %6278 = vrcp.f32 %v2352_v52 }
0x11b3   :  { %v2355_v47 = vpop.xlane.xlu1 %2354 }
0x11b4   :  { %6280 = vrcp.f32 %v2355_v47 }
0x11b7   :  { %v2477_v8 = vpop.xlane.xlu0 %2476 }
0x11b8   :  { %6282 = vrcp.f32 %v2477_v8 }
0x11bb   :  { %v2480_v59 = vpop.xlane.xlu1 %2479 }
0x11bc   :  { %6284 = vrcp.f32 %v2480_v59 }
0x11bd   :  { %6286 = vpow2.f32 %v4313_v39  ;;  %v6279_v30 = vpop.eup %6278 }
0x11be   :  { %v2358_v15 = vmul.f32 %v6279_v30, %v7609_v17 }
0x11bf   :  { %v2602_v41 = vpop.xlane.xlu0 %2601 }
0x11c0   :  { %3951 = vrot.lane.b32.xlu1 %v7306_v20, %s8312_s1  ;;  %6288 = vrcp.f32 %v2602_v41 }
0x11c1   :  { %v6281_v50 = vpop.eup %6280 }
0x11c2   :  { %v2359_v16 = vmul.f32 %v6281_v50, %v7614_v26 }
0x11c3   :  { %v2605_v7 = vpop.xlane.xlu1 %2604 }
0x11c4   :  { %6290 = vrcp.f32 %v2605_v7  ;;  %4076 = vrot.lane.b32.xlu1 %v7306_v20, %s8314_s26  ;;  %v2360_v33 = vpack.c.bf16 %v2359_v16, %v2358_v15 }
0x11c5   :  { %v6283_v54 = vpop.eup %6282 }
0x11c6   :  { %5688 = vmatmul.mubr.msk.bf16.vlgmr.msra.gmra.mxu0 %vm295_vm3, %v2360_v33  ;;  %v2483_v26 = vmul.f32 %v6283_v54, %v7619_v51 }
0x11c7   :  { %5698 = vmatpush3.bf16.msra.mxu0 %v7583_v3  ;;  %v2727_v32 = vpop.xlane.xlu0 %2726  ;;  %5699 = vmatprep.mubr.msk.bf16.mxu0 %vm6418_vm1, %v8316_v2 }
0x11c8   :  { %4201 = vrot.lane.b32.xlu1 %v7306_v20, %s8313_s2  ;;  %5709 = vmatprep.subr.bf16.mxu0 %v8316_v2  ;;  %6292 = vrcp.f32 %v2727_v32 }
0x11c9   :  { %v6285_v17 = vpop.eup %6284 }
0x11ca   :  { %v2484_v52 = vmul.f32 %v6285_v17, %v7624_v25  ;;  %v7781_v47 = vpop.eup %6286 }
0x11cb   :  { %v2730_v27 = vpop.xlane.xlu1 %2729  ;;  %v4318_v8 = vsel %vm295_vm3, %v7781_v47, 0.0 }
0x11cc   :  { %6294 = vrcp.f32 %v2730_v27  ;;  %4326 = vrot.lane.b32.xlu1 %v7306_v20, %s8315_s13  ;;  %v2485_v3 = vpack.c.bf16 %v2484_v52, %v2483_v26 }
0x11cd   :  { %v6289_v39 = vpop.eup %6288 }
0x11ce   :  { %5700 = vmatmul.mubr.msk.bf16.vlgmr.msra.gmra.mxu0 %vm295_vm3, %v2485_v3  ;;  %v2608_v20 = vmul.f32 %v6289_v39, %v7629_v61 }
0x11cf   :  { %5710 = vmatpush3.bf16.msra.mxu0 %v7576_v6  ;;  %v2882_v59 = vpop.xlane.xlu1 %2881  ;;  %4319 = vadd.xlane.f32.xlu0 %v4318_v8 }
0x11d0   :  { %5711 = vmatprep.mubr.msk.bf16.mxu0 %vm6418_vm1, %v8316_v2  ;;  %5721 = vmatprep.subr.bf16.mxu0 %v8316_v2  ;;  %6296 = vrcp.f32 %v2882_v59 }
0x11d1   :  { %v6291_v51 = vpop.eup %6290 }
0x11d2   :  { %v2609_v25 = vmul.f32 %v6291_v51, %v7634_v62 }
0x11d3   :  { %v2885_v30 = vpop.xlane.xlu1 %2884 }
0x11d4   :  { %6298 = vrcp.f32 %v2885_v30  ;;  %v2610_v41 = vpack.c.bf16 %v2609_v25, %v2608_v20 }
0x11d5   :  { %v6293_v50 = vpop.eup %6292 }
0x11d6   :  { %5712 = vmatmul.mubr.msk.bf16.vlgmr.msra.gmra.mxu0 %vm295_vm3, %v2610_v41  ;;  %v2733_v15 = vmul.f32 %v6293_v50, %v7638_v57  ;;  %v3547_v57 = vpop.permute.xlu0 %3546 }
0x11d7   :  { %5722 = vmatpush3.bf16.msra.mxu0 %v7587_v43  ;;  %5723 = vmatprep.mubr.msk.bf16.mxu0 %vm6418_vm1, %v8316_v2 }
0x11d8   :  { %5733 = vmatprep.subr.bf16.mxu0 %v8316_v2 }
0x11d9   :  { %v6295_v6 = vpop.eup %6294 }
0x11da   :  { %v2734_v61 = vmul.f32 %v6295_v6, %v7643_v63 }
0x11dc   :  { %v2735_v16 = vpack.c.bf16 %v2734_v61, %v2733_v15 }
0x11dd   :  { %v6297_v62 = vpop.eup %6296 }
0x11de   :  { %5724 = vmatmul.mubr.msk.bf16.vlgmr.msra.gmra.mxu0 %vm295_vm3, %v2735_v16  ;;  %v2888_v7 = vmul.f32 %v6297_v62, %v7648_v21 }
0x11df   :  { %5734 = vmatpush3.bf16.msra.mxu0 %v7594_v5  ;;  %5735 = vmatprep.mubr.msk.bf16.mxu0 %vm6418_vm1, %v8316_v2  ;;  %v3010_v5 = vpop.xlane.xlu1 %3009 }
0x11e0   :  { %5745 = vmatprep.subr.bf16.mxu0 %v8316_v2  ;;  %6300 = vrcp.f32 %v3010_v5 }
0x11e1   :  { %v6299_v43 = vpop.eup %6298 }
0x11e2   :  { %v2889_v33 = vmul.f32 %v6299_v43, %v7653_v49 }
0x11e3   :  { %v3132_v63 = vpop.xlane.xlu1 %3131 }
0x11e4   :  { %v2890_v54 = vpack.c.bf16 %v2889_v33, %v2888_v7 }
0x11e6   :  { %5736 = vmatmul.mubr.msk.bf16.vlgmr.msra.gmra.mxu0 %vm295_vm3, %v2890_v54 }
0x11e7   :  { %5746 = vmatpush3.bf16.msra.mxu0 %v7596_v4  ;;  %5747 = vmatprep.mubr.msk.bf16.mxu0 %vm6418_vm1, %v8316_v2  ;;  %v3135_v17 = vpop.xlane.xlu1 %3134 }
0x11e8   :  { %5757 = vmatprep.subr.bf16.mxu0 %v8316_v2 }
0x11eb   :  { %v3672_v59 = vpop.permute.xlu1 %3671 }
0x11ed   :  { %v6301_v21 = vpop.eup %6300 }
0x11ee   :  { %v3014_v4 = vmul.f32 %v6301_v21, %v7657_v31 }
0x11fc   :  { %v3007_v32 = vpop.xlane.xlu0 %3006 }
0x11fd   :  { %6302 = vrcp.f32 %v3007_v32 }
0x11fe   :  { %6304 = vrcp.f32 %v3135_v17 }
0x11ff   :  { %6306 = vrcp.f32 %v3132_v63 }
0x120a   :  { %v6303_v49 = vpop.eup %6302 }
0x120b   :  { %v3013_v26 = vmul.f32 %v6303_v49, %v7678_v18  ;;  %v6305_v27 = vpop.eup %6304  ;;  %v3260_v18 = vpop.xlane.xlu0 %3259 }
0x120c   :  { %v6307_v3 = vpop.eup %6306  ;;  %v3139_v8 = vmul.f32 %v6305_v27, %v7667_v12  ;;  %6308 = vrcp.f32 %v3260_v18 }
0x120d   :  { %v3015_v52 = vpack.c.bf16 %v3014_v4, %v3013_v26  ;;  %v3138_v39 = vmul.f32 %v6307_v3, %v7661_v10 }
0x120f   :  { %5748 = vmatmul.mubr.msk.bf16.vlgmr.msra.gmra.mxu0 %vm295_vm3, %v3015_v52  ;;  %v3140_v51 = vpack.c.bf16 %v3139_v8, %v3138_v39 }
0x1210   :  { %5758 = vmatpush3.bf16.msra.mxu0 %v7598_v46  ;;  %5759 = vmatprep.mubr.msk.bf16.mxu0 %vm6418_vm1, %v8316_v2  ;;  %v3415_v46 = vpop.xlane.xlu0 %3414 }
0x1211   :  { %5769 = vmatprep.subr.bf16.mxu0 %v8316_v2 }
0x1214   :  { %v3540_v12 = vpop.xlane.xlu0 %3539 }
0x1217   :  { %5760 = vmatmul.mubr.msk.bf16.vlgmr.msra.gmra.mxu0 %vm295_vm3, %v3140_v51 }
0x1218   :  { %5770 = vmatpush3.bf16.msra.mxu0 %v7600_v45  ;;  %v3257_v31 = vpop.xlane.xlu1 %3256  ;;  %5771 = vmatprep.mubr.msk.bf16.mxu0 %vm6418_vm1, %v8316_v2  ;;  %v3665_v6 = vpop.xlane.xlu0 %3664 }
0x1219   :  { %6310 = vrcp.f32 %v3257_v31  ;;  %5781 = vmatprep.subr.bf16.mxu0 %v8316_v2  ;;  %v6309_v25 = vpop.eup %6308 }
0x121a   :  { %v3264_v50 = vmul.f32 %v6309_v25, %v7683_v48 }
0x121c   :  { %v3412_v20 = vpop.xlane.xlu1 %3411 }
0x121d   :  { %6312 = vrcp.f32 %v3412_v20 }
0x121e   :  { %6314 = vrcp.f32 %v3415_v46 }
0x1220   :  { %v3537_v10 = vpop.xlane.xlu1 %3536 }
0x1221   :  { %6316 = vrcp.f32 %v3537_v10 }
0x1222   :  { %6318 = vrcp.f32 %v3540_v12 }
0x1224   :  { %v3662_v41 = vpop.xlane.xlu1 %3661 }
0x1225   :  { %6320 = vrcp.f32 %v3662_v41 }
0x1226   :  { %v6311_v30 = vpop.eup %6310  ;;  %6322 = vrcp.f32 %v3665_v6 }
0x1227   :  { %v3263_v45 = vmul.f32 %v6311_v30, %v7716_v42  ;;  %v3790_v42 = vpop.xlane.xlu0 %3789 }
0x1228   :  { %v3787_v62 = vpop.xlane.xlu1 %3786 }
0x1229   :  { %v3265_v15 = vpack.c.bf16 %v3264_v50, %v3263_v45  ;;  %6324 = vrcp.f32 %v3787_v62 }
0x122a   :  { %v6313_v61 = vpop.eup %6312  ;;  %6326 = vrcp.f32 %v3790_v42 }
0x122b   :  { %5772 = vmatmul.mubr.msk.bf16.vlgmr.msra.gmra.mxu0 %vm295_vm3, %v3265_v15  ;;  %v6315_v16 = vpop.eup %6314  ;;  %v3418_v43 = vmul.f32 %v6313_v61, %v7721_v36  ;;  %v6406_v61 = vld [vmem:[%s8240_s9 + $0x8] sm:$0xff]  }
0x122c   :  { %5782 = vmatpush3.bf16.msra.mxu0 %v7602_v9  ;;  %5783 = vmatprep.mubr.msk.bf16.mxu0 %vm6418_vm1, %v8316_v2  ;;  %v3419_v48 = vmul.f32 %v6315_v16, %v7688_v23  ;;  %v3942_v54 = vpop.xlane.xlu1 %3941  ;;  %v3945_v9 = vpop.xlane.xlu0 %3944 }
0x122d   :  { %5793 = vmatprep.subr.bf16.mxu0 %v8316_v2  ;;  %6328 = vrcp.f32 %v3942_v54 }
0x122e   :  { %v3420_v7 = vpack.c.bf16 %v3419_v48, %v3418_v43  ;;  %v6317_v33 = vpop.eup %6316  ;;  %6330 = vrcp.f32 %v3945_v9  ;;  %v6407_v43 = vld [vmem:[%s8240_s9] sm:$0xff]   ;;  %s8318_s9 = smov 16  }
0x122f   :  { %v6319_v5 = vpop.eup %6318  ;;  %v3543_v36 = vmul.f32 %v6317_v33, %v7730_v58 }
0x1230   :  { %v3544_v63 = vmul.f32 %v6319_v5, %v7694_v29  ;;  %v4070_v23 = vpop.xlane.xlu0 %4069  ;;  %v4067_v32 = vpop.xlane.xlu1 %4066 }
0x1231   :  { %6332 = vrcp.f32 %v4067_v32 }
0x1232   :  { %v3545_v17 = vpack.c.bf16 %v3544_v63, %v3543_v36  ;;  %v6321_v21 = vpop.eup %6320  ;;  %6334 = vrcp.f32 %v4070_v23 }
0x1233   :  { %5784 = vmatmul.mubr.msk.bf16.vlgmr.msra.gmra.mxu0 %vm295_vm3, %v3420_v7  ;;  %v6323_v49 = vpop.eup %6322  ;;  %v3668_v58 = vmul.f32 %v6321_v21, %v7735_v55 }
0x1234   :  { %5794 = vmatpush3.bf16.msra.mxu0 %v3547_v57  ;;  %5795 = vmatprep.mubr.msk.bf16.mxu0 %vm6418_vm1, %v8316_v2  ;;  %v4195_v57 = vpop.xlane.xlu0 %4194  ;;  %v4192_v26 = vpop.xlane.xlu1 %4191  ;;  %v3669_v29 = vmul.f32 %v6323_v49, %v7699_v37 }
0x1235   :  { %5805 = vmatprep.subr.bf16.mxu0 %v8316_v2  ;;  %6336 = vrcp.f32 %v4192_v26 }
0x1236   :  { %v3670_v4 = vpack.c.bf16 %v3669_v29, %v3668_v58  ;;  %v6325_v52 = vpop.eup %6324  ;;  %6338 = vrcp.f32 %v4195_v57 }
0x1237   :  { %v6327_v3 = vpop.eup %6326  ;;  %v3793_v55 = vmul.f32 %v6325_v52, %v7743_v22 }
0x1238   :  { %v3797_v27 = vpop.permute.xlu0 %3796  ;;  %v4317_v8 = vpop.xlane.xlu1 %4316  ;;  %v3794_v39 = vmul.f32 %v6327_v3, %v7705_v38 }
0x1239   :  { %6340 = vrcp.f32 %v4317_v8 }
0x123a   :  { %v3795_v37 = vpack.c.bf16 %v3794_v39, %v3793_v55 }
0x123b   :  { %5796 = vmatmul.mubr.msk.bf16.vlgmr.msra.gmra.mxu0 %vm295_vm3, %v3545_v17 }
0x123c   :  { %5806 = vmatpush3.bf16.msra.mxu0 %v3672_v59  ;;  %5807 = vmatprep.mubr.msk.bf16.mxu0 %vm6418_vm1, %v8316_v2  ;;  %v6329_v59 = vpop.eup %6328  ;;  %v3952_v18 = vpop.permute.xlu1 %3951 }
0x123d   :  { %5817 = vmatprep.subr.bf16.mxu0 %v8316_v2  ;;  %v6331_v51 = vpop.eup %6330  ;;  %v3948_v31 = vmul.f32 %v6329_v59, %v7747_v1 }
0x123e   :  { %v3949_v22 = vmul.f32 %v6331_v51, %v7711_v53  ;;  %v6333_v38 = vpop.eup %6332 }
0x123f   :  { %v6335_v10 = vpop.eup %6334  ;;  %v4073_v12 = vmul.f32 %v6333_v38, %v7751_v40 }
0x1240   :  { %v3950_v46 = vpack.c.bf16 %v3949_v22, %v3948_v31  ;;  %v4077_v20 = vpop.permute.xlu1 %4076  ;;  %v4074_v1 = vmul.f32 %v6335_v10, %v7723_v11 }
0x1242   :  { %v4075_v53 = vpack.c.bf16 %v4074_v1, %v4073_v12  ;;  %v6337_v30 = vpop.eup %6336 }
0x1243   :  { %5808 = vmatmul.mubr.msk.bf16.vlgmr.msra.gmra.mxu0 %vm295_vm3, %v3670_v4  ;;  %v6339_v45 = vpop.eup %6338  ;;  %v4198_v50 = vmul.f32 %v6337_v30, %v7755_v19 }
0x1244   :  { %5818 = vmatpush3.bf16.msra.mxu0 %v3797_v27  ;;  %5819 = vmatprep.mubr.msk.bf16.mxu0 %vm6418_vm1, %v8316_v2  ;;  %v4202_v41 = vpop.permute.xlu1 %4201  ;;  %v4199_v40 = vmul.f32 %v6339_v45, %v7737_v34 }
0x1245   :  { %5829 = vmatprep.subr.bf16.mxu0 %v8316_v2 }
0x1246   :  { %v4200_v6 = vpack.c.bf16 %v4199_v40, %v4198_v50  ;;  %v6341_v15 = vpop.eup %6340 }
0x1247   :  { %v4323_v19 = vmul.f32 %v6341_v15, %v7759_v13 }
0x1248   :  { %v4327_v11 = vpop.permute.xlu1 %4326 }
0x124b   :  { %5820 = vmatmul.mubr.msk.bf16.vlgmr.msra.gmra.mxu0 %vm295_vm3, %v3795_v37 }
0x124c   :  { %5830 = vmatpush3.bf16.msra.mxu0 %v3952_v18  ;;  %5831 = vmatprep.mubr.msk.bf16.mxu0 %vm6418_vm1, %v8316_v2 }
0x124d   :  { %5841 = vmatprep.subr.bf16.mxu0 %v8316_v2 }
0x1253   :  { %5832 = vmatmul.mubr.msk.bf16.vlgmr.msra.gmra.mxu0 %vm295_vm3, %v3950_v46 }
0x1254   :  { %5842 = vmatpush3.bf16.msra.mxu0 %v4077_v20  ;;  %5843 = vmatprep.mubr.msk.bf16.mxu0 %vm6418_vm1, %v8316_v2 }
0x1255   :  { %5853 = vmatprep.subr.bf16.mxu0 %v8316_v2 }
0x1258   :  { %v4320_v25 = vpop.xlane.xlu0 %4319 }
0x1259   :  { %6342 = vrcp.f32 %v4320_v25 }
0x125b   :  { %5844 = vmatmul.mubr.msk.bf16.vlgmr.msra.gmra.mxu0 %vm295_vm3, %v4075_v53 }
0x125c   :  { %5854 = vmatpush3.bf16.msra.mxu0 %v4202_v41  ;;  %5855 = vmatprep.mubr.msk.bf16.mxu0 %vm6418_vm1, %v8316_v2 }
0x125d   :  { %5865 = vmatprep.subr.bf16.mxu0 %v8316_v2 }
0x1263   :  { %5856 = vmatmul.mubr.msk.bf16.vlgmr.msra.gmra.mxu0 %vm295_vm3, %v4200_v6 }
0x1264   :  { %5866 = vmatpush3.bf16.msra.mxu0 %v4327_v11  ;;  %5867 = vmatprep.mubr.msk.bf16.mxu0 %vm6418_vm1, %v8316_v2 }
0x1265   :  { %5883 = vmatprep.subr.bf16.mxu0 %v6406_v61 }
0x1266   :  { %v6343_v16 = vpop.eup %6342 }
0x1267   :  { %v4324_v62 = vmul.f32 %v6343_v16, %v7781_v47 }
0x1269   :  { %v4325_v34 = vpack.c.bf16 %v4324_v62, %v4323_v19 }
0x126b   :  { %5868 = vmatmul.mubr.msk.bf16.vlgmr.msra.gmra.mxu0 %vm295_vm3, %v4325_v34 }
0x126c   :  { %5884 = vmatpush3.bf16.msra.mxu0 %v6406_v61 }
0x126d   :  { %5885 = vmatprep.subr.bf16.mxu0 %v6407_v43 }
0x1270   :  { %5886 = vmatpush3.bf16.msra.mxu0 %v6407_v43 }
0x1271   :  { %5919 = vmatprep.subr.bf16.mxu0 %v8316_v2 }
0x1286   :  { %v7885_v42 = vpop.f32.mrf.mxu0 }
0x1288   :  { %v5689_v48 = vpop.f32.mrf.mxu0 }
0x128a   :  { %v7887_v7 = vpop.f32.mrf.mxu0 }
0x128c   :  { %v5690_v13 = vpop.f32.mrf.mxu0 }
0x128e   :  { %v2526_v33 = vpop.f32.mrf.mxu0 }
0x1290   :  { %v5701_v47 = vpop.f32.mrf.mxu0 }
0x1292   :  { %v2529_v54 = vpop.f32.mrf.mxu0 }
0x1293   :  { %v6008_v5 = vpack.i.bf16 %v2529_v54, %v2526_v33 }
0x1294   :  { %v5702_v9 = vpop.f32.mrf.mxu0 }
0x1295   :  { %6009 = vrot.lane.b32.xlu0 %v6008_v5, %s8317_s22 }
0x1296   :  { %v2651_v36 = vpop.f32.mrf.mxu0 }
0x1298   :  { %v5713_v63 = vpop.f32.mrf.mxu0 }
0x129a   :  { %v2654_v23 = vpop.f32.mrf.mxu0 }
0x129b   :  { %v6013_v32 = vpack.i.bf16 %v2654_v23, %v2651_v36 }
0x129c   :  { %v5714_v17 = vpop.f32.mrf.mxu0 }
0x129d   :  { %6014 = vrot.lane.b32.xlu1 %v6013_v32, %s8318_s9 }
0x129e   :  { %v2776_v21 = vpop.f32.mrf.mxu0 }
0x12a0   :  { %v5725_v49 = vpop.f32.mrf.mxu0 }
0x12a2   :  { %v2779_v57 = vpop.f32.mrf.mxu0 }
0x12a3   :  { %v6018_v58 = vpack.i.bf16 %v2779_v57, %v2776_v21 }
0x12a4   :  { %v5726_v26 = vpop.f32.mrf.mxu0 }
0x12a5   :  { %6019 = vrot.lane.b32.xlu1 %v6018_v58, %s8319_s7 }
0x12a6   :  { %v7892_v29 = vpop.f32.mrf.mxu0 }
0x12a8   :  { %v5737_v4 = vpop.f32.mrf.mxu0 }
0x12aa   :  { %v7894_v52 = vpop.f32.mrf.mxu0 }
0x12ac   :  { %v5738_v27 = vpop.f32.mrf.mxu0 }
0x12cf   :  { %v3056_v3 = vpop.f32.mrf.mxu0 }
0x12d1   :  { %v5749_v8 = vpop.f32.mrf.mxu0 }
0x12d3   :  { %v3059_v55 = vpop.f32.mrf.mxu0 }
0x12d4   :  { %v6023_v39 = vpack.i.bf16 %v3059_v55, %v3056_v3 }
0x12d5   :  { %v5750_v37 = vpop.f32.mrf.mxu0 }
0x12d6   :  { %6024 = vrot.lane.b32.xlu1 %v6023_v39, %s8317_s22 }
0x12d7   :  { %v3181_v59 = vpop.f32.mrf.mxu0 }
0x12d9   :  { %v5761_v18 = vpop.f32.mrf.mxu0 }
0x12db   :  { %v3184_v51 = vpop.f32.mrf.mxu0 }
0x12dc   :  { %v6028_v31 = vpack.i.bf16 %v3184_v51, %v3181_v59 }
0x12dd   :  { %v5762_v22 = vpop.f32.mrf.mxu0 }
0x12de   :  { %6029 = vrot.lane.b32.xlu1 %v6028_v31, %s8318_s9 }
0x12eb   :  { %v3306_v46 = vpop.f32.mrf.mxu0 }
0x12ed   :  { %v5773_v38 = vpop.f32.mrf.mxu0 }
0x12ef   :  { %v3309_v20 = vpop.f32.mrf.mxu0 }
0x12f0   :  { %v6033_v10 = vpack.i.bf16 %v3309_v20, %v3306_v46 }
0x12f1   :  { %v5774_v12 = vpop.f32.mrf.mxu0 }
0x12f2   :  { %6034 = vrot.lane.b32.xlu1 %v6033_v10, %s8319_s7 }
0x12f3   :  { %v7899_v1 = vpop.f32.mrf.mxu0 }
0x12f5   :  { %v5785_v25 = vpop.f32.mrf.mxu0 }
0x12f7   :  { %v7901_v53 = vpop.f32.mrf.mxu0 }
0x12f9   :  { %v5786_v30 = vpop.f32.mrf.mxu0 }
0x12fb   :  { %v3586_v41 = vpop.f32.mrf.mxu0 }
0x12fd   :  { %v5797_v45 = vpop.f32.mrf.mxu0 }
0x12ff   :  { %v3589_v50 = vpop.f32.mrf.mxu0 }
0x1300   :  { %v6038_v40 = vpack.i.bf16 %v3589_v50, %v3586_v41 }
0x1301   :  { %v5798_v6 = vpop.f32.mrf.mxu0 }
0x1302   :  { %6039 = vrot.lane.b32.xlu1 %v6038_v40, %s8317_s22 }
0x1303   :  { %v3711_v11 = vpop.f32.mrf.mxu0 }
0x1305   :  { %v5809_v15 = vpop.f32.mrf.mxu0 }
0x1307   :  { %v3714_v61 = vpop.f32.mrf.mxu0  ;;  %v6010_v13 = vpop.permute.xlu0 %6009 }
0x1308   :  { %v6043_v16 = vpack.i.bf16 %v3714_v61, %v3711_v11  ;;  %v6012_v5 = vunpack.i.h.bf16 %v6010_v13  ;;  %v6011_v9 = vunpack.i.l.bf16 %v6010_v13 }
0x1309   :  { %v5810_v19 = vpop.f32.mrf.mxu0 }
0x130a   :  { %6044 = vrot.lane.b32.xlu0 %v6043_v16, %s8318_s9  ;;  %v2808_v21 = vsel %vm239_vm2, %v7887_v7, %v6012_v5  ;;  %v2807_v49 = vsel %vm239_vm2, %v7885_v42, %v6011_v9  ;;  %v6412_v5 = vld [vmem:[%s8241_s10 + $0x18] sm:$0xff]   ;;  %v6413_v9 = vld [vmem:[%s8241_s10 + $0x10] sm:$0xff]  }
0x130b   :  { %v3836_v62 = vpop.f32.mrf.mxu0 }
0x130d   :  { %v5821_v34 = vpop.f32.mrf.mxu0 }
0x130f   :  { %v3839_v43 = vpop.f32.mrf.mxu0  ;;  %v6015_v47 = vpop.permute.xlu1 %6014 }
0x1310   :  { %v6048_v48 = vpack.i.bf16 %v3839_v43, %v3836_v62  ;;  %v6017_v36 = vunpack.i.h.bf16 %v6015_v47  ;;  %v6016_v63 = vunpack.i.l.bf16 %v6015_v47  ;;  %v6411_v47 = vld [vmem:[%s8241_s10 + $0x20] sm:$0xff]  }
0x1311   :  { %v5822_v33 = vpop.f32.mrf.mxu0 }
0x1312   :  { %6049 = vrot.lane.b32.xlu0 %v6048_v48, %s8319_s7  ;;  %v2809_v26 = vsel %vm295_vm3, %v2807_v49, %v6016_v63  ;;  %v2810_v4 = vsel %vm295_vm3, %v2808_v21, %v6017_v36  ;;  %v6410_v33 = vld [vmem:[%s8241_s10 + $0x28] sm:$0xff]  }
0x1313   :  { %v7906_v54 = vpop.f32.mrf.mxu0 }
0x1315   :  { %v5833_v23 = vpop.f32.mrf.mxu0 }
0x1316   :  { %v6414_v23 = vld [vmem:[%s8241_s10 + $0x8] sm:$0xff]  }
0x1317   :  { %v6020_v32 = vpop.permute.xlu1 %6019  ;;  %v7908_v17 = vpop.f32.mrf.mxu0 }
0x1318   :  { %v6022_v57 = vunpack.i.h.bf16 %v6020_v32  ;;  %v6021_v58 = vunpack.i.l.bf16 %v6020_v32 }
0x1319   :  { %v5834_v27 = vpop.f32.mrf.mxu0 }
0x131a   :  { %v2811_v3 = vsel %vm769_vm4, %v2809_v26, %v6021_v58  ;;  %v2812_v8 = vsel %vm769_vm4, %v2810_v4, %v6022_v57  ;;  %v6415_v26 = vld [vmem:[%s8241_s10] sm:$0xff]  }
0x131b   :  { %v4403_v55 = vpack.c.bf16 %v2812_v8, %v2811_v3  ;;  %v4116_v39 = vpop.f32.mrf.mxu0 }
0x131d   :  { %v5845_v37 = vpop.f32.mrf.mxu0  ;;  %5875 = vmatprep.mubr.msk.bf16.mxu1 %vm92_vm0, %v4403_v55 }
0x131f   :  { %v4119_v7 = vpop.f32.mrf.mxu0 }
0x1320   :  { %v6053_v59 = vpack.i.bf16 %v4119_v7, %v4116_v39 }
0x1321   :  { %v5846_v18 = vpop.f32.mrf.mxu0 }
0x1322   :  { %6054 = vrot.lane.b32.xlu1 %v6053_v59, %s8317_s22 }
0x1323   :  { %v4241_v42 = vpop.f32.mrf.mxu0 }
0x1325   :  { %v5857_v51 = vpop.f32.mrf.mxu0 }
0x1327   :  { %v4244_v31 = vpop.f32.mrf.mxu0 }
0x1328   :  { %v6058_v22 = vpack.i.bf16 %v4244_v31, %v4241_v42 }
0x1329   :  { %v5858_v46 = vpop.f32.mrf.mxu0 }
0x132a   :  { %6059 = vrot.lane.b32.xlu1 %v6058_v22, %s8318_s9 }
0x132b   :  { %v4366_v38 = vpop.f32.mrf.mxu0 }
0x132d   :  { %v5869_v20 = vpop.f32.mrf.mxu0 }
0x132f   :  { %v4369_v10 = vpop.f32.mrf.mxu0 }
0x1330   :  { %v6063_v12 = vpack.i.bf16 %v4369_v10, %v4366_v38 }
0x1331   :  { %v5870_v25 = vpop.f32.mrf.mxu0 }
0x1332   :  { %6064 = vrot.lane.b32.xlu0 %v6063_v12, %s8319_s7 }
0x1348   :  { %v6025_v30 = vpop.permute.xlu1 %6024 }
0x1349   :  { %v6027_v45 = vunpack.i.h.bf16 %v6025_v30  ;;  %v6026_v50 = vunpack.i.l.bf16 %v6025_v30 }
0x134b   :  { %v3338_v15 = vsel %vm239_vm2, %v7894_v52, %v6027_v45  ;;  %v3337_v61 = vsel %vm239_vm2, %v7892_v29, %v6026_v50  ;;  %v6408_v52 = vld [vmem:[%s8241_s10 + $0x38] sm:$0xff]   ;;  %v6409_v29 = vld [vmem:[%s8241_s10 + $0x30] sm:$0xff]   ;;  %s6433_s10 = smov 32  }
0x1350   :  { %v6030_v41 = vpop.permute.xlu1 %6029 }
0x1351   :  { %v6032_v40 = vunpack.i.h.bf16 %v6030_v41  ;;  %v6031_v6 = vunpack.i.l.bf16 %v6030_v41 }
0x1353   :  { %v3340_v62 = vsel %vm295_vm3, %v3338_v15, %v6032_v40  ;;  %v3339_v34 = vsel %vm295_vm3, %v3337_v61, %v6031_v6 }
0x1364   :  { %v6035_v11 = vpop.permute.xlu1 %6034 }
0x1365   :  { %v6037_v16 = vunpack.i.h.bf16 %v6035_v11  ;;  %v6036_v19 = vunpack.i.l.bf16 %v6035_v11 }
0x1367   :  { %v3342_v43 = vsel %vm769_vm4, %v3340_v62, %v6037_v16  ;;  %v3341_v48 = vsel %vm769_vm4, %v3339_v34, %v6036_v19 }
0x1368   :  { %v4404_v13 = vpack.c.bf16 %v3342_v43, %v3341_v48 }
0x136a   :  { %5876 = vmatmul.mubr.msk.bf16.vlgmr.msra.gmra.mxu1 %vm92_vm0, %v4404_v13 }
0x136b   :  { %5896 = vmatpush3.bf16.msra.mxu1 %v6408_v52 }
0x136c   :  { %5897 = vmatprep.subr.bf16.mxu1 %v6409_v29 }
0x136f   :  { %5898 = vmatpush3.bf16.msra.mxu1 %v6409_v29 }
0x1370   :  { %5899 = vmatprep.subr.bf16.mxu1 %v6410_v33 }
0x1373   :  { %5900 = vmatpush3.bf16.msra.mxu1 %v6410_v33 }
0x1374   :  { %5901 = vmatprep.subr.bf16.mxu1 %v6411_v47  ;;  %v6040_v36 = vpop.permute.xlu1 %6039 }
0x1375   :  { %v6042_v32 = vunpack.i.h.bf16 %v6040_v36  ;;  %v6041_v21 = vunpack.i.l.bf16 %v6040_v36 }
0x1377   :  { %5902 = vmatpush3.bf16.msra.mxu1 %v6411_v47  ;;  %v3868_v4 = vsel %vm239_vm2, %v7901_v53, %v6042_v32  ;;  %v3867_v27 = vsel %vm239_vm2, %v7899_v1, %v6041_v21  ;;  %v8320_v32 = vld [vmem:[#allocation13_spill] sm:$0xff] }
0x1378   :  { %5903 = vmatprep.subr.bf16.mxu1 %v6412_v5 }
0x137b   :  { %5904 = vmatpush3.bf16.msra.mxu1 %v6412_v5 }
0x137c   :  { %5905 = vmatprep.subr.bf16.mxu1 %v6413_v9  ;;  %v6045_v63 = vpop.permute.xlu0 %6044 }
0x137d   :  { %v6047_v49 = vunpack.i.h.bf16 %v6045_v63  ;;  %v6046_v57 = vunpack.i.l.bf16 %v6045_v63 }
0x137f   :  { %5906 = vmatpush3.bf16.msra.mxu1 %v6413_v9  ;;  %v3870_v55 = vsel %vm295_vm3, %v3868_v4, %v6047_v49  ;;  %v3869_v39 = vsel %vm295_vm3, %v3867_v27, %v6046_v57 }
0x1380   :  { %5907 = vmatprep.subr.bf16.mxu1 %v6414_v23 }
0x1383   :  { %5908 = vmatpush3.bf16.msra.mxu1 %v6414_v23 }
0x1384   :  { %v6050_v58 = vpop.permute.xlu0 %6049  ;;  %5909 = vmatprep.subr.bf16.mxu1 %v6415_v26 }
0x1385   :  { %v6052_v3 = vunpack.i.h.bf16 %v6050_v58  ;;  %v6051_v8 = vunpack.i.l.bf16 %v6050_v58 }
0x1387   :  { %v3871_v37 = vsel %vm769_vm4, %v3869_v39, %v6051_v8  ;;  %v3872_v7 = vsel %vm769_vm4, %v3870_v55, %v6052_v3  ;;  %5910 = vmatpush3.bf16.msra.mxu1 %v6415_v26 }
0x1388   :  { %v4405_v59 = vpack.c.bf16 %v3872_v7, %v3871_v37  ;;  %5947 = vmatprep.subr.bf16.mxu1 %v8316_v2 }
0x138a   :  { %5879 = vmatprep.mubr.msk.bf16.mxu1 %vm92_vm0, %v4405_v59 }
0x1394   :  { %v6055_v53 = vpop.permute.xlu1 %6054 }
0x1395   :  { %v6057_v42 = vunpack.i.h.bf16 %v6055_v53  ;;  %v6056_v1 = vunpack.i.l.bf16 %v6055_v53 }
0x1397   :  { %v4398_v46 = vsel %vm239_vm2, %v7908_v17, %v6057_v42  ;;  %v4397_v38 = vsel %vm239_vm2, %v7906_v54, %v6056_v1 }
0x139c   :  { %v6060_v18 = vpop.permute.xlu1 %6059 }
0x139d   :  { %v6062_v51 = vunpack.i.h.bf16 %v6060_v18  ;;  %v6061_v31 = vunpack.i.l.bf16 %v6060_v18 }
0x139f   :  { %v4400_v12 = vsel %vm295_vm3, %v4398_v46, %v6062_v51  ;;  %v4399_v25 = vsel %vm295_vm3, %v4397_v38, %v6061_v31 }
0x13a4   :  { %v6065_v22 = vpop.permute.xlu0 %6064 }
0x13a5   :  { %v6067_v20 = vunpack.i.h.bf16 %v6065_v22  ;;  %v6066_v10 = vunpack.i.l.bf16 %v6065_v22 }
0x13a7   :  { %v4402_v30 = vsel %vm769_vm4, %v4400_v12, %v6067_v20  ;;  %v4401_v41 = vsel %vm769_vm4, %v4399_v25, %v6066_v10 }
0x13a8   :  { %v4406_v45 = vpack.c.bf16 %v4402_v30, %v4401_v41 }
0x13aa   :  { %5880 = vmatmul.mubr.msk.bf16.gmra.mxu1 %vm92_vm0, %v4406_v45 }
0x142a   :  { %v5877_v50 = vpop.f32.mrf.mxu1 }
0x142b   :  { %v4462_v61 = vadd.f32 %v5877_v50, %v6946_v60 }
0x142c   :  { %v4453_v40 = vpop.f32.mrf.mxu1 }
0x142d   :  { %v4454_v17 = vadd.f32 %v4453_v40, %v6946_v60  ;;  %v4486_v43 = vadd.f32 %v4462_v61, %v7225_v24 }
0x142e   :  { %v5878_v6 = vpop.f32.mrf.mxu1 }
0x142f   :  { %v4484_v54 = vadd.f32 %v4454_v17, %v7214_v56  ;;  %v4465_v11 = vadd.f32 %v5878_v6, %v6946_v60  ;;  %v4498_v13 = vsel %vm92_vm0, %v4486_v43, 0.0 }
0x1430   :  { %v4456_v15 = vpop.f32.mrf.mxu1 }
0x1431   :  { %v4487_v16 = vadd.f32 %v4465_v11, %v7228_v0  ;;  %v4457_v19 = vadd.f32 %v4456_v15, %v6946_v60  ;;  %v4492_v62 = vsel %vm92_vm0, %v4484_v54, 0.0 }
0x1432   :  { %4493 = vadd.xlane.f32.xlu1 %v4492_v62 }
0x1433   :  { %v4485_v34 = vadd.f32 %v4457_v19, %v7217_v44  ;;  %v4501_v56 = vsel %vm92_vm0, %v4487_v16, 0.0 }
0x1435   :  { %v4495_v48 = vsel %vm92_vm0, %v4485_v34, 0.0 }
0x1436   :  { %4496 = vadd.xlane.f32.xlu0 %v4495_v48  ;;  %4502 = vadd.xlane.f32.xlu1 %v4501_v56 }
0x143a   :  { %4499 = vadd.xlane.f32.xlu0 %v4498_v13 }
0x146a   :  { %v5881_v52 = vpop.f32.mrf.mxu1 }
0x146b   :  { %v4478_v29 = vadd.f32 %v5881_v52, %v6946_v60 }
0x146c   :  { %v4469_v0 = vpop.f32.mrf.mxu1 }
0x146d   :  { %v4470_v33 = vadd.f32 %v4469_v0, %v6946_v60  ;;  %v4490_v24 = vadd.f32 %v4478_v29, %v7254_v14 }
0x146e   :  { %v5882_v47 = vpop.f32.mrf.mxu1 }
0x146f   :  { %v4488_v44 = vadd.f32 %v4470_v33, %v7242_v28  ;;  %v4481_v9 = vadd.f32 %v5882_v47, %v6946_v60  ;;  %v4510_v49 = vsel %vm92_vm0, %v4490_v24, 0.0 }
0x1470   :  { %v4472_v5 = vpop.f32.mrf.mxu1 }
0x1471   :  { %v4473_v36 = vadd.f32 %v4472_v5, %v6946_v60  ;;  %v4504_v63 = vsel %vm92_vm0, %v4488_v44, 0.0  ;;  %v4491_v21 = vadd.f32 %v4481_v9, %v8320_v32 }
0x1472   :  { %4505 = vadd.xlane.f32.xlu0 %v4504_v63  ;;  %v8321_v63 = vld [vmem:[#allocation3_spill] sm:$0xff] }
0x1473   :  { %v4489_v23 = vadd.f32 %v4473_v36, %v7238_v35  ;;  %v4513_v28 = vsel %vm92_vm0, %v4491_v21, 0.0 }
0x1475   :  { %v4507_v57 = vsel %vm92_vm0, %v4489_v23, 0.0 }
0x1476   :  { %4511 = vadd.xlane.f32.xlu0 %v4510_v49  ;;  %4508 = vadd.xlane.f32.xlu1 %v4507_v57 }
0x147a   :  { %4514 = vadd.xlane.f32.xlu1 %v4513_v28  ;;  %v8322_v28 = vld [vmem:[#allocation4_spill] sm:$0xff] }
0x14bb   :  { %v4494_v14 = vpop.xlane.xlu1 %4493 }
0x14bc   :  { %v4516_v58 = vmul.f32 0.03125, %v4494_v14 }
0x14be   :  { %v7998_v26 = vsub.f32 %v4484_v54, %v4516_v58 }
0x14bf   :  { %v4497_v60 = vpop.xlane.xlu0 %4496  ;;  %v4503_v4 = vpop.xlane.xlu1 %4502 }
0x14c0   :  { %v4517_v27 = vmul.f32 0.03125, %v4497_v60  ;;  %v4519_v3 = vmul.f32 0.03125, %v4503_v4  ;;  %v4532_v35 = vmul.f32 %v7998_v26, %v7998_v26 }
0x14c2   :  { %v4525_v8 = vsub.f32 %v4485_v34, %v4517_v27  ;;  %v8002_v55 = vsub.f32 %v4487_v16, %v4519_v3  ;;  %v4540_v39 = vsel %vm92_vm0, %v4532_v35, 0.0 }
0x14c3   :  { %v4500_v37 = vpop.xlane.xlu0 %4499  ;;  %4541 = vadd.xlane.f32.xlu0 %v4540_v39 }
0x14c4   :  { %v4518_v7 = vmul.f32 0.03125, %v4500_v37  ;;  %v4533_v59 = vmul.f32 %v4525_v8, %v4525_v8  ;;  %v4535_v42 = vmul.f32 %v8002_v55, %v8002_v55 }
0x14c6   :  { %v4526_v53 = vsub.f32 %v4486_v43, %v4518_v7  ;;  %v4543_v18 = vsel %vm92_vm0, %v4533_v59, 0.0  ;;  %v4549_v31 = vsel %vm92_vm0, %v4535_v42, 0.0 }
0x14c7   :  { %4544 = vadd.xlane.f32.xlu1 %v4543_v18 }
0x14c8   :  { %v4534_v1 = vmul.f32 %v4526_v53, %v4526_v53 }
0x14ca   :  { %v4546_v51 = vsel %vm92_vm0, %v4534_v1, 0.0 }
0x14cb   :  { %4547 = vadd.xlane.f32.xlu0 %v4546_v51  ;;  %4550 = vadd.xlane.f32.xlu1 %v4549_v31 }
0x14fb   :  { %v4506_v22 = vpop.xlane.xlu0 %4505 }
0x14fc   :  { %v4520_v46 = vmul.f32 0.03125, %v4506_v22 }
0x14fe   :  { %v8010_v38 = vsub.f32 %v4488_v44, %v4520_v46 }
0x14ff   :  { %v4512_v20 = vpop.xlane.xlu0 %4511  ;;  %v4509_v10 = vpop.xlane.xlu1 %4508 }
0x1500   :  { %v4522_v12 = vmul.f32 0.03125, %v4512_v20  ;;  %v4521_v25 = vmul.f32 0.03125, %v4509_v10  ;;  %v4536_v30 = vmul.f32 %v8010_v38, %v8010_v38 }
0x1502   :  { %v8014_v41 = vsub.f32 %v4490_v24, %v4522_v12  ;;  %v8016_v45 = vsub.f32 %v4489_v23, %v4521_v25  ;;  %v4552_v50 = vsel %vm92_vm0, %v4536_v30, 0.0 }
0x1503   :  { %4553 = vadd.xlane.f32.xlu0 %v4552_v50  ;;  %v4515_v40 = vpop.xlane.xlu1 %4514 }
0x1504   :  { %v4523_v17 = vmul.f32 0.03125, %v4515_v40  ;;  %v4538_v6 = vmul.f32 %v8014_v41, %v8014_v41  ;;  %v4537_v54 = vmul.f32 %v8016_v45, %v8016_v45 }
0x1506   :  { %v8023_v11 = vsub.f32 %v4491_v21, %v4523_v17  ;;  %v4558_v15 = vsel %vm92_vm0, %v4538_v6, 0.0  ;;  %v4555_v61 = vsel %vm92_vm0, %v4537_v54, 0.0 }
0x1507   :  { %4559 = vadd.xlane.f32.xlu0 %v4558_v15  ;;  %4556 = vadd.xlane.f32.xlu1 %v4555_v61 }
0x1508   :  { %v4539_v16 = vmul.f32 %v8023_v11, %v8023_v11 }
0x150a   :  { %v4561_v19 = vsel %vm92_vm0, %v4539_v16, 0.0 }
0x150b   :  { %4562 = vadd.xlane.f32.xlu1 %v4561_v19 }
0x154c   :  { %v4542_v62 = vpop.xlane.xlu0 %4541 }
0x154d   :  { %v4564_v34 = vmul.f32 0.03125, %v4542_v62  ;;  %v8323_v62 = vld [vmem:[#allocation5_spill] sm:$0xff] }
0x154f   :  { %v4572_v43 = vadd.f32 1e-12, %v4564_v34 }
0x1550   :  { %v4545_v48 = vpop.xlane.xlu1 %4544 }
0x1551   :  { %6344 = vrsqrt.f32 %v4572_v43  ;;  %v4565_v56 = vmul.f32 0.03125, %v4545_v48 }
0x1553   :  { %v4573_v13 = vadd.f32 1e-12, %v4565_v56 }
0x1554   :  { %v4548_v52 = vpop.xlane.xlu0 %4547  ;;  %v4551_v0 = vpop.xlane.xlu1 %4550 }
0x1555   :  { %6346 = vrsqrt.f32 %v4573_v13  ;;  %v4566_v29 = vmul.f32 0.03125, %v4548_v52  ;;  %v4567_v33 = vmul.f32 0.03125, %v4551_v0 }
0x1557   :  { %v4574_v47 = vadd.f32 1e-12, %v4566_v29  ;;  %v4575_v44 = vadd.f32 1e-12, %v4567_v33 }
0x1559   :  { %6348 = vrsqrt.f32 %v4574_v47 }
0x155a   :  { %6350 = vrsqrt.f32 %v4575_v44 }
0x155e   :  { %v6345_v5 = vpop.eup %6344 }
0x155f   :  { %v4588_v24 = vmul.f32 %v6345_v5, %v7998_v26 }
0x1561   :  { %v4596_v23 = vmul.f32 %v4588_v24, %v8321_v63 }
0x1562   :  { %v6347_v9 = vpop.eup %6346 }
0x1563   :  { %v4589_v36 = vmul.f32 %v6347_v9, %v4525_v8  ;;  %v8034_v14 = vadd.f32 %v4596_v23, %v8322_v28 }
0x1565   :  { %v4597_v32 = vmul.f32 %v4589_v36, %v8321_v63 }
0x1566   :  { %v6349_v21 = vpop.eup %6348 }
0x1567   :  { %v6351_v49 = vpop.eup %6350  ;;  %v4590_v57 = vmul.f32 %v6349_v21, %v4526_v53  ;;  %v4605_v58 = vadd.f32 %v4597_v32, %v8322_v28 }
0x1568   :  { %v4591_v60 = vmul.f32 %v6351_v49, %v8002_v55 }
0x1569   :  { %v4598_v4 = vmul.f32 %v4590_v57, %v8321_v63  ;;  %v4612_v26 = vpack.c.bf16 %v4605_v58, %v8034_v14 }
0x156a   :  { %v4599_v27 = vmul.f32 %v4591_v60, %v8321_v63 }
0x156b   :  { %5887 = vmatprep.mubr.msk.bf16.mxu0 %vm92_vm0, %v4612_v26  ;;  %v8043_v3 = vadd.f32 %v4598_v4, %v8322_v28 }
0x156c   :  { %v4607_v35 = vadd.f32 %v4599_v27, %v8322_v28 }
0x156e   :  { %v4613_v8 = vpack.c.bf16 %v4607_v35, %v8043_v3 }
0x1570   :  { %5888 = vmatmul.mubr.msk.bf16.vlgmr.msra.gmra.mxu0 %vm92_vm0, %v4613_v8 }
0x158c   :  { %v4554_v39 = vpop.xlane.xlu0 %4553 }
0x158d   :  { %v4568_v37 = vmul.f32 0.03125, %v4554_v39 }
0x158f   :  { %v4576_v55 = vadd.f32 1e-12, %v4568_v37 }
0x1590   :  { %v4560_v7 = vpop.xlane.xlu0 %4559  ;;  %v4557_v59 = vpop.xlane.xlu1 %4556 }
0x1591   :  { %6352 = vrsqrt.f32 %v4576_v55  ;;  %v4570_v53 = vmul.f32 0.03125, %v4560_v7  ;;  %v4569_v18 = vmul.f32 0.03125, %v4557_v59 }
0x1593   :  { %v4578_v42 = vadd.f32 1e-12, %v4570_v53  ;;  %v4577_v1 = vadd.f32 1e-12, %v4569_v18 }
0x1594   :  { %v4563_v51 = vpop.xlane.xlu1 %4562 }
0x1595   :  { %6354 = vrsqrt.f32 %v4578_v42  ;;  %v4571_v31 = vmul.f32 0.03125, %v4563_v51 }
0x1596   :  { %6356 = vrsqrt.f32 %v4577_v1 }
0x1597   :  { %v4579_v22 = vadd.f32 1e-12, %v4571_v31 }
0x1599   :  { %6358 = vrsqrt.f32 %v4579_v22 }
0x159e   :  { %v6353_v46 = vpop.eup %6352 }
0x159f   :  { %v4592_v20 = vmul.f32 %v6353_v46, %v8010_v38 }
0x15a1   :  { %v4600_v50 = vmul.f32 %v4592_v20, %v8321_v63 }
0x15a2   :  { %v6355_v10 = vpop.eup %6354 }
0x15a3   :  { %v6357_v12 = vpop.eup %6356  ;;  %v4594_v25 = vmul.f32 %v6355_v10, %v8014_v41  ;;  %v8056_v15 = vadd.f32 %v4600_v50, %v8322_v28 }
0x15a4   :  { %v4593_v30 = vmul.f32 %v6357_v12, %v8016_v45 }
0x15a5   :  { %v4602_v54 = vmul.f32 %v4594_v25, %v8321_v63 }
0x15a6   :  { %v6359_v40 = vpop.eup %6358  ;;  %v4601_v17 = vmul.f32 %v4593_v30, %v8321_v63 }
0x15a7   :  { %v4595_v6 = vmul.f32 %v6359_v40, %v8023_v11  ;;  %v8062_v45 = vadd.f32 %v4602_v54, %v8322_v28 }
0x15a8   :  { %v4609_v38 = vadd.f32 %v4601_v17, %v8322_v28 }
0x15a9   :  { %v4603_v61 = vmul.f32 %v4595_v6, %v8321_v63 }
0x15aa   :  { %v4614_v41 = vpack.c.bf16 %v4609_v38, %v8056_v15 }
0x15ab   :  { %v4611_v16 = vadd.f32 %v4603_v61, %v8322_v28 }
0x15ac   :  { %5891 = vmatprep.mubr.msk.bf16.mxu0 %vm92_vm0, %v4614_v41 }
0x15ad   :  { %v4615_v11 = vpack.c.bf16 %v4611_v16, %v8062_v45 }
0x15af   :  { %5892 = vmatmul.mubr.msk.bf16.gmra.mxu0 %vm92_vm0, %v4615_v11 }
0x15b0   :  { %5923 = vmatprep.mubr.msk.bf16.mxu0 %vm6418_vm1, %v8316_v2 }
0x1630   :  { %v5889_v19 = vpop.f32.mrf.mxu0 }
0x1631   :  { %v4671_v34 = vadd.f32 %v5889_v19, %v8323_v62 }
0x1632   :  { %v4662_v43 = vpop.f32.mrf.mxu0 }
0x1633   :  { %v4703_v48 = vmul.f32 0.044715, %v4671_v34  ;;  %v4663_v56 = vadd.f32 %v4662_v43, %v8323_v62  ;;  %v4695_v51 = vmul.f32 0.5, %v4671_v34 }
0x1634   :  { %v5890_v13 = vpop.f32.mrf.mxu0 }
0x1635   :  { %v4711_v52 = vmul.f32 %v4703_v48, %v4671_v34  ;;  %v4701_v0 = vmul.f32 0.044715, %v4663_v56  ;;  %v4674_v29 = vadd.f32 %v5890_v13, %v8323_v62  ;;  %v4693_v18 = vmul.f32 0.5, %v4663_v56 }
0x1636   :  { %v4665_v33 = vpop.f32.mrf.mxu0 }
0x1637   :  { %v4719_v47 = vmul.f32 %v4711_v52, %v4671_v34  ;;  %v4709_v44 = vmul.f32 %v4701_v0, %v4663_v56  ;;  %v4704_v5 = vmul.f32 0.044715, %v4674_v29  ;;  %v4666_v24 = vadd.f32 %v4665_v33, %v8323_v62 }
0x1638   :  { %v4696_v53 = vmul.f32 0.5, %v4674_v29 }
0x1639   :  { %v4727_v9 = vadd.f32 %v4719_v47, %v4671_v34  ;;  %v4717_v36 = vmul.f32 %v4709_v44, %v4663_v56  ;;  %v4712_v63 = vmul.f32 %v4704_v5, %v4674_v29  ;;  %v4702_v23 = vmul.f32 0.044715, %v4666_v24 }
0x163a   :  { %v4694_v42 = vmul.f32 0.5, %v4666_v24 }
0x163b   :  { %v4735_v32 = vmul.f32 0.7978846, %v4727_v9  ;;  %v4720_v21 = vmul.f32 %v4712_v63, %v4674_v29  ;;  %v4725_v49 = vadd.f32 %v4717_v36, %v4663_v56  ;;  %v4710_v57 = vmul.f32 %v4702_v23, %v4666_v24 }
0x163d   :  { %v4728_v28 = vadd.f32 %v4720_v21, %v4674_v29  ;;  %v4733_v58 = vmul.f32 0.7978846, %v4725_v49  ;;  %v4718_v60 = vmul.f32 %v4710_v57, %v4666_v24  ;;  %6360 = vtanh.f32 %v4735_v32 }
0x163f   :  { %v4736_v4 = vmul.f32 0.7978846, %v4728_v28  ;;  %v4726_v26 = vadd.f32 %v4718_v60, %v4666_v24  ;;  %6362 = vtanh.f32 %v4733_v58 }
0x1641   :  { %6364 = vtanh.f32 %v4736_v4  ;;  %v4734_v27 = vmul.f32 0.7978846, %v4726_v26 }
0x1643   :  { %6366 = vtanh.f32 %v4734_v27 }
0x164a   :  { %v6361_v35 = vpop.eup %6360 }
0x164b   :  { %v4751_v59 = vadd.f32 1.0, %v6361_v35 }
0x164c   :  { %v6363_v8 = vpop.eup %6362 }
0x164d   :  { %v4749_v55 = vadd.f32 1.0, %v6363_v8  ;;  %v4759_v20 = vmul.f32 %v4751_v59, %v4695_v51  ;;  %v8324_v59 = vld [vmem:[#allocation6_spill] sm:$0xff] }
0x164e   :  { %v6365_v39 = vpop.eup %6364 }
0x164f   :  { %v4752_v37 = vadd.f32 1.0, %v6365_v39  ;;  %v4757_v22 = vmul.f32 %v4749_v55, %v4693_v18 }
0x1650   :  { %v6367_v7 = vpop.eup %6366 }
0x1651   :  { %v4750_v1 = vadd.f32 1.0, %v6367_v7  ;;  %v4760_v31 = vmul.f32 %v4752_v37, %v4696_v53 }
0x1653   :  { %v4758_v46 = vmul.f32 %v4750_v1, %v4694_v42  ;;  %v4766_v12 = vpack.c.bf16 %v4760_v31, %v4759_v20 }
0x1655   :  { %v4765_v10 = vpack.c.bf16 %v4758_v46, %v4757_v22 }
0x1657   :  { %5911 = vmatprep.mubr.bf16.mxu1 %v4765_v10 }
0x1658   :  { %5912 = vmatmul.mubr.bf16.vlgmr.msra.gmra.mxu1 %v4766_v12 }
0x166f   :  { %v5893_v25 = vpop.f32.mrf.mxu0 }
0x1670   :  { %v4687_v30 = vadd.f32 %v5893_v25, %v8323_v62 }
0x1671   :  { %v4678_v50 = vpop.f32.mrf.mxu0 }
0x1672   :  { %v4707_v40 = vmul.f32 0.044715, %v4687_v30  ;;  %v4679_v17 = vadd.f32 %v4678_v50, %v8323_v62  ;;  %v4699_v26 = vmul.f32 0.5, %v4687_v30 }
0x1673   :  { %v5894_v6 = vpop.f32.mrf.mxu0 }
0x1674   :  { %v4715_v54 = vmul.f32 %v4707_v40, %v4687_v30  ;;  %v4705_v38 = vmul.f32 0.044715, %v4679_v17  ;;  %v4690_v61 = vadd.f32 %v5894_v6, %v8323_v62  ;;  %v4697_v58 = vmul.f32 0.5, %v4679_v17 }
0x1675   :  { %v4681_v41 = vpop.f32.mrf.mxu0 }
0x1676   :  { %v4723_v16 = vmul.f32 %v4715_v54, %v4687_v30  ;;  %v4713_v11 = vmul.f32 %v4705_v38, %v4679_v17  ;;  %v4708_v19 = vmul.f32 0.044715, %v4690_v61  ;;  %v4682_v34 = vadd.f32 %v4681_v41, %v8323_v62 }
0x1677   :  { %v4700_v57 = vmul.f32 0.5, %v4690_v61 }
0x1678   :  { %v4731_v43 = vadd.f32 %v4723_v16, %v4687_v30  ;;  %v4721_v48 = vmul.f32 %v4713_v11, %v4679_v17  ;;  %v4716_v56 = vmul.f32 %v4708_v19, %v4690_v61  ;;  %v4706_v13 = vmul.f32 0.044715, %v4682_v34 }
0x1679   :  { %v4698_v60 = vmul.f32 0.5, %v4682_v34 }
0x167a   :  { %v4724_v52 = vmul.f32 %v4716_v56, %v4690_v61  ;;  %v4714_v0 = vmul.f32 %v4706_v13, %v4682_v34  ;;  %v4729_v29 = vadd.f32 %v4721_v48, %v4679_v17  ;;  %v4739_v33 = vmul.f32 0.7978846, %v4731_v43 }
0x167c   :  { %v4732_v47 = vadd.f32 %v4724_v52, %v4690_v61  ;;  %v4722_v44 = vmul.f32 %v4714_v0, %v4682_v34  ;;  %v4737_v5 = vmul.f32 0.7978846, %v4729_v29 }
0x167e   :  { %v4740_v24 = vmul.f32 0.7978846, %v4732_v47  ;;  %v4730_v9 = vadd.f32 %v4722_v44, %v4682_v34  ;;  %6368 = vtanh.f32 %v4737_v5  ;;  %v8325_v5 = vld [vmem:[#allocation10_spill] sm:$0xff] }
0x167f   :  { %6370 = vtanh.f32 %v4739_v33 }
0x1680   :  { %6372 = vtanh.f32 %v4740_v24  ;;  %v4738_v36 = vmul.f32 0.7978846, %v4730_v9  ;;  %v5275_v24 = vadd.f32 -1.0, %v8325_v5 }
0x1682   :  { %6374 = vtanh.f32 %v4738_v36  ;;  %v1949_v9 = vmul.f32 %v5275_v24, %v5275_v24  ;;  %v8326_v36 = vld [vmem:[#allocation12_spill] sm:$0xff] }
0x168b   :  { %v6369_v63 = vpop.eup %6368 }
0x168c   :  { %v6371_v62 = vpop.eup %6370  ;;  %v4753_v32 = vadd.f32 1.0, %v6369_v63  ;;  %v5276_v63 = vadd.f32 -1.0, %v8326_v36 }
0x168d   :  { %v6373_v23 = vpop.eup %6372  ;;  %v4755_v28 = vadd.f32 1.0, %v6371_v62 }
0x168e   :  { %v4756_v21 = vadd.f32 1.0, %v6373_v23  ;;  %v4761_v35 = vmul.f32 %v4753_v32, %v4697_v58  ;;  %v1950_v62 = vmul.f32 %v5276_v63, %v5276_v63  ;;  %v8327_v23 = vld [vmem:[#allocation11_spill] sm:$0xff] }
0x168f   :  { %v6375_v49 = vpop.eup %6374  ;;  %v4763_v39 = vmul.f32 %v4755_v28, %v4699_v26  ;;  %v5278_v32 = vadd.f32 -1.0, %v8327_v23  ;;  %v1939_v26 = vmul.f32 1.442695, %v8326_v36 }
0x1690   :  { %v4754_v4 = vadd.f32 1.0, %v6375_v49  ;;  %v4764_v27 = vmul.f32 %v4756_v21, %v4700_v57  ;;  %v6086_v49 = vld [vmem:[%s8247_s11 + $0x8] sm:$0xff]   ;;  %v6087_v57 = vld [vmem:[%s8247_s11] sm:$0xff]  }
0x1691   :  { %v1952_v21 = vmul.f32 %v5278_v32, %v5278_v32  ;;  %5920 = vmatpush3.bf16.msra.mxu0 %v6086_v49  ;;  %6376 = vpow2.f32 %v1939_v26 }
0x1692   :  { %v4762_v8 = vmul.f32 %v4754_v4, %v4698_v60  ;;  %v4768_v55 = vpack.c.bf16 %v4764_v27, %v4763_v39  ;;  %5921 = vmatprep.subr.bf16.mxu0 %v8316_v2 }
0x1694   :  { %v4767_v37 = vpack.c.bf16 %v4762_v8, %v4761_v35  ;;  %v1943_v8 = vmul.f32 1.442695, %v8327_v23 }
0x1695   :  { %5922 = vmatpush3.bf16.msra.mxu0 %v6087_v57  ;;  %v1973_v57 = vsub.f32 -1.0986123, %v8325_v5 }
0x1696   :  { %5915 = vmatprep.mubr.bf16.mxu1 %v4767_v37  ;;  %5927 = vmatprep.subr.bf16.mxu0 %v8316_v2 }
0x1697   :  { %5916 = vmatmul.mubr.bf16.gmra.mxu1 %v4768_v55 }
0x1698   :  { %5951 = vmatprep.mubr.msk.bf16.mxu1 %vm6418_vm1, %v8316_v2 }
0x1718   :  { %v5913_v7 = vpop.f32.mrf.mxu1 }
0x1719   :  { %v4811_v53 = vadd.f32 %v5913_v7, %v8324_v59 }
0x171a   :  { %v4803_v18 = vpop.f32.mrf.mxu1 }
0x171b   :  { %v4831_v42 = vadd.f32 %v4811_v53, %v8043_v3  ;;  %v4804_v1 = vadd.f32 %v4803_v18, %v8324_v59 }
0x171c   :  { %v5914_v51 = vpop.f32.mrf.mxu1 }
0x171d   :  { %v4830_v31 = vadd.f32 %v4804_v1, %v8034_v14  ;;  %v4837_v22 = vsel %vm92_vm0, %v4831_v42, 0.0  ;;  %v6377_v1 = vpop.eup %6376 }
0x171e   :  { %4838 = vadd.xlane.f32.xlu0 %v4837_v22  ;;  %v4806_v46 = vpop.f32.mrf.mxu1 }
0x171f   :  { %v4834_v20 = vsel %vm92_vm0, %v4830_v31, 0.0 }
0x1722   :  { %4835 = vadd.xlane.f32.xlu0 %v4834_v20 }
0x1757   :  { %v5917_v10 = vpop.f32.mrf.mxu1 }
0x1758   :  { %v4825_v25 = vadd.f32 %v5917_v10, %v8324_v59  ;;  %v1974_v10 = vsub.f32 -1.0986123, %v8326_v36 }
0x1759   :  { %v4817_v12 = vpop.f32.mrf.mxu1 }
0x175a   :  { %v4818_v30 = vadd.f32 %v4817_v12, %v8324_v59  ;;  %v4833_v17 = vadd.f32 %v4825_v25, %v8062_v45 }
0x175b   :  { %v5918_v50 = vpop.f32.mrf.mxu1 }
0x175c   :  { %v4832_v3 = vadd.f32 %v4818_v30, %v8056_v15  ;;  %v4843_v6 = vsel %vm92_vm0, %v4833_v17, 0.0 }
0x175d   :  { %v4820_v40 = vpop.f32.mrf.mxu1 }
0x175e   :  { %v4840_v14 = vsel %vm92_vm0, %v4832_v3, 0.0 }
0x175f   :  { %4841 = vadd.xlane.f32.xlu1 %v4840_v14  ;;  %v1976_v14 = vsub.f32 -1.0986123, %v8327_v23 }
0x1763   :  { %4844 = vadd.xlane.f32.xlu1 %v4843_v6  ;;  %v8328_v6 = vld [vmem:[#allocation7_spill] sm:$0xff] }
0x17a7   :  { %v4839_v54 = vpop.xlane.xlu0 %4838 }
0x17a8   :  { %v4847_v38 = vmul.f32 0.03125, %v4839_v54 }
0x17aa   :  { %v8092_v61 = vsub.f32 %v4831_v42, %v4847_v38  ;;  %v1937_v42 = vmul.f32 1.442695, %v8325_v5  ;;  %v6089_v5 = vld [vmem:[%s8248_s12] sm:$0xff]  }
0x17ab   :  { %v4836_v41 = vpop.xlane.xlu0 %4835 }
0x17ac   :  { %v4846_v16 = vmul.f32 0.03125, %v4836_v41  ;;  %v4855_v11 = vmul.f32 %v8092_v61, %v8092_v61 }
0x17ae   :  { %v8096_v19 = vsub.f32 %v4830_v31, %v4846_v16  ;;  %v4861_v15 = vsel %vm92_vm0, %v4855_v11, 0.0 }
0x17af   :  { %4862 = vadd.xlane.f32.xlu0 %v4861_v15 }
0x17b0   :  { %v4854_v45 = vmul.f32 %v8096_v19, %v8096_v19 }
0x17b2   :  { %v4858_v34 = vsel %vm92_vm0, %v4854_v45, 0.0 }
0x17b3   :  { %4859 = vadd.xlane.f32.xlu0 %v4858_v34 }
0x17e8   :  { %v4842_v43 = vpop.xlane.xlu1 %4841 }
0x17e9   :  { %v4848_v48 = vmul.f32 0.03125, %v4842_v43  ;;  %v8329_v43 = vld [vmem:[#allocation8_spill] sm:$0xff] }
0x17eb   :  { %v8102_v56 = vsub.f32 %v4832_v3, %v4848_v48 }
0x17ec   :  { %v4845_v13 = vpop.xlane.xlu1 %4844 }
0x17ed   :  { %v4849_v52 = vmul.f32 0.03125, %v4845_v13  ;;  %v4856_v0 = vmul.f32 %v8102_v56, %v8102_v56 }
0x17ef   :  { %v8106_v29 = vsub.f32 %v4833_v17, %v4849_v52  ;;  %v4864_v33 = vsel %vm92_vm0, %v4856_v0, 0.0 }
0x17f0   :  { %4865 = vadd.xlane.f32.xlu1 %v4864_v33 }
0x17f1   :  { %v4857_v47 = vmul.f32 %v8106_v29, %v8106_v29 }
0x17f3   :  { %v4867_v44 = vsel %vm92_vm0, %v4857_v47, 0.0 }
0x17f4   :  { %4868 = vadd.xlane.f32.xlu1 %v4867_v44 }
0x1805   :  { %1957 = vrot.lane.b32.xlu1 %v1949_v9, %s6433_s10 }
0x1809   :  { %1959 = vrot.lane.b32.xlu1 %v1950_v62, %s6433_s10 }
0x180d   :  { %1963 = vrot.lane.b32.xlu1 %v1952_v21, %s6433_s10  ;;  %v8330_v21 = vld [vmem:[#allocation9_spill] sm:$0xff] }
0x180e   :  { %v5277_v49 = vadd.f32 -1.0, %v8330_v21  ;;  %v1941_v26 = vmul.f32 1.442695, %v8330_v21 }
0x1838   :  { %v4863_v28 = vpop.xlane.xlu0 %4862 }
0x1839   :  { %v4871_v60 = vmul.f32 0.03125, %v4863_v28 }
0x183b   :  { %v4875_v27 = vadd.f32 1e-12, %v4871_v60 }
0x183c   :  { %v4860_v58 = vpop.xlane.xlu0 %4859 }
0x183d   :  { %v4870_v4 = vmul.f32 0.03125, %v4860_v58  ;;  %6378 = vrsqrt.f32 %v4875_v27  ;;  %v1951_v58 = vmul.f32 %v5277_v49, %v5277_v49 }
0x183f   :  { %v4874_v35 = vadd.f32 1e-12, %v4870_v4  ;;  %v6088_v4 = vld [vmem:[%s8248_s12 + $0x8] sm:$0xff]  }
0x1841   :  { %6380 = vrsqrt.f32 %v4874_v35 }
0x1842   :  { %6382 = vpow2.f32 %v1943_v8 }
0x184a   :  { %v6379_v51 = vpop.eup %6378 }
0x184b   :  { %v4883_v20 = vmul.f32 %v6379_v51, %v8092_v61  ;;  %v8169_v51 = vld [vmem:[%s8237_s6 + $0x8] sm:$0xff] }
0x184d   :  { %v4887_v54 = vmul.f32 %v4883_v20, %v8328_v6 }
0x184e   :  { %v6381_v46 = vpop.eup %6380 }
0x184f   :  { %v6383_v25 = vpop.eup %6382  ;;  %v4882_v50 = vmul.f32 %v6381_v46, %v8096_v19  ;;  %v4891_v48 = vadd.f32 %v4887_v54, %v8329_v43  ;;  %v6090_v54 = vld [vmem:[%s8249_s15 + $0x18] sm:$0xff]  }
0x1851   :  { %v4886_v61 = vmul.f32 %v4882_v50, %v8328_v6  ;;  %v4895_v44 = vrot.slane %v4891_v48, 7 }
0x1853   :  { %v4890_v52 = vadd.f32 %v4886_v61, %v8329_v43 }
0x1855   :  { %v4904_v9 = vsel %vm4903_vm5, %v4890_v52, %v4895_v44  ;;  %v1934_v52 = vld [vmem:[%s8250_s5 + $0x8] sm:$0xff] }
0x1879   :  { %v4866_v39 = vpop.xlane.xlu1 %4865 }
0x187a   :  { %v4872_v37 = vmul.f32 0.03125, %v4866_v39 }
0x187c   :  { %v4876_v55 = vadd.f32 1e-12, %v4872_v37 }
0x187d   :  { %v4869_v7 = vpop.xlane.xlu1 %4868 }
0x187e   :  { %6384 = vrsqrt.f32 %v4876_v55  ;;  %v4873_v59 = vmul.f32 0.03125, %v4869_v7  ;;  %v1975_v7 = vsub.f32 -1.0986123, %v8330_v21 }
0x1880   :  { %v4877_v53 = vadd.f32 1e-12, %v4873_v59 }
0x1881   :  { %v1958_v18 = vpop.permute.xlu1 %1957 }
0x1882   :  { %6386 = vrsqrt.f32 %v4877_v53 }
0x1883   :  { %6388 = vpow2.f32 %v1937_v42 }
0x1884   :  { %6390 = vpow2.f32 %v1941_v26 }
0x1885   :  { %v1960_v31 = vpop.permute.xlu1 %1959 }
0x1886   :  { %v1970_v22 = vadd.f32 %v6377_v1, %v1960_v31  ;;  %v8331_v31 = vld [vmem:[#allocation2_spill] sm:$0xff] }
0x1888   :  { %v1978_v12 = vmul.f32 3.0, %v1970_v22  ;;  %v8332_v22 = vsub.s32 2, %v8331_v31 }
0x1889   :  { %v1964_v30 = vpop.permute.xlu1 %1963 }
0x188a   :  { %v1982_v3 = vadd.f32 %v1978_v12, %v1974_v10  ;;  %v1972_v40 = vadd.f32 %v6383_v25, %v1964_v30  ;;  %v4917_v46 = vrot.slane %v8169_v51, %v8332_v22 }
0x188b   :  { %v6385_v17 = vpop.eup %6384 }
0x188c   :  { %v4884_v38 = vmul.f32 %v6385_v17, %v8102_v56  ;;  %v5280_v41 = vadd.f32 -1.0, %v1982_v3  ;;  %v1980_v16 = vmul.f32 3.0, %v1972_v40 }
0x188e   :  { %v4888_v11 = vmul.f32 %v4884_v38, %v8328_v6  ;;  %v1984_v15 = vadd.f32 %v1980_v16, %v1976_v14  ;;  %1995 = vrot.lane.b32.xlu1 %v5280_v41, %s6419_s25  ;;  %v6091_v16 = vld [vmem:[%s8249_s15 + $0x10] sm:$0xff]  }
0x188f   :  { %v6387_v45 = vpop.eup %6386 }
0x1890   :  { %v4885_v19 = vmul.f32 %v6387_v45, %v8106_v29  ;;  %v5282_v34 = vadd.f32 -1.0, %v1984_v15  ;;  %v4892_v13 = vadd.f32 %v4888_v11, %v8329_v43  ;;  %v6389_v33 = vpop.eup %6388  ;;  %v6092_v11 = vld [vmem:[%s8249_s15 + $0x8] sm:$0xff]   ;;  %v6093_v45 = vld [vmem:[%s8249_s15] sm:$0xff]  }
0x1891   :  { %v1969_v24 = vadd.f32 %v6389_v33, %v1958_v18  ;;  %v6391_v39 = vpop.eup %6390  ;;  %v2043_v33 = vsel %vm2025_vm10, %v1934_v52, 0.0 }
0x1892   :  { %1999 = vrot.lane.b32.xlu1 %v5282_v34, %s6419_s25  ;;  %v4889_v56 = vmul.f32 %v4885_v19, %v8328_v6  ;;  %v4898_v0 = vrot.slane %v4892_v13, 6 }
0x1893   :  { %v1977_v62 = vmul.f32 3.0, %v1969_v24  ;;  %v1935_v24 = vld [vmem:[%s8250_s5 + $0x10] sm:$0xff] }
0x1894   :  { %v4893_v47 = vadd.f32 %v4889_v56, %v8329_v43  ;;  %v4906_v36 = vsel %vm4905_vm6, %v4904_v9, %v4898_v0  ;;  %v1933_v0 = vld [vmem:[%s8250_s5] sm:$0xff] }
0x1895   :  { %v1981_v28 = vadd.f32 %v1977_v62, %v1973_v57 }
0x1896   :  { %v4901_v29 = vrot.slane %v4893_v47, 5  ;;  %v2042_v47 = vsel %vm2025_vm10, %v1933_v0, 0.0 }
0x1897   :  { %v5279_v60 = vadd.f32 -1.0, %v1981_v28  ;;  %v2044_v44 = vadd.f32 %v2043_v33, %v2042_v47 }
0x1898   :  { %v4908_v63 = vsel %vm4907_vm7, %v4906_v36, %v4901_v29  ;;  %v2045_v29 = vsel %vm2025_vm10, %v1935_v24, 0.0  ;;  %v1936_v36 = vld [vmem:[%s8250_s5 + $0x18] sm:$0xff] }
0x1899   :  { %v5039_v23 = vrot.slane %v4908_v63, 2  ;;  %v4913_v32 = vpack.c.bf16 %v4908_v63, %v4908_v63  ;;  %v2046_v9 = vadd.f32 %v2045_v29, %v2044_v44 }
0x189b   :  { %5040 = vrot.lane.b32.xlu0 %v5039_v23, %s6433_s10  ;;  %5924 = vmatmul.mubr.msk.bf16.vlgmr.msra.gmra.mxu0 %vm92_vm0, %v4913_v32  ;;  %v6094_v23 = vld [vmem:[%s8251_s16 + $0x8] sm:$0xff]   ;;  %v6095_v32 = vld [vmem:[%s8251_s16] sm:$0xff]  }
0x189c   :  { %5931 = vmatprep.mubr.msk.bf16.mxu0 %vm6418_vm1, %v8316_v2  ;;  %5928 = vmatpush3.bf16.msra.mxu0 %v6088_v4 }
0x189d   :  { %5929 = vmatprep.subr.bf16.mxu0 %v8316_v2  ;;  %5948 = vmatpush3.bf16.msra.mxu1 %v6094_v23 }
0x189e   :  { %5949 = vmatprep.subr.bf16.mxu1 %v8316_v2 }
0x189f   :  { %1961 = vrot.lane.b32.xlu0 %v1951_v58, %s6433_s10 }
0x18a0   :  { %5930 = vmatpush3.bf16.msra.mxu0 %v6089_v5 }
0x18a1   :  { %5935 = vmatprep.subr.bf16.mxu0 %v8316_v2  ;;  %5950 = vmatpush3.bf16.msra.mxu1 %v6095_v32 }
0x18a3   :  { %1993 = vrot.lane.b32.xlu0 %v5279_v60, %s6419_s25 }
0x1900   :  { %v1996_v27 = vpop.permute.xlu1 %1995 }
0x1901   :  { %v2008_v35 = vsel %vm92_vm0, %v1996_v27, 0.0 }
0x1902   :  { %2009 = vadd.xlane.f32.xlu1 %v2008_v35 }
0x1904   :  { %v2000_v13 = vpop.permute.xlu1 %1999 }
0x1905   :  { %v2014_v56 = vsel %vm92_vm0, %v2000_v13, 0.0  ;;  %v5152_v13 = vrot.slane %v8169_v51, 7 }
0x190d   :  { %v5041_v8 = vpop.permute.xlu0 %5040 }
0x190e   :  { %v5043_v20 = vsel %vm92_vm0, %v4908_v63, %v5041_v8  ;;  %v2047_v63 = vsel %vm2025_vm10, %v1936_v36, 0.0 }
0x190f   :  { %v5045_v25 = vsel %vm5044_vm8, %v5043_v20, 0.0  ;;  %v2048_v62 = vadd.f32 %v2047_v63, %v2046_v9 }
0x1910   :  { %v5046_v3 = vrot.slane %v5045_v25, 4 }
0x1911   :  { %v1962_v37 = vpop.permute.xlu0 %1961 }
0x1912   :  { %v1971_v55 = vadd.f32 %v6391_v39, %v1962_v37  ;;  %v5047_v17 = vadd.f32 %v5046_v3, %v5045_v25 }
0x1914   :  { %v1979_v59 = vmul.f32 3.0, %v1971_v55  ;;  %v5048_v14 = vrot.slane %v5047_v17, 2 }
0x1915   :  { %v1994_v42 = vpop.permute.xlu0 %1993 }
0x1916   :  { %v1983_v53 = vadd.f32 %v1979_v59, %v1975_v7  ;;  %v2005_v1 = vsel %vm92_vm0, %v1994_v42, 0.0  ;;  %v5049_v38 = vadd.f32 %v5048_v14, %v5047_v17 }
0x1918   :  { %v5281_v18 = vadd.f32 -1.0, %v1983_v53  ;;  %v5050_v61 = vrot.slane %v5049_v38, 1 }
0x191a   :  { %1997 = vrot.lane.b32.xlu0 %v5281_v18, %s6419_s25  ;;  %v5051_v15 = vadd.f32 %v5050_v61, %v5049_v38 }
0x191c   :  { %v5053_v19 = vmul.f32 0.5, %v5051_v15 }
0x191e   :  { %v5062_v34 = vpack.c.bf16 %v5053_v19, %v5053_v19 }
0x1939   :  { %2006 = vadd.xlane.f32.xlu0 %v2005_v1 }
0x195b   :  { %v4967_v10 = vpop.f32.mrf.mxu0 }
0x195c   :  { %v4968_v12 = vadd.f32 %v4967_v10, %v4917_v46  ;;  %v5088_v46 = vrot.slane %v8169_v51, 6 }
0x195d   :  { %v5925_v30 = vpop.f32.mrf.mxu0 }
0x195e   :  { %6392 = vtanh.f32 %v4968_v12 }
0x195f   :  { %v4970_v50 = vpop.f32.mrf.mxu0 }
0x1961   :  { %v5926_v40 = vpop.f32.mrf.mxu0 }
0x196b   :  { %v6393_v6 = vpop.eup %6392 }
0x196c   :  { %v4978_v41 = vpack.c.bf16 %v6393_v6, %v6393_v6 }
0x196e   :  { %5932 = vmatmul.mubr.msk.bf16.vlgmr.msra.gmra.mxu0 %vm92_vm0, %v4978_v41 }
0x196f   :  { %5936 = vmatpush3.bf16.msra.mxu0 %v6090_v54  ;;  %5943 = vmatprep.mubr.msk.bf16.mxu0 %vm6418_vm1, %v8316_v2 }
0x1970   :  { %5937 = vmatprep.subr.bf16.mxu0 %v8316_v2 }
0x1973   :  { %5938 = vmatpush3.bf16.msra.mxu0 %v6091_v16 }
0x1974   :  { %5939 = vmatprep.subr.bf16.mxu0 %v8316_v2 }
0x1977   :  { %5940 = vmatpush3.bf16.msra.mxu0 %v6092_v11 }
0x1978   :  { %5941 = vmatprep.subr.bf16.mxu0 %v8316_v2 }
0x197b   :  { %5942 = vmatpush3.bf16.msra.mxu0 %v6093_v45 }
0x197e   :  { %5944 = vmatmul.mubr.msk.bf16.vlgmr.msra.gmra.mxu0 %vm5090_vm9, %v5062_v34 }
0x198b   :  { %v2010_v49 = vpop.xlane.xlu1 %2009 }
0x198c   :  { %v1998_v43 = vpop.permute.xlu0 %1997  ;;  %v2018_v28 = vmul.f32 0.5, %v2010_v49  ;;  %v8333_v49 = vsub.s32 3, %v8331_v31 }
0x198d   :  { %v2011_v48 = vsel %vm92_vm0, %v1998_v43, 0.0 }
0x198e   :  { %2012 = vadd.xlane.f32.xlu0 %v2011_v48  ;;  %v2022_v4 = vmul.f32 %v2018_v28, %v1934_v52 }
0x1990   :  { %v2027_v8 = vsel %vm2025_vm10, %v2022_v4, 0.0 }
0x1992   :  { %2015 = vadd.xlane.f32.xlu0 %v2014_v56 }
0x1996   :  { %2049 = vadd.xlane.f32.xlu0 %v2048_v62 }
0x19c2   :  { %v2007_v21 = vpop.xlane.xlu0 %2006 }
0x19c3   :  { %v2017_v57 = vmul.f32 0.5, %v2007_v21 }
0x19c5   :  { %v2021_v58 = vmul.f32 %v2017_v57, %v1933_v0  ;;  %v4982_v57 = vrot.slane %v8169_v51, %v8333_v49 }
0x19c7   :  { %v2026_v26 = vsel %vm2025_vm10, %v2021_v58, 0.0 }
0x19c8   :  { %v2028_v37 = vadd.f32 %v2027_v8, %v2026_v26 }
0x1a17   :  { %v2013_v60 = vpop.xlane.xlu0 %2012 }
0x1a18   :  { %v2019_v5 = vmul.f32 0.5, %v2013_v60 }
0x1a1a   :  { %v2023_v27 = vmul.f32 %v2019_v5, %v1935_v24 }
0x1a1b   :  { %v2016_v35 = vpop.xlane.xlu0 %2015 }
0x1a1c   :  { %v2029_v2 = vsel %vm2025_vm10, %v2023_v27, 0.0  ;;  %v2020_v39 = vmul.f32 0.5, %v2016_v35 }
0x1a1d   :  { %v2030_v7 = vadd.f32 %v2029_v2, %v2028_v37 }
0x1a1e   :  { %v2024_v55 = vmul.f32 %v2020_v39, %v1936_v36 }
0x1a1f   :  { %v2050_v40 = vpop.xlane.xlu0 %2049 }
0x1a20   :  { %v2031_v59 = vsel %vm2025_vm10, %v2024_v55, 0.0  ;;  %v2051_v17 = vrot.slane %v2050_v40, 4 }
0x1a21   :  { %v2032_v53 = vadd.f32 %v2031_v59, %v2030_v7 }
0x1a22   :  { %v2052_v14 = vadd.f32 %v2051_v17, %v2050_v40 }
0x1a23   :  { %2033 = vadd.xlane.f32.xlu1 %v2032_v53 }
0x1a24   :  { %v2053_v6 = vrot.slane %v2052_v14, 2 }
0x1a26   :  { %v2054_v41 = vadd.f32 %v2053_v6, %v2052_v14 }
0x1a28   :  { %v2055_v11 = vrot.slane %v2054_v41, 1 }
0x1a2a   :  { %v2056_v19 = vadd.f32 %v2055_v11, %v2054_v41 }
0x1a2e   :  { %v8222_v18 = vpop.f32.mrf.mxu0 }
0x1a2f   :  { %v5033_v4 = vadd.f32 %v8222_v18, %v4982_v57 }
0x1a30   :  { %v5933_v42 = vpop.f32.mrf.mxu0 }
0x1a32   :  { %v5035_v1 = vpop.f32.mrf.mxu0 }
0x1a34   :  { %v5934_v22 = vpop.f32.mrf.mxu0 }
0x1a3e   :  { %v5128_v20 = vpop.f32.mrf.mxu0 }
0x1a3f   :  { %v5129_v10 = vadd.f32 %v5128_v20, %v5088_v46 }
0x1a40   :  { %v5945_v12 = vpop.f32.mrf.mxu0 }
0x1a41   :  { %v5134_v25 = vmax.f32 %v5129_v10, 0.0 }
0x1a42   :  { %v5131_v30 = vpop.f32.mrf.mxu0 }
0x1a43   :  { %v5139_v50 = vpack.c.bf16 %v5134_v25, %v5134_v25 }
0x1a44   :  { %v5946_v3 = vpop.f32.mrf.mxu0 }
0x1a45   :  { %5952 = vmatmul.mubr.msk.bf16.vlgmr.msra.gmra.mxu1 %vm92_vm0, %v5139_v50 }
0x1aac   :  { %v2034_v54 = vpop.xlane.xlu1 %2033 }
0x1aad   :  { %v2035_v38 = vrot.slane %v2034_v54, 4 }
0x1aaf   :  { %v2036_v16 = vadd.f32 %v2035_v38, %v2034_v54 }
0x1ab1   :  { %v2037_v61 = vrot.slane %v2036_v16, 2 }
0x1ab3   :  { %v2038_v15 = vadd.f32 %v2037_v61, %v2036_v16 }
0x1ab5   :  { %v2039_v45 = vrot.slane %v2038_v15, 1 }
0x1ab7   :  { %v2040_v34 = vadd.f32 %v2039_v45, %v2038_v15 }
0x1ab9   :  { %5955 = vpush %v2040_v34 }
0x1aba   :  { %5957 = vpush %v2056_v19 }
0x1aea   :  { %s5956_s5 = spop %5955 }
0x1aeb   :  { %s5958_s16 = spop %5957 }
0x1aec   :  { %v2058_v43 = vstv %s5958_s16 }
0x1aed   :  { %6394 = vrcp.f32 %v2058_v43 }
0x1afa   :  { %v6395_v48 = vpop.eup %6394 }
0x1afb   :  { %5959 = vpush %v6395_v48 }
0x1b05   :  { %v5191_v56 = vpop.f32.mrf.mxu1 }
0x1b06   :  { %v5192_v52 = vadd.f32 %v5191_v56, %v5152_v13 }
0x1b07   :  { %v5953_v0 = vpop.f32.mrf.mxu1 }
0x1b08   :  { %v5197_v33 = vmul.f32 2.0, %v5192_v52 }
0x1b09   :  { %v5194_v47 = vpop.f32.mrf.mxu1 }
0x1b0a   :  { %v5199_v44 = vsel %vm5198_vm11, %v5197_v33, -inf }
0x1b0b   :  { %v5954_v24 = vpop.f32.mrf.mxu1  ;;  %5200 = vmax.xlane.f32.xlu1 %v5199_v44 }
0x1b2c   :  { %s5960_s23 = spop %5959 }
0x1b2d   :  { %s2061_s22 = smul.f32 %s5960_s23, %s5956_s5 }
0x1b2f   :  { %v5212_v32 = vstv %s2061_s22 }
0x1b30   :  { %v5213_v58 = vsel %vm2025_vm10, %v5212_v32, 0.0 }
0x1b31   :  { %v5218_v26 = vrot.slane %v5213_v58, 3 }
0x1b94   :  { %v5201_v29 = vpop.xlane.xlu1 %5200 }
0x1b95   :  { %v5202_v9 = vsub.f32 %v5197_v33, %v5201_v29 }
0x1b97   :  { %v5203_v36 = vmul.f32 1.442695, %v5202_v9 }
0x1b99   :  { %6396 = vpow2.f32 %v5203_v36 }
0x1ba6   :  { %v6397_v63 = vpop.eup %6396 }
0x1ba7   :  { %v5205_v62 = vsel %vm5198_vm11, %v6397_v63, 0.0 }
0x1ba8   :  { %5206 = vadd.xlane.f32.xlu0 %v5205_v62 }
0x1c31   :  { %v5207_v23 = vpop.xlane.xlu0 %5206 }
0x1c32   :  { %6398 = vrcp.f32 %v5207_v23 }
0x1c3f   :  { %v6399_v21 = vpop.eup %6398 }
0x1c40   :  { %v5209_v28 = vmul.f32 %v6399_v21, %v6397_v63 }
0x1c42   :  { %v5211_v60 = vsel %vm5210_vm12, %v5209_v28, 0.0 }
0x1c43   :  { %v5215_v5 = vrot.slane %v5211_v60, 4 }
0x1c45   :  { %v5221_v27 = vsel %vm5220_vm13, %v5033_v4, %v5215_v5 }
0x1c46   :  { %v5223_v35 = vsel %vm5222_vm14, %v5221_v27, %v5218_v26 }
0x1c47   :  { %v5225_v8 = vsel %vm5224_vm15, %v5223_v35, 0.0 }
0x1c48   :  { %5226 = vst [vmem:[%s8252_s17] sm:$0xff] %v5225_v8 }

</bundles_post_ra>
